<compile_context>
chip_gen: v7x
topology: tpu7x:2x2x1
jax: 0.10.0
libtpu: 0.0.40
codegen_flags: <defaults>
</compile_context>

<pallas_src>
import functools

import jax
import jax.numpy as jnp
from jax.experimental import pallas as pl
from jax.experimental.pallas import tpu as pltpu


def _round_up(x, m):
    return ((x + m - 1) // m) * m


def _physical_vmem_bytes():
    """Per-TensorCore physical VMEM (v5e/v6e: 128 MiB, v7x: 64 MiB)."""
    try:
        return int(pltpu.get_tpu_info().vmem_capacity_bytes)
    except Exception:
        return 128 << 20


def _corr_kernel(x1_ref, x2_ref, o_ref, *, disp, rows_per_group, n_dy_groups,
                 stride2, wp, n1, inv_c, c_chunk):
    """Grid: (batch, dy-group).  One step writes rows_per_group * D displacement planes.

    x1_ref: (1, C, N1)  input1 samples on an (H_out, Wp) grid, flattened; zero in the
                        columns x >= W_out and in the lane padding.
    x2_ref: (1, C, N2)  padded input2 plane, flattened (row stride Wp), zero tail so
                        every static shifted window [t, t+N1) is in bounds.
    o_ref : (1, rows_per_group, D, N1)
    """
    c_total = x1_ref.shape[1]

    def dy_block(p):
        # All D dx-planes for row displacement dy = p*stride2, built as one (D, N1)
        # value -> a single lane-dense store instead of D sublane-masked row stores.
        dy = p * stride2
        rows = []
        for oi in range(disp):
            t = dy * wp + oi * stride2                     # static flat shift
            acc = None
            # Channel contraction in chunks: bounded live operands; re-reading the
            # chunks per dx keeps vreg pressure low (casts are no-ops for f32 inputs;
            # for bf16 on v5e prefer f32 inputs from the wrapper).
            for c0 in range(0, c_total, c_chunk):
                cs = min(c_chunk, c_total - c0)
                a = x1_ref[0, c0:c0 + cs, :].astype(jnp.float32)
                b = x2_ref[0, c0:c0 + cs, t:t + n1].astype(jnp.float32)
                part = jnp.sum(a * b, axis=0, keepdims=True)       # (1, N1) f32
                acc = part if acc is None else acc + part
            rows.append(acc)
        return (jnp.concatenate(rows, axis=0) * inv_c).astype(o_ref.dtype)

    def write_group(gg):
        for r in range(rows_per_group):
            o_ref[0, r] = dy_block(gg * rows_per_group + r)

    if n_dy_groups == 1:
        write_group(0)                     # every dy folded into this single grid step
    else:
        g = pl.program_id(1)
        for gg in range(n_dy_groups):
            @pl.when(g == gg)
            def _(gg=gg):
                write_group(gg)


def correlation(input1, input2, *, pad_size=4, kernel_size=1, max_displacement=4,
                stride1=1, stride2=1, corr_multiply=1,
                dy_groups=None, channel_chunk=None):
    """Forward of the Correlation module.  Inputs/outputs are NCHW."""
    # TODO(synk): kernel_size > 1 / stride1 > 1 paths not implemented (PWC-Net uses 1/1).
    assert kernel_size == 1 and stride1 == 1
    del corr_multiply   # the CUDA forward only implements multiplicative correlation

    B, C, H, W = input1.shape
    md = int(max_displacement)
    pad = int(pad_size)
    s2 = int(stride2)
    R = md // s2
    D = 2 * R + 1
    D2 = D * D
    Hp, Wp = H + 2 * pad, W + 2 * pad
    H_out, W_out = Hp - 2 * md, Wp - 2 * md
    assert H_out > 0 and W_out > 0

    # ---- input1: samples x1p[:, :, md+y, md+x] taken from the *unpadded* tensor
    # (identity slice when pad_size == max_displacement; no pad-then-crop).
    off = md - pad
    if off >= 0:
        x1c = input1[:, :, off:off + H_out, off:off + W_out]
    else:
        x1c = jnp.pad(input1, ((0, 0), (0, 0), (-off, -off), (-off, -off)))
    # Embed on an (H_out, Wp) grid (zero columns for x >= W_out), flatten, pad lanes.
    N1 = H_out * Wp
    N1r = _round_up(N1, 128)
    x1g = jnp.pad(x1c, ((0, 0), (0, 0), (0, 0), (0, Wp - W_out)))
    x1g = x1g.reshape(B, C, N1)
    if N1r > N1:
        x1g = jnp.pad(x1g, ((0, 0), (0, 0), (0, N1r - N1)))

    # ---- input2: zero-padded plane, flattened, with a zero tail so every static
    # shifted window is in bounds.  Invariant: N2 >= N1r + (D-1)*s2*(Wp+1).
    t_max = (D - 1) * s2 * (Wp + 1)
    N2 = _round_up(max(Hp * Wp, N1r + t_max), 128)
    x2p = jnp.pad(input2, ((0, 0), (0, 0), (pad, pad), (pad, pad)))
    x2f = x2p.reshape(B, C, Hp * Wp)
    x2f = jnp.pad(x2f, ((0, 0), (0, 0), (0, N2 - Hp * Wp)))

    # ---- generation-aware sizing.
    phys_vmem = _physical_vmem_bytes()
    two_tensorcores = phys_vmem <= (96 << 20)      # v7x-like: 64 MiB/TC, 2 TCs/chip
    if dy_groups is None:
        # Single TC (v5e/v6e) or B >= 2: fold all dy into one grid step (removes D-1
        # per-step overheads + the D-way branch).  Keep grid=(B, D) on v7x when B == 1
        # so both TensorCores get work.
        dy_groups = D if (two_tensorcores and B < 2) else 1
    assert D % dy_groups == 0
    rows_per_group = D // dy_groups
    c_chunk = int(channel_chunk) if channel_chunk else min(C, 64)

    itemsize = jnp.dtype(input1.dtype).itemsize
    in_block = C * (N1r + N2) * itemsize
    out_block = rows_per_group * D * N1r * itemsize
    budget = (phys_vmem * 3) // 4                  # headroom for Mosaic scratch / sems
    headroom = 6 << 20
    # x1/x2 block indices only change at the batch boundary, so single-buffering them
    # (one exposed DMA per batch) is the cheap way to fit when planes are large (v7x).
    single_buffer_inputs = (2 * in_block + 2 * out_block + headroom) > budget
    in_bufs = 1 if single_buffer_inputs else 2
    vmem_limit = int(min(max(in_bufs * in_block + 2 * out_block + headroom, 32 << 20),
                         budget))

    in_pipe = dict(pipeline_mode=pl.Buffered(1)) if single_buffer_inputs else {}
    x1_spec = pl.BlockSpec((1, C, N1r), lambda b, g: (b, 0, 0), **in_pipe)
    x2_spec = pl.BlockSpec((1, C, N2), lambda b, g: (b, 0, 0), **in_pipe)
    out_spec = pl.BlockSpec((1, rows_per_group, D, N1r), lambda b, g: (b, g, 0, 0))

    kernel = functools.partial(
        _corr_kernel, disp=D, rows_per_group=rows_per_group, n_dy_groups=dy_groups,
        stride2=s2, wp=Wp, n1=N1r, inv_c=1.0 / float(C), c_chunk=c_chunk)

    cost = pl.CostEstimate(
        flops=2 * B * D2 * C * H_out * W_out,
        transcendentals=0,
        bytes_accessed=int((x1g.size + x2f.size + B * D2 * N1r) * itemsize))

    out = pl.pallas_call(
        kernel,
        out_shape=jax.ShapeDtypeStruct((B, D, D, N1r), input1.dtype),
        grid_spec=pltpu.PrefetchScalarGridSpec(
            num_scalar_prefetch=0,
            grid=(B, dy_groups),
            in_specs=[x1_spec, x2_spec],
            out_specs=out_spec,
        ),
        compiler_params=pltpu.CompilerParams(
            dimension_semantics=("parallel", "parallel"),
            vmem_limit_bytes=vmem_limit),
        cost_estimate=cost,
    )(x1g, x2f)

    # Layout plumbing back to NCHW: (B, D, D, N1r) -> (B, D2, H_out, W_out).
    out = out.reshape(B, D2, N1r)[:, :, :N1]
    out = out.reshape(B, D2, H_out, Wp)[:, :, :, :W_out]
    return out


def correlation_ref(input1, input2, pad_size, max_displacement, stride2):
    """Pure-JAX reference (same semantics) for verification."""
    B, C, H, W = input1.shape
    md = max_displacement
    R = md // stride2
    Hp, Wp = H + 2 * pad_size, W + 2 * pad_size
    H_out, W_out = Hp - 2 * md, Wp - 2 * md
    x1p = jnp.pad(input1, ((0, 0), (0, 0), (pad_size, pad_size), (pad_size, pad_size)))
    x2p = jnp.pad(input2, ((0, 0), (0, 0), (pad_size, pad_size), (pad_size, pad_size)))
    x1c = x1p[:, :, md:md + H_out, md:md + W_out]
    outs = []
    for p in range(2 * R + 1):
        for o in range(2 * R + 1):
            dy, dx = p * stride2, o * stride2
            win = x2p[:, :, dy:dy + H_out, dx:dx + W_out]
            outs.append(jnp.sum(x1c * win, axis=1) / C)
    return jnp.stack(outs, axis=1)


if __name__ == "__main__":
    key = jax.random.PRNGKey(0)
    k1, k2, k3, k4 = jax.random.split(key, 4)

    # 1) PWC-Net correlation configuration, auto grid selection.
    B, C, H, W = 2, 4, 16, 16
    in1 = jax.random.normal(k1, (B, C, H, W), dtype=jnp.float32)
    in2 = jax.random.normal(k2, (B, C, H, W), dtype=jnp.float32)
    out = correlation(in1, in2, pad_size=4, kernel_size=1, max_displacement=4,
                      stride1=1, stride2=1, corr_multiply=1)
    out = jax.block_until_ready(out)
    ref = correlation_ref(in1, in2, 4, 4, 1)
    assert out.shape == (B, 81, H, W), out.shape
    assert jnp.allclose(out, ref, atol=1e-5, rtol=1e-5), \
        float(jnp.max(jnp.abs(out - ref)))

    # 2) Lane padding (H_out*Wp not multiple of 128), per-dy grid path (dy_groups=D).
    B2, C2, H2, W2 = 1, 8, 12, 12
    y1 = jax.random.normal(k3, (B2, C2, H2, W2), dtype=jnp.float32)
    y2 = jax.random.normal(k4, (B2, C2, H2, W2), dtype=jnp.float32)
    out2 = correlation(y1, y2, pad_size=4, kernel_size=1, max_displacement=4,
                       stride1=1, stride2=1, corr_multiply=1, dy_groups=9)
    out2 = jax.block_until_ready(out2)
    ref2 = correlation_ref(y1, y2, 4, 4, 1)
    assert out2.shape == ref2.shape, (out2.shape, ref2.shape)
    assert jnp.allclose(out2, ref2, atol=1e-5, rtol=1e-5), \
        float(jnp.max(jnp.abs(out2 - ref2)))

    # 3) stride2=2 displacement grid, fully folded kernel (dy_groups=1) and the
    #    channel-chunked contraction path (channel_chunk < C).
    out3 = correlation(y1, y2, pad_size=4, kernel_size=1, max_displacement=4,
                       stride1=1, stride2=2, corr_multiply=1,
                       dy_groups=1, channel_chunk=4)
    out3 = jax.block_until_ready(out3)
    ref3 = correlation_ref(y1, y2, 4, 4, 2)
    assert out3.shape == (B2, 25, H2, W2), out3.shape
    assert jnp.allclose(out3, ref3, atol=1e-5, rtol=1e-5), \
        float(jnp.max(jnp.abs(out3 - ref3)))

    print("KERNEL_OK")
</pallas_src>

<mosaic_0001>
module attributes {stable_mosaic.version = 11 : i64} {
  func.func @_corr_kernel(%arg0: i32, %arg1: i32, %arg2: memref<1x4x384xf32, #tpu.memory_space<vmem>>, %arg3: memref<1x4x640xf32, #tpu.memory_space<vmem>>, %arg4: memref<1x9x9x384xf32, #tpu.memory_space<vmem>>) attributes {dimension_semantics = [#tpu.dimension_semantics<parallel>, #tpu.dimension_semantics<parallel>], iteration_bounds = array<i64: 2, 1>, scalar_prefetch = 0 : i64, scratch_operands = 0 : i64, tpu.core_type = #tpu.core_type<tc>, window_params = [{transform_indices = @transform_0, window_bounds = array<i64: 1, 4, 384>}, {transform_indices = @transform_1, window_bounds = array<i64: 1, 4, 640>}, {transform_indices = @transform_2, window_bounds = array<i64: 1, 9, 9, 384>}]} {
    %c0 = arith.constant 0 : index
    %c0_0 = arith.constant 0 : index
    %c0_1 = arith.constant 0 : index
    %0 = vector.load %arg2[%c0, %c0_0, %c0_1] : memref<1x4x384xf32, #tpu.memory_space<vmem>>, vector<1x4x384xf32>
    %1 = vector.shape_cast %0 : vector<1x4x384xf32> to vector<4x384xf32>
    %c0_2 = arith.constant 0 : index
    %c0_3 = arith.constant 0 : index
    %c0_4 = arith.constant 0 : index
    %2 = vector.load %arg3[%c0_2, %c0_3, %c0_4] : memref<1x4x640xf32, #tpu.memory_space<vmem>>, vector<1x4x384xf32>
    %3 = vector.shape_cast %2 : vector<1x4x384xf32> to vector<4x384xf32>
    %4 = arith.mulf %1, %3 : vector<4x384xf32>
    %cst = arith.constant dense<0.000000e+00> : vector<384xf32>
    %5 = vector.multi_reduction <add>, %4, %cst [0] : vector<4x384xf32> to vector<384xf32>
    %6 = vector.shape_cast %5 : vector<384xf32> to vector<1x384xf32>
    %c0_5 = arith.constant 0 : index
    %c0_6 = arith.constant 0 : index
    %c0_7 = arith.constant 0 : index
    %7 = vector.load %arg2[%c0_5, %c0_6, %c0_7] : memref<1x4x384xf32, #tpu.memory_space<vmem>>, vector<1x4x384xf32>
    %8 = vector.shape_cast %7 : vector<1x4x384xf32> to vector<4x384xf32>
    %c0_8 = arith.constant 0 : index
    %c0_9 = arith.constant 0 : index
    %c1 = arith.constant 1 : index
    %9 = vector.load %arg3[%c0_8, %c0_9, %c1] : memref<1x4x640xf32, #tpu.memory_space<vmem>>, vector<1x4x384xf32>
    %10 = vector.shape_cast %9 : vector<1x4x384xf32> to vector<4x384xf32>
    %11 = arith.mulf %8, %10 : vector<4x384xf32>
    %cst_10 = arith.constant dense<0.000000e+00> : vector<384xf32>
    %12 = vector.multi_reduction <add>, %11, %cst_10 [0] : vector<4x384xf32> to vector<384xf32>
    %13 = vector.shape_cast %12 : vector<384xf32> to vector<1x384xf32>
    %c0_11 = arith.constant 0 : index
    %c0_12 = arith.constant 0 : index
    %c0_13 = arith.constant 0 : index
    %14 = vector.load %arg2[%c0_11, %c0_12, %c0_13] : memref<1x4x384xf32, #tpu.memory_space<vmem>>, vector<1x4x384xf32>
    %15 = vector.shape_cast %14 : vector<1x4x384xf32> to vector<4x384xf32>
    %c0_14 = arith.constant 0 : index
    %c0_15 = arith.constant 0 : index
    %c2 = arith.constant 2 : index
    %16 = vector.load %arg3[%c0_14, %c0_15, %c2] : memref<1x4x640xf32, #tpu.memory_space<vmem>>, vector<1x4x384xf32>
    %17 = vector.shape_cast %16 : vector<1x4x384xf32> to vector<4x384xf32>
    %18 = arith.mulf %15, %17 : vector<4x384xf32>
    %cst_16 = arith.constant dense<0.000000e+00> : vector<384xf32>
    %19 = vector.multi_reduction <add>, %18, %cst_16 [0] : vector<4x384xf32> to vector<384xf32>
    %20 = vector.shape_cast %19 : vector<384xf32> to vector<1x384xf32>
    %c0_17 = arith.constant 0 : index
    %c0_18 = arith.constant 0 : index
    %c0_19 = arith.constant 0 : index
    %21 = vector.load %arg2[%c0_17, %c0_18, %c0_19] : memref<1x4x384xf32, #tpu.memory_space<vmem>>, vector<1x4x384xf32>
    %22 = vector.shape_cast %21 : vector<1x4x384xf32> to vector<4x384xf32>
    %c0_20 = arith.constant 0 : index
    %c0_21 = arith.constant 0 : index
    %c3 = arith.constant 3 : index
    %23 = vector.load %arg3[%c0_20, %c0_21, %c3] : memref<1x4x640xf32, #tpu.memory_space<vmem>>, vector<1x4x384xf32>
    %24 = vector.shape_cast %23 : vector<1x4x384xf32> to vector<4x384xf32>
    %25 = arith.mulf %22, %24 : vector<4x384xf32>
    %cst_22 = arith.constant dense<0.000000e+00> : vector<384xf32>
    %26 = vector.multi_reduction <add>, %25, %cst_22 [0] : vector<4x384xf32> to vector<384xf32>
    %27 = vector.shape_cast %26 : vector<384xf32> to vector<1x384xf32>
    %c0_23 = arith.constant 0 : index
    %c0_24 = arith.constant 0 : index
    %c0_25 = arith.constant 0 : index
    %28 = vector.load %arg2[%c0_23, %c0_24, %c0_25] : memref<1x4x384xf32, #tpu.memory_space<vmem>>, vector<1x4x384xf32>
    %29 = vector.shape_cast %28 : vector<1x4x384xf32> to vector<4x384xf32>
    %c0_26 = arith.constant 0 : index
    %c0_27 = arith.constant 0 : index
    %c4 = arith.constant 4 : index
    %30 = vector.load %arg3[%c0_26, %c0_27, %c4] : memref<1x4x640xf32, #tpu.memory_space<vmem>>, vector<1x4x384xf32>
    %31 = vector.shape_cast %30 : vector<1x4x384xf32> to vector<4x384xf32>
    %32 = arith.mulf %29, %31 : vector<4x384xf32>
    %cst_28 = arith.constant dense<0.000000e+00> : vector<384xf32>
    %33 = vector.multi_reduction <add>, %32, %cst_28 [0] : vector<4x384xf32> to vector<384xf32>
    %34 = vector.shape_cast %33 : vector<384xf32> to vector<1x384xf32>
    %c0_29 = arith.constant 0 : index
    %c0_30 = arith.constant 0 : index
    %c0_31 = arith.constant 0 : index
    %35 = vector.load %arg2[%c0_29, %c0_30, %c0_31] : memref<1x4x384xf32, #tpu.memory_space<vmem>>, vector<1x4x384xf32>
    %36 = vector.shape_cast %35 : vector<1x4x384xf32> to vector<4x384xf32>
    %c0_32 = arith.constant 0 : index
    %c0_33 = arith.constant 0 : index
    %c5 = arith.constant 5 : index
    %37 = vector.load %arg3[%c0_32, %c0_33, %c5] : memref<1x4x640xf32, #tpu.memory_space<vmem>>, vector<1x4x384xf32>
    %38 = vector.shape_cast %37 : vector<1x4x384xf32> to vector<4x384xf32>
    %39 = arith.mulf %36, %38 : vector<4x384xf32>
    %cst_34 = arith.constant dense<0.000000e+00> : vector<384xf32>
    %40 = vector.multi_reduction <add>, %39, %cst_34 [0] : vector<4x384xf32> to vector<384xf32>
    %41 = vector.shape_cast %40 : vector<384xf32> to vector<1x384xf32>
    %c0_35 = arith.constant 0 : index
    %c0_36 = arith.constant 0 : index
    %c0_37 = arith.constant 0 : index
    %42 = vector.load %arg2[%c0_35, %c0_36, %c0_37] : memref<1x4x384xf32, #tpu.memory_space<vmem>>, vector<1x4x384xf32>
    %43 = vector.shape_cast %42 : vector<1x4x384xf32> to vector<4x384xf32>
    %c0_38 = arith.constant 0 : index
    %c0_39 = arith.constant 0 : index
    %c6 = arith.constant 6 : index
    %44 = vector.load %arg3[%c0_38, %c0_39, %c6] : memref<1x4x640xf32, #tpu.memory_space<vmem>>, vector<1x4x384xf32>
    %45 = vector.shape_cast %44 : vector<1x4x384xf32> to vector<4x384xf32>
    %46 = arith.mulf %43, %45 : vector<4x384xf32>
    %cst_40 = arith.constant dense<0.000000e+00> : vector<384xf32>
    %47 = vector.multi_reduction <add>, %46, %cst_40 [0] : vector<4x384xf32> to vector<384xf32>
    %48 = vector.shape_cast %47 : vector<384xf32> to vector<1x384xf32>
    %c0_41 = arith.constant 0 : index
    %c0_42 = arith.constant 0 : index
    %c0_43 = arith.constant 0 : index
    %49 = vector.load %arg2[%c0_41, %c0_42, %c0_43] : memref<1x4x384xf32, #tpu.memory_space<vmem>>, vector<1x4x384xf32>
    %50 = vector.shape_cast %49 : vector<1x4x384xf32> to vector<4x384xf32>
    %c0_44 = arith.constant 0 : index
    %c0_45 = arith.constant 0 : index
    %c7 = arith.constant 7 : index
    %51 = vector.load %arg3[%c0_44, %c0_45, %c7] : memref<1x4x640xf32, #tpu.memory_space<vmem>>, vector<1x4x384xf32>
    %52 = vector.shape_cast %51 : vector<1x4x384xf32> to vector<4x384xf32>
    %53 = arith.mulf %50, %52 : vector<4x384xf32>
    %cst_46 = arith.constant dense<0.000000e+00> : vector<384xf32>
    %54 = vector.multi_reduction <add>, %53, %cst_46 [0] : vector<4x384xf32> to vector<384xf32>
    %55 = vector.shape_cast %54 : vector<384xf32> to vector<1x384xf32>
    %c0_47 = arith.constant 0 : index
    %c0_48 = arith.constant 0 : index
    %c0_49 = arith.constant 0 : index
    %56 = vector.load %arg2[%c0_47, %c0_48, %c0_49] : memref<1x4x384xf32, #tpu.memory_space<vmem>>, vector<1x4x384xf32>
    %57 = vector.shape_cast %56 : vector<1x4x384xf32> to vector<4x384xf32>
    %c0_50 = arith.constant 0 : index
    %c0_51 = arith.constant 0 : index
    %c8 = arith.constant 8 : index
    %58 = vector.load %arg3[%c0_50, %c0_51, %c8] : memref<1x4x640xf32, #tpu.memory_space<vmem>>, vector<1x4x384xf32>
    %59 = vector.shape_cast %58 : vector<1x4x384xf32> to vector<4x384xf32>
    %60 = arith.mulf %57, %59 : vector<4x384xf32>
    %cst_52 = arith.constant dense<0.000000e+00> : vector<384xf32>
    %61 = vector.multi_reduction <add>, %60, %cst_52 [0] : vector<4x384xf32> to vector<384xf32>
    %62 = vector.shape_cast %61 : vector<384xf32> to vector<1x384xf32>
    %63 = tpu.concatenate %6, %13, %20, %27, %34, %41, %48, %55, %62 in 0 : vector<1x384xf32>, vector<1x384xf32>, vector<1x384xf32>, vector<1x384xf32>, vector<1x384xf32>, vector<1x384xf32>, vector<1x384xf32>, vector<1x384xf32>, vector<1x384xf32> -> vector<9x384xf32>
    %cst_53 = arith.constant 2.500000e-01 : f32
    %64 = vector.broadcast %cst_53 : f32 to vector<9x384xf32>
    %65 = arith.mulf %63, %64 : vector<9x384xf32>
    %c0_54 = arith.constant 0 : index
    %c0_55 = arith.constant 0 : index
    %c0_56 = arith.constant 0 : index
    %c0_57 = arith.constant 0 : index
    %66 = vector.load %arg4[%c0_54, %c0_55, %c0_56, %c0_57] : memref<1x9x9x384xf32, #tpu.memory_space<vmem>>, vector<1x1x9x384xf32>
    %67 = vector.shape_cast %66 : vector<1x1x9x384xf32> to vector<9x384xf32>
    %68 = vector.shape_cast %65 : vector<9x384xf32> to vector<1x1x9x384xf32>
    tpu.vector_store %arg4[%c0_54, %c0_55, %c0_56, %c0_57], %68 {strides = array<i32>} : memref<1x9x9x384xf32, #tpu.memory_space<vmem>>, vector<1x1x9x384xf32>,
    %c0_58 = arith.constant 0 : index
    %c0_59 = arith.constant 0 : index
    %c0_60 = arith.constant 0 : index
    %69 = vector.load %arg2[%c0_58, %c0_59, %c0_60] : memref<1x4x384xf32, #tpu.memory_space<vmem>>, vector<1x4x384xf32>
    %70 = vector.shape_cast %69 : vector<1x4x384xf32> to vector<4x384xf32>
    %c0_61 = arith.constant 0 : index
    %c0_62 = arith.constant 0 : index
    %c24 = arith.constant 24 : index
    %71 = vector.load %arg3[%c0_61, %c0_62, %c24] : memref<1x4x640xf32, #tpu.memory_space<vmem>>, vector<1x4x384xf32>
    %72 = vector.shape_cast %71 : vector<1x4x384xf32> to vector<4x384xf32>
    %73 = arith.mulf %70, %72 : vector<4x384xf32>
    %cst_63 = arith.constant dense<0.000000e+00> : vector<384xf32>
    %74 = vector.multi_reduction <add>, %73, %cst_63 [0] : vector<4x384xf32> to vector<384xf32>
    %75 = vector.shape_cast %74 : vector<384xf32> to vector<1x384xf32>
    %c0_64 = arith.constant 0 : index
    %c0_65 = arith.constant 0 : index
    %c0_66 = arith.constant 0 : index
    %76 = vector.load %arg2[%c0_64, %c0_65, %c0_66] : memref<1x4x384xf32, #tpu.memory_space<vmem>>, vector<1x4x384xf32>
    %77 = vector.shape_cast %76 : vector<1x4x384xf32> to vector<4x384xf32>
    %c0_67 = arith.constant 0 : index
    %c0_68 = arith.constant 0 : index
    %c25 = arith.constant 25 : index
    %78 = vector.load %arg3[%c0_67, %c0_68, %c25] : memref<1x4x640xf32, #tpu.memory_space<vmem>>, vector<1x4x384xf32>
    %79 = vector.shape_cast %78 : vector<1x4x384xf32> to vector<4x384xf32>
    %80 = arith.mulf %77, %79 : vector<4x384xf32>
    %cst_69 = arith.constant dense<0.000000e+00> : vector<384xf32>
    %81 = vector.multi_reduction <add>, %80, %cst_69 [0] : vector<4x384xf32> to vector<384xf32>
    %82 = vector.shape_cast %81 : vector<384xf32> to vector<1x384xf32>
    %c0_70 = arith.constant 0 : index
    %c0_71 = arith.constant 0 : index
    %c0_72 = arith.constant 0 : index
    %83 = vector.load %arg2[%c0_70, %c0_71, %c0_72] : memref<1x4x384xf32, #tpu.memory_space<vmem>>, vector<1x4x384xf32>
    %84 = vector.shape_cast %83 : vector<1x4x384xf32> to vector<4x384xf32>
    %c0_73 = arith.constant 0 : index
    %c0_74 = arith.constant 0 : index
    %c26 = arith.constant 26 : index
    %85 = vector.load %arg3[%c0_73, %c0_74, %c26] : memref<1x4x640xf32, #tpu.memory_space<vmem>>, vector<1x4x384xf32>
    %86 = vector.shape_cast %85 : vector<1x4x384xf32> to vector<4x384xf32>
    %87 = arith.mulf %84, %86 : vector<4x384xf32>
    %cst_75 = arith.constant dense<0.000000e+00> : vector<384xf32>
    %88 = vector.multi_reduction <add>, %87, %cst_75 [0] : vector<4x384xf32> to vector<384xf32>
    %89 = vector.shape_cast %88 : vector<384xf32> to vector<1x384xf32>
    %c0_76 = arith.constant 0 : index
    %c0_77 = arith.constant 0 : index
    %c0_78 = arith.constant 0 : index
    %90 = vector.load %arg2[%c0_76, %c0_77, %c0_78] : memref<1x4x384xf32, #tpu.memory_space<vmem>>, vector<1x4x384xf32>
    %91 = vector.shape_cast %90 : vector<1x4x384xf32> to vector<4x384xf32>
    %c0_79 = arith.constant 0 : index
    %c0_80 = arith.constant 0 : index
    %c27 = arith.constant 27 : index
    %92 = vector.load %arg3[%c0_79, %c0_80, %c27] : memref<1x4x640xf32, #tpu.memory_space<vmem>>, vector<1x4x384xf32>
    %93 = vector.shape_cast %92 : vector<1x4x384xf32> to vector<4x384xf32>
    %94 = arith.mulf %91, %93 : vector<4x384xf32>
    %cst_81 = arith.constant dense<0.000000e+00> : vector<384xf32>
    %95 = vector.multi_reduction <add>, %94, %cst_81 [0] : vector<4x384xf32> to vector<384xf32>
    %96 = vector.shape_cast %95 : vector<384xf32> to vector<1x384xf32>
    %c0_82 = arith.constant 0 : index
    %c0_83 = arith.constant 0 : index
    %c0_84 = arith.constant 0 : index
    %97 = vector.load %arg2[%c0_82, %c0_83, %c0_84] : memref<1x4x384xf32, #tpu.memory_space<vmem>>, vector<1x4x384xf32>
    %98 = vector.shape_cast %97 : vector<1x4x384xf32> to vector<4x384xf32>
    %c0_85 = arith.constant 0 : index
    %c0_86 = arith.constant 0 : index
    %c28 = arith.constant 28 : index
    %99 = vector.load %arg3[%c0_85, %c0_86, %c28] : memref<1x4x640xf32, #tpu.memory_space<vmem>>, vector<1x4x384xf32>
    %100 = vector.shape_cast %99 : vector<1x4x384xf32> to vector<4x384xf32>
    %101 = arith.mulf %98, %100 : vector<4x384xf32>
    %cst_87 = arith.constant dense<0.000000e+00> : vector<384xf32>
    %102 = vector.multi_reduction <add>, %101, %cst_87 [0] : vector<4x384xf32> to vector<384xf32>
    %103 = vector.shape_cast %102 : vector<384xf32> to vector<1x384xf32>
    %c0_88 = arith.constant 0 : index
    %c0_89 = arith.constant 0 : index
    %c0_90 = arith.constant 0 : index
    %104 = vector.load %arg2[%c0_88, %c0_89, %c0_90] : memref<1x4x384xf32, #tpu.memory_space<vmem>>, vector<1x4x384xf32>
    %105 = vector.shape_cast %104 : vector<1x4x384xf32> to vector<4x384xf32>
    %c0_91 = arith.constant 0 : index
    %c0_92 = arith.constant 0 : index
    %c29 = arith.constant 29 : index
    %106 = vector.load %arg3[%c0_91, %c0_92, %c29] : memref<1x4x640xf32, #tpu.memory_space<vmem>>, vector<1x4x384xf32>
    %107 = vector.shape_cast %106 : vector<1x4x384xf32> to vector<4x384xf32>
    %108 = arith.mulf %105, %107 : vector<4x384xf32>
    %cst_93 = arith.constant dense<0.000000e+00> : vector<384xf32>
    %109 = vector.multi_reduction <add>, %108, %cst_93 [0] : vector<4x384xf32> to vector<384xf32>
    %110 = vector.shape_cast %109 : vector<384xf32> to vector<1x384xf32>
    %c0_94 = arith.constant 0 : index
    %c0_95 = arith.constant 0 : index
    %c0_96 = arith.constant 0 : index
    %111 = vector.load %arg2[%c0_94, %c0_95, %c0_96] : memref<1x4x384xf32, #tpu.memory_space<vmem>>, vector<1x4x384xf32>
    %112 = vector.shape_cast %111 : vector<1x4x384xf32> to vector<4x384xf32>
    %c0_97 = arith.constant 0 : index
    %c0_98 = arith.constant 0 : index
    %c30 = arith.constant 30 : index
    %113 = vector.load %arg3[%c0_97, %c0_98, %c30] : memref<1x4x640xf32, #tpu.memory_space<vmem>>, vector<1x4x384xf32>
    %114 = vector.shape_cast %113 : vector<1x4x384xf32> to vector<4x384xf32>
    %115 = arith.mulf %112, %114 : vector<4x384xf32>
    %cst_99 = arith.constant dense<0.000000e+00> : vector<384xf32>
    %116 = vector.multi_reduction <add>, %115, %cst_99 [0] : vector<4x384xf32> to vector<384xf32>
    %117 = vector.shape_cast %116 : vector<384xf32> to vector<1x384xf32>
    %c0_100 = arith.constant 0 : index
    %c0_101 = arith.constant 0 : index
    %c0_102 = arith.constant 0 : index
    %118 = vector.load %arg2[%c0_100, %c0_101, %c0_102] : memref<1x4x384xf32, #tpu.memory_space<vmem>>, vector<1x4x384xf32>
    %119 = vector.shape_cast %118 : vector<1x4x384xf32> to vector<4x384xf32>
    %c0_103 = arith.constant 0 : index
    %c0_104 = arith.constant 0 : index
    %c31 = arith.constant 31 : index
    %120 = vector.load %arg3[%c0_103, %c0_104, %c31] : memref<1x4x640xf32, #tpu.memory_space<vmem>>, vector<1x4x384xf32>
    %121 = vector.shape_cast %120 : vector<1x4x384xf32> to vector<4x384xf32>
    %122 = arith.mulf %119, %121 : vector<4x384xf32>
    %cst_105 = arith.constant dense<0.000000e+00> : vector<384xf32>
    %123 = vector.multi_reduction <add>, %122, %cst_105 [0] : vector<4x384xf32> to vector<384xf32>
    %124 = vector.shape_cast %123 : vector<384xf32> to vector<1x384xf32>
    %c0_106 = arith.constant 0 : index
    %c0_107 = arith.constant 0 : index
    %c0_108 = arith.constant 0 : index
    %125 = vector.load %arg2[%c0_106, %c0_107, %c0_108] : memref<1x4x384xf32, #tpu.memory_space<vmem>>, vector<1x4x384xf32>
    %126 = vector.shape_cast %125 : vector<1x4x384xf32> to vector<4x384xf32>
    %c0_109 = arith.constant 0 : index
    %c0_110 = arith.constant 0 : index
    %c32 = arith.constant 32 : index
    %127 = vector.load %arg3[%c0_109, %c0_110, %c32] : memref<1x4x640xf32, #tpu.memory_space<vmem>>, vector<1x4x384xf32>
    %128 = vector.shape_cast %127 : vector<1x4x384xf32> to vector<4x384xf32>
    %129 = arith.mulf %126, %128 : vector<4x384xf32>
    %cst_111 = arith.constant dense<0.000000e+00> : vector<384xf32>
    %130 = vector.multi_reduction <add>, %129, %cst_111 [0] : vector<4x384xf32> to vector<384xf32>
    %131 = vector.shape_cast %130 : vector<384xf32> to vector<1x384xf32>
    %132 = tpu.concatenate %75, %82, %89, %96, %103, %110, %117, %124, %131 in 0 : vector<1x384xf32>, vector<1x384xf32>, vector<1x384xf32>, vector<1x384xf32>, vector<1x384xf32>, vector<1x384xf32>, vector<1x384xf32>, vector<1x384xf32>, vector<1x384xf32> -> vector<9x384xf32>
    %cst_112 = arith.constant 2.500000e-01 : f32
    %133 = vector.broadcast %cst_112 : f32 to vector<9x384xf32>
    %134 = arith.mulf %132, %133 : vector<9x384xf32>
    %c0_113 = arith.constant 0 : index
    %c1_114 = arith.constant 1 : index
    %c0_115 = arith.constant 0 : index
    %c0_116 = arith.constant 0 : index
    %135 = vector.load %arg4[%c0_113, %c1_114, %c0_115, %c0_116] : memref<1x9x9x384xf32, #tpu.memory_space<vmem>>, vector<1x1x9x384xf32>
    %136 = vector.shape_cast %135 : vector<1x1x9x384xf32> to vector<9x384xf32>
    %137 = vector.shape_cast %134 : vector<9x384xf32> to vector<1x1x9x384xf32>
    tpu.vector_store %arg4[%c0_113, %c1_114, %c0_115, %c0_116], %137 {strides = array<i32>} : memref<1x9x9x384xf32, #tpu.memory_space<vmem>>, vector<1x1x9x384xf32>,
    %c0_117 = arith.constant 0 : index
    %c0_118 = arith.constant 0 : index
    %c0_119 = arith.constant 0 : index
    %138 = vector.load %arg2[%c0_117, %c0_118, %c0_119] : memref<1x4x384xf32, #tpu.memory_space<vmem>>, vector<1x4x384xf32>
    %139 = vector.shape_cast %138 : vector<1x4x384xf32> to vector<4x384xf32>
    %c0_120 = arith.constant 0 : index
    %c0_121 = arith.constant 0 : index
    %c48 = arith.constant 48 : index
    %140 = vector.load %arg3[%c0_120, %c0_121, %c48] : memref<1x4x640xf32, #tpu.memory_space<vmem>>, vector<1x4x384xf32>
    %141 = vector.shape_cast %140 : vector<1x4x384xf32> to vector<4x384xf32>
    %142 = arith.mulf %139, %141 : vector<4x384xf32>
    %cst_122 = arith.constant dense<0.000000e+00> : vector<384xf32>
    %143 = vector.multi_reduction <add>, %142, %cst_122 [0] : vector<4x384xf32> to vector<384xf32>
    %144 = vector.shape_cast %143 : vector<384xf32> to vector<1x384xf32>
    %c0_123 = arith.constant 0 : index
    %c0_124 = arith.constant 0 : index
    %c0_125 = arith.constant 0 : index
    %145 = vector.load %arg2[%c0_123, %c0_124, %c0_125] : memref<1x4x384xf32, #tpu.memory_space<vmem>>, vector<1x4x384xf32>
    %146 = vector.shape_cast %145 : vector<1x4x384xf32> to vector<4x384xf32>
    %c0_126 = arith.constant 0 : index
    %c0_127 = arith.constant 0 : index
    %c49 = arith.constant 49 : index
    %147 = vector.load %arg3[%c0_126, %c0_127, %c49] : memref<1x4x640xf32, #tpu.memory_space<vmem>>, vector<1x4x384xf32>
    %148 = vector.shape_cast %147 : vector<1x4x384xf32> to vector<4x384xf32>
    %149 = arith.mulf %146, %148 : vector<4x384xf32>
    %cst_128 = arith.constant dense<0.000000e+00> : vector<384xf32>
    %150 = vector.multi_reduction <add>, %149, %cst_128 [0] : vector<4x384xf32> to vector<384xf32>
    %151 = vector.shape_cast %150 : vector<384xf32> to vector<1x384xf32>
    %c0_129 = arith.constant 0 : index
    %c0_130 = arith.constant 0 : index
    %c0_131 = arith.constant 0 : index
    %152 = vector.load %arg2[%c0_129, %c0_130, %c0_131] : memref<1x4x384xf32, #tpu.memory_space<vmem>>, vector<1x4x384xf32>
    %153 = vector.shape_cast %152 : vector<1x4x384xf32> to vector<4x384xf32>
    %c0_132 = arith.constant 0 : index
    %c0_133 = arith.constant 0 : index
    %c50 = arith.constant 50 : index
    %154 = vector.load %arg3[%c0_132, %c0_133, %c50] : memref<1x4x640xf32, #tpu.memory_space<vmem>>, vector<1x4x384xf32>
    %155 = vector.shape_cast %154 : vector<1x4x384xf32> to vector<4x384xf32>
    %156 = arith.mulf %153, %155 : vector<4x384xf32>
    %cst_134 = arith.constant dense<0.000000e+00> : vector<384xf32>
    %157 = vector.multi_reduction <add>, %156, %cst_134 [0] : vector<4x384xf32> to vector<384xf32>
    %158 = vector.shape_cast %157 : vector<384xf32> to vector<1x384xf32>
    %c0_135 = arith.constant 0 : index
    %c0_136 = arith.constant 0 : index
    %c0_137 = arith.constant 0 : index
    %159 = vector.load %arg2[%c0_135, %c0_136, %c0_137] : memref<1x4x384xf32, #tpu.memory_space<vmem>>, vector<1x4x384xf32>
    %160 = vector.shape_cast %159 : vector<1x4x384xf32> to vector<4x384xf32>
    %c0_138 = arith.constant 0 : index
    %c0_139 = arith.constant 0 : index
    %c51 = arith.constant 51 : index
    %161 = vector.load %arg3[%c0_138, %c0_139, %c51] : memref<1x4x640xf32, #tpu.memory_space<vmem>>, vector<1x4x384xf32>
    %162 = vector.shape_cast %161 : vector<1x4x384xf32> to vector<4x384xf32>
    %163 = arith.mulf %160, %162 : vector<4x384xf32>
    %cst_140 = arith.constant dense<0.000000e+00> : vector<384xf32>
    %164 = vector.multi_reduction <add>, %163, %cst_140 [0] : vector<4x384xf32> to vector<384xf32>
    %165 = vector.shape_cast %164 : vector<384xf32> to vector<1x384xf32>
    %c0_141 = arith.constant 0 : index
    %c0_142 = arith.constant 0 : index
    %c0_143 = arith.constant 0 : index
    %166 = vector.load %arg2[%c0_141, %c0_142, %c0_143] : memref<1x4x384xf32, #tpu.memory_space<vmem>>, vector<1x4x384xf32>
    %167 = vector.shape_cast %166 : vector<1x4x384xf32> to vector<4x384xf32>
    %c0_144 = arith.constant 0 : index
    %c0_145 = arith.constant 0 : index
    %c52 = arith.constant 52 : index
    %168 = vector.load %arg3[%c0_144, %c0_145, %c52] : memref<1x4x640xf32, #tpu.memory_space<vmem>>, vector<1x4x384xf32>
    %169 = vector.shape_cast %168 : vector<1x4x384xf32> to vector<4x384xf32>
    %170 = arith.mulf %167, %169 : vector<4x384xf32>
    %cst_146 = arith.constant dense<0.000000e+00> : vector<384xf32>
    %171 = vector.multi_reduction <add>, %170, %cst_146 [0] : vector<4x384xf32> to vector<384xf32>
    %172 = vector.shape_cast %171 : vector<384xf32> to vector<1x384xf32>
    %c0_147 = arith.constant 0 : index
    %c0_148 = arith.constant 0 : index
    %c0_149 = arith.constant 0 : index
    %173 = vector.load %arg2[%c0_147, %c0_148, %c0_149] : memref<1x4x384xf32, #tpu.memory_space<vmem>>, vector<1x4x384xf32>
    %174 = vector.shape_cast %173 : vector<1x4x384xf32> to vector<4x384xf32>
    %c0_150 = arith.constant 0 : index
    %c0_151 = arith.constant 0 : index
    %c53 = arith.constant 53 : index
    %175 = vector.load %arg3[%c0_150, %c0_151, %c53] : memref<1x4x640xf32, #tpu.memory_space<vmem>>, vector<1x4x384xf32>
    %176 = vector.shape_cast %175 : vector<1x4x384xf32> to vector<4x384xf32>
    %177 = arith.mulf %174, %176 : vector<4x384xf32>
    %cst_152 = arith.constant dense<0.000000e+00> : vector<384xf32>
    %178 = vector.multi_reduction <add>, %177, %cst_152 [0] : vector<4x384xf32> to vector<384xf32>
    %179 = vector.shape_cast %178 : vector<384xf32> to vector<1x384xf32>
    %c0_153 = arith.constant 0 : index
    %c0_154 = arith.constant 0 : index
    %c0_155 = arith.constant 0 : index
    %180 = vector.load %arg2[%c0_153, %c0_154, %c0_155] : memref<1x4x384xf32, #tpu.memory_space<vmem>>, vector<1x4x384xf32>
    %181 = vector.shape_cast %180 : vector<1x4x384xf32> to vector<4x384xf32>
    %c0_156 = arith.constant 0 : index
    %c0_157 = arith.constant 0 : index
    %c54 = arith.constant 54 : index
    %182 = vector.load %arg3[%c0_156, %c0_157, %c54] : memref<1x4x640xf32, #tpu.memory_space<vmem>>, vector<1x4x384xf32>
    %183 = vector.shape_cast %182 : vector<1x4x384xf32> to vector<4x384xf32>
    %184 = arith.mulf %181, %183 : vector<4x384xf32>
    %cst_158 = arith.constant dense<0.000000e+00> : vector<384xf32>
    %185 = vector.multi_reduction <add>, %184, %cst_158 [0] : vector<4x384xf32> to vector<384xf32>
    %186 = vector.shape_cast %185 : vector<384xf32> to vector<1x384xf32>
    %c0_159 = arith.constant 0 : index
    %c0_160 = arith.constant 0 : index
    %c0_161 = arith.constant 0 : index
    %187 = vector.load %arg2[%c0_159, %c0_160, %c0_161] : memref<1x4x384xf32, #tpu.memory_space<vmem>>, vector<1x4x384xf32>
    %188 = vector.shape_cast %187 : vector<1x4x384xf32> to vector<4x384xf32>
    %c0_162 = arith.constant 0 : index
    %c0_163 = arith.constant 0 : index
    %c55 = arith.constant 55 : index
    %189 = vector.load %arg3[%c0_162, %c0_163, %c55] : memref<1x4x640xf32, #tpu.memory_space<vmem>>, vector<1x4x384xf32>
    %190 = vector.shape_cast %189 : vector<1x4x384xf32> to vector<4x384xf32>
    %191 = arith.mulf %188, %190 : vector<4x384xf32>
    %cst_164 = arith.constant dense<0.000000e+00> : vector<384xf32>
    %192 = vector.multi_reduction <add>, %191, %cst_164 [0] : vector<4x384xf32> to vector<384xf32>
    %193 = vector.shape_cast %192 : vector<384xf32> to vector<1x384xf32>
    %c0_165 = arith.constant 0 : index
    %c0_166 = arith.constant 0 : index
    %c0_167 = arith.constant 0 : index
    %194 = vector.load %arg2[%c0_165, %c0_166, %c0_167] : memref<1x4x384xf32, #tpu.memory_space<vmem>>, vector<1x4x384xf32>
    %195 = vector.shape_cast %194 : vector<1x4x384xf32> to vector<4x384xf32>
    %c0_168 = arith.constant 0 : index
    %c0_169 = arith.constant 0 : index
    %c56 = arith.constant 56 : index
    %196 = vector.load %arg3[%c0_168, %c0_169, %c56] : memref<1x4x640xf32, #tpu.memory_space<vmem>>, vector<1x4x384xf32>
    %197 = vector.shape_cast %196 : vector<1x4x384xf32> to vector<4x384xf32>
    %198 = arith.mulf %195, %197 : vector<4x384xf32>
    %cst_170 = arith.constant dense<0.000000e+00> : vector<384xf32>
    %199 = vector.multi_reduction <add>, %198, %cst_170 [0] : vector<4x384xf32> to vector<384xf32>
    %200 = vector.shape_cast %199 : vector<384xf32> to vector<1x384xf32>
    %201 = tpu.concatenate %144, %151, %158, %165, %172, %179, %186, %193, %200 in 0 : vector<1x384xf32>, vector<1x384xf32>, vector<1x384xf32>, vector<1x384xf32>, vector<1x384xf32>, vector<1x384xf32>, vector<1x384xf32>, vector<1x384xf32>, vector<1x384xf32> -> vector<9x384xf32>
    %cst_171 = arith.constant 2.500000e-01 : f32
    %202 = vector.broadcast %cst_171 : f32 to vector<9x384xf32>
    %203 = arith.mulf %201, %202 : vector<9x384xf32>
    %c0_172 = arith.constant 0 : index
    %c2_173 = arith.constant 2 : index
    %c0_174 = arith.constant 0 : index
    %c0_175 = arith.constant 0 : index
    %204 = vector.load %arg4[%c0_172, %c2_173, %c0_174, %c0_175] : memref<1x9x9x384xf32, #tpu.memory_space<vmem>>, vector<1x1x9x384xf32>
    %205 = vector.shape_cast %204 : vector<1x1x9x384xf32> to vector<9x384xf32>
    %206 = vector.shape_cast %203 : vector<9x384xf32> to vector<1x1x9x384xf32>
    tpu.vector_store %arg4[%c0_172, %c2_173, %c0_174, %c0_175], %206 {strides = array<i32>} : memref<1x9x9x384xf32, #tpu.memory_space<vmem>>, vector<1x1x9x384xf32>,
    %c0_176 = arith.constant 0 : index
    %c0_177 = arith.constant 0 : index
    %c0_178 = arith.constant 0 : index
    %207 = vector.load %arg2[%c0_176, %c0_177, %c0_178] : memref<1x4x384xf32, #tpu.memory_space<vmem>>, vector<1x4x384xf32>
    %208 = vector.shape_cast %207 : vector<1x4x384xf32> to vector<4x384xf32>
    %c0_179 = arith.constant 0 : index
    %c0_180 = arith.constant 0 : index
    %c72 = arith.constant 72 : index
    %209 = vector.load %arg3[%c0_179, %c0_180, %c72] : memref<1x4x640xf32, #tpu.memory_space<vmem>>, vector<1x4x384xf32>
    %210 = vector.shape_cast %209 : vector<1x4x384xf32> to vector<4x384xf32>
    %211 = arith.mulf %208, %210 : vector<4x384xf32>
    %cst_181 = arith.constant dense<0.000000e+00> : vector<384xf32>
    %212 = vector.multi_reduction <add>, %211, %cst_181 [0] : vector<4x384xf32> to vector<384xf32>
    %213 = vector.shape_cast %212 : vector<384xf32> to vector<1x384xf32>
    %c0_182 = arith.constant 0 : index
    %c0_183 = arith.constant 0 : index
    %c0_184 = arith.constant 0 : index
    %214 = vector.load %arg2[%c0_182, %c0_183, %c0_184] : memref<1x4x384xf32, #tpu.memory_space<vmem>>, vector<1x4x384xf32>
    %215 = vector.shape_cast %214 : vector<1x4x384xf32> to vector<4x384xf32>
    %c0_185 = arith.constant 0 : index
    %c0_186 = arith.constant 0 : index
    %c73 = arith.constant 73 : index
    %216 = vector.load %arg3[%c0_185, %c0_186, %c73] : memref<1x4x640xf32, #tpu.memory_space<vmem>>, vector<1x4x384xf32>
    %217 = vector.shape_cast %216 : vector<1x4x384xf32> to vector<4x384xf32>
    %218 = arith.mulf %215, %217 : vector<4x384xf32>
    %cst_187 = arith.constant dense<0.000000e+00> : vector<384xf32>
    %219 = vector.multi_reduction <add>, %218, %cst_187 [0] : vector<4x384xf32> to vector<384xf32>
    %220 = vector.shape_cast %219 : vector<384xf32> to vector<1x384xf32>
    %c0_188 = arith.constant 0 : index
    %c0_189 = arith.constant 0 : index
    %c0_190 = arith.constant 0 : index
    %221 = vector.load %arg2[%c0_188, %c0_189, %c0_190] : memref<1x4x384xf32, #tpu.memory_space<vmem>>, vector<1x4x384xf32>
    %222 = vector.shape_cast %221 : vector<1x4x384xf32> to vector<4x384xf32>
    %c0_191 = arith.constant 0 : index
    %c0_192 = arith.constant 0 : index
    %c74 = arith.constant 74 : index
    %223 = vector.load %arg3[%c0_191, %c0_192, %c74] : memref<1x4x640xf32, #tpu.memory_space<vmem>>, vector<1x4x384xf32>
    %224 = vector.shape_cast %223 : vector<1x4x384xf32> to vector<4x384xf32>
    %225 = arith.mulf %222, %224 : vector<4x384xf32>
    %cst_193 = arith.constant dense<0.000000e+00> : vector<384xf32>
    %226 = vector.multi_reduction <add>, %225, %cst_193 [0] : vector<4x384xf32> to vector<384xf32>
    %227 = vector.shape_cast %226 : vector<384xf32> to vector<1x384xf32>
    %c0_194 = arith.constant 0 : index
    %c0_195 = arith.constant 0 : index
    %c0_196 = arith.constant 0 : index
    %228 = vector.load %arg2[%c0_194, %c0_195, %c0_196] : memref<1x4x384xf32, #tpu.memory_space<vmem>>, vector<1x4x384xf32>
    %229 = vector.shape_cast %228 : vector<1x4x384xf32> to vector<4x384xf32>
    %c0_197 = arith.constant 0 : index
    %c0_198 = arith.constant 0 : index
    %c75 = arith.constant 75 : index
    %230 = vector.load %arg3[%c0_197, %c0_198, %c75] : memref<1x4x640xf32, #tpu.memory_space<vmem>>, vector<1x4x384xf32>
    %231 = vector.shape_cast %230 : vector<1x4x384xf32> to vector<4x384xf32>
    %232 = arith.mulf %229, %231 : vector<4x384xf32>
    %cst_199 = arith.constant dense<0.000000e+00> : vector<384xf32>
    %233 = vector.multi_reduction <add>, %232, %cst_199 [0] : vector<4x384xf32> to vector<384xf32>
    %234 = vector.shape_cast %233 : vector<384xf32> to vector<1x384xf32>
    %c0_200 = arith.constant 0 : index
    %c0_201 = arith.constant 0 : index
    %c0_202 = arith.constant 0 : index
    %235 = vector.load %arg2[%c0_200, %c0_201, %c0_202] : memref<1x4x384xf32, #tpu.memory_space<vmem>>, vector<1x4x384xf32>
    %236 = vector.shape_cast %235 : vector<1x4x384xf32> to vector<4x384xf32>
    %c0_203 = arith.constant 0 : index
    %c0_204 = arith.constant 0 : index
    %c76 = arith.constant 76 : index
    %237 = vector.load %arg3[%c0_203, %c0_204, %c76] : memref<1x4x640xf32, #tpu.memory_space<vmem>>, vector<1x4x384xf32>
    %238 = vector.shape_cast %237 : vector<1x4x384xf32> to vector<4x384xf32>
    %239 = arith.mulf %236, %238 : vector<4x384xf32>
    %cst_205 = arith.constant dense<0.000000e+00> : vector<384xf32>
    %240 = vector.multi_reduction <add>, %239, %cst_205 [0] : vector<4x384xf32> to vector<384xf32>
    %241 = vector.shape_cast %240 : vector<384xf32> to vector<1x384xf32>
    %c0_206 = arith.constant 0 : index
    %c0_207 = arith.constant 0 : index
    %c0_208 = arith.constant 0 : index
    %242 = vector.load %arg2[%c0_206, %c0_207, %c0_208] : memref<1x4x384xf32, #tpu.memory_space<vmem>>, vector<1x4x384xf32>
    %243 = vector.shape_cast %242 : vector<1x4x384xf32> to vector<4x384xf32>
    %c0_209 = arith.constant 0 : index
    %c0_210 = arith.constant 0 : index
    %c77 = arith.constant 77 : index
    %244 = vector.load %arg3[%c0_209, %c0_210, %c77] : memref<1x4x640xf32, #tpu.memory_space<vmem>>, vector<1x4x384xf32>
    %245 = vector.shape_cast %244 : vector<1x4x384xf32> to vector<4x384xf32>
    %246 = arith.mulf %243, %245 : vector<4x384xf32>
    %cst_211 = arith.constant dense<0.000000e+00> : vector<384xf32>
    %247 = vector.multi_reduction <add>, %246, %cst_211 [0] : vector<4x384xf32> to vector<384xf32>
    %248 = vector.shape_cast %247 : vector<384xf32> to vector<1x384xf32>
    %c0_212 = arith.constant 0 : index
    %c0_213 = arith.constant 0 : index
    %c0_214 = arith.constant 0 : index
    %249 = vector.load %arg2[%c0_212, %c0_213, %c0_214] : memref<1x4x384xf32, #tpu.memory_space<vmem>>, vector<1x4x384xf32>
    %250 = vector.shape_cast %249 : vector<1x4x384xf32> to vector<4x384xf32>
    %c0_215 = arith.constant 0 : index
    %c0_216 = arith.constant 0 : index
    %c78 = arith.constant 78 : index
    %251 = vector.load %arg3[%c0_215, %c0_216, %c78] : memref<1x4x640xf32, #tpu.memory_space<vmem>>, vector<1x4x384xf32>
    %252 = vector.shape_cast %251 : vector<1x4x384xf32> to vector<4x384xf32>
    %253 = arith.mulf %250, %252 : vector<4x384xf32>
    %cst_217 = arith.constant dense<0.000000e+00> : vector<384xf32>
    %254 = vector.multi_reduction <add>, %253, %cst_217 [0] : vector<4x384xf32> to vector<384xf32>
    %255 = vector.shape_cast %254 : vector<384xf32> to vector<1x384xf32>
    %c0_218 = arith.constant 0 : index
    %c0_219 = arith.constant 0 : index
    %c0_220 = arith.constant 0 : index
    %256 = vector.load %arg2[%c0_218, %c0_219, %c0_220] : memref<1x4x384xf32, #tpu.memory_space<vmem>>, vector<1x4x384xf32>
    %257 = vector.shape_cast %256 : vector<1x4x384xf32> to vector<4x384xf32>
    %c0_221 = arith.constant 0 : index
    %c0_222 = arith.constant 0 : index
    %c79 = arith.constant 79 : index
    %258 = vector.load %arg3[%c0_221, %c0_222, %c79] : memref<1x4x640xf32, #tpu.memory_space<vmem>>, vector<1x4x384xf32>
    %259 = vector.shape_cast %258 : vector<1x4x384xf32> to vector<4x384xf32>
    %260 = arith.mulf %257, %259 : vector<4x384xf32>
    %cst_223 = arith.constant dense<0.000000e+00> : vector<384xf32>
    %261 = vector.multi_reduction <add>, %260, %cst_223 [0] : vector<4x384xf32> to vector<384xf32>
    %262 = vector.shape_cast %261 : vector<384xf32> to vector<1x384xf32>
    %c0_224 = arith.constant 0 : index
    %c0_225 = arith.constant 0 : index
    %c0_226 = arith.constant 0 : index
    %263 = vector.load %arg2[%c0_224, %c0_225, %c0_226] : memref<1x4x384xf32, #tpu.memory_space<vmem>>, vector<1x4x384xf32>
    %264 = vector.shape_cast %263 : vector<1x4x384xf32> to vector<4x384xf32>
    %c0_227 = arith.constant 0 : index
    %c0_228 = arith.constant 0 : index
    %c80 = arith.constant 80 : index
    %265 = vector.load %arg3[%c0_227, %c0_228, %c80] : memref<1x4x640xf32, #tpu.memory_space<vmem>>, vector<1x4x384xf32>
    %266 = vector.shape_cast %265 : vector<1x4x384xf32> to vector<4x384xf32>
    %267 = arith.mulf %264, %266 : vector<4x384xf32>
    %cst_229 = arith.constant dense<0.000000e+00> : vector<384xf32>
    %268 = vector.multi_reduction <add>, %267, %cst_229 [0] : vector<4x384xf32> to vector<384xf32>
    %269 = vector.shape_cast %268 : vector<384xf32> to vector<1x384xf32>
    %270 = tpu.concatenate %213, %220, %227, %234, %241, %248, %255, %262, %269 in 0 : vector<1x384xf32>, vector<1x384xf32>, vector<1x384xf32>, vector<1x384xf32>, vector<1x384xf32>, vector<1x384xf32>, vector<1x384xf32>, vector<1x384xf32>, vector<1x384xf32> -> vector<9x384xf32>
    %cst_230 = arith.constant 2.500000e-01 : f32
    %271 = vector.broadcast %cst_230 : f32 to vector<9x384xf32>
    %272 = arith.mulf %270, %271 : vector<9x384xf32>
    %c0_231 = arith.constant 0 : index
    %c3_232 = arith.constant 3 : index
    %c0_233 = arith.constant 0 : index
    %c0_234 = arith.constant 0 : index
    %273 = vector.load %arg4[%c0_231, %c3_232, %c0_233, %c0_234] : memref<1x9x9x384xf32, #tpu.memory_space<vmem>>, vector<1x1x9x384xf32>
    %274 = vector.shape_cast %273 : vector<1x1x9x384xf32> to vector<9x384xf32>
    %275 = vector.shape_cast %272 : vector<9x384xf32> to vector<1x1x9x384xf32>
    tpu.vector_store %arg4[%c0_231, %c3_232, %c0_233, %c0_234], %275 {strides = array<i32>} : memref<1x9x9x384xf32, #tpu.memory_space<vmem>>, vector<1x1x9x384xf32>,
    %c0_235 = arith.constant 0 : index
    %c0_236 = arith.constant 0 : index
    %c0_237 = arith.constant 0 : index
    %276 = vector.load %arg2[%c0_235, %c0_236, %c0_237] : memref<1x4x384xf32, #tpu.memory_space<vmem>>, vector<1x4x384xf32>
    %277 = vector.shape_cast %276 : vector<1x4x384xf32> to vector<4x384xf32>
    %c0_238 = arith.constant 0 : index
    %c0_239 = arith.constant 0 : index
    %c96 = arith.constant 96 : index
    %278 = vector.load %arg3[%c0_238, %c0_239, %c96] : memref<1x4x640xf32, #tpu.memory_space<vmem>>, vector<1x4x384xf32>
    %279 = vector.shape_cast %278 : vector<1x4x384xf32> to vector<4x384xf32>
    %280 = arith.mulf %277, %279 : vector<4x384xf32>
    %cst_240 = arith.constant dense<0.000000e+00> : vector<384xf32>
    %281 = vector.multi_reduction <add>, %280, %cst_240 [0] : vector<4x384xf32> to vector<384xf32>
    %282 = vector.shape_cast %281 : vector<384xf32> to vector<1x384xf32>
    %c0_241 = arith.constant 0 : index
    %c0_242 = arith.constant 0 : index
    %c0_243 = arith.constant 0 : index
    %283 = vector.load %arg2[%c0_241, %c0_242, %c0_243] : memref<1x4x384xf32, #tpu.memory_space<vmem>>, vector<1x4x384xf32>
    %284 = vector.shape_cast %283 : vector<1x4x384xf32> to vector<4x384xf32>
    %c0_244 = arith.constant 0 : index
    %c0_245 = arith.constant 0 : index
    %c97 = arith.constant 97 : index
    %285 = vector.load %arg3[%c0_244, %c0_245, %c97] : memref<1x4x640xf32, #tpu.memory_space<vmem>>, vector<1x4x384xf32>
    %286 = vector.shape_cast %285 : vector<1x4x384xf32> to vector<4x384xf32>
    %287 = arith.mulf %284, %286 : vector<4x384xf32>
    %cst_246 = arith.constant dense<0.000000e+00> : vector<384xf32>
    %288 = vector.multi_reduction <add>, %287, %cst_246 [0] : vector<4x384xf32> to vector<384xf32>
    %289 = vector.shape_cast %288 : vector<384xf32> to vector<1x384xf32>
    %c0_247 = arith.constant 0 : index
    %c0_248 = arith.constant 0 : index
    %c0_249 = arith.constant 0 : index
    %290 = vector.load %arg2[%c0_247, %c0_248, %c0_249] : memref<1x4x384xf32, #tpu.memory_space<vmem>>, vector<1x4x384xf32>
    %291 = vector.shape_cast %290 : vector<1x4x384xf32> to vector<4x384xf32>
    %c0_250 = arith.constant 0 : index
    %c0_251 = arith.constant 0 : index
    %c98 = arith.constant 98 : index
    %292 = vector.load %arg3[%c0_250, %c0_251, %c98] : memref<1x4x640xf32, #tpu.memory_space<vmem>>, vector<1x4x384xf32>
    %293 = vector.shape_cast %292 : vector<1x4x384xf32> to vector<4x384xf32>
    %294 = arith.mulf %291, %293 : vector<4x384xf32>
    %cst_252 = arith.constant dense<0.000000e+00> : vector<384xf32>
    %295 = vector.multi_reduction <add>, %294, %cst_252 [0] : vector<4x384xf32> to vector<384xf32>
    %296 = vector.shape_cast %295 : vector<384xf32> to vector<1x384xf32>
    %c0_253 = arith.constant 0 : index
    %c0_254 = arith.constant 0 : index
    %c0_255 = arith.constant 0 : index
    %297 = vector.load %arg2[%c0_253, %c0_254, %c0_255] : memref<1x4x384xf32, #tpu.memory_space<vmem>>, vector<1x4x384xf32>
    %298 = vector.shape_cast %297 : vector<1x4x384xf32> to vector<4x384xf32>
    %c0_256 = arith.constant 0 : index
    %c0_257 = arith.constant 0 : index
    %c99 = arith.constant 99 : index
    %299 = vector.load %arg3[%c0_256, %c0_257, %c99] : memref<1x4x640xf32, #tpu.memory_space<vmem>>, vector<1x4x384xf32>
    %300 = vector.shape_cast %299 : vector<1x4x384xf32> to vector<4x384xf32>
    %301 = arith.mulf %298, %300 : vector<4x384xf32>
    %cst_258 = arith.constant dense<0.000000e+00> : vector<384xf32>
    %302 = vector.multi_reduction <add>, %301, %cst_258 [0] : vector<4x384xf32> to vector<384xf32>
    %303 = vector.shape_cast %302 : vector<384xf32> to vector<1x384xf32>
    %c0_259 = arith.constant 0 : index
    %c0_260 = arith.constant 0 : index
    %c0_261 = arith.constant 0 : index
    %304 = vector.load %arg2[%c0_259, %c0_260, %c0_261] : memref<1x4x384xf32, #tpu.memory_space<vmem>>, vector<1x4x384xf32>
    %305 = vector.shape_cast %304 : vector<1x4x384xf32> to vector<4x384xf32>
    %c0_262 = arith.constant 0 : index
    %c0_263 = arith.constant 0 : index
    %c100 = arith.constant 100 : index
    %306 = vector.load %arg3[%c0_262, %c0_263, %c100] : memref<1x4x640xf32, #tpu.memory_space<vmem>>, vector<1x4x384xf32>
    %307 = vector.shape_cast %306 : vector<1x4x384xf32> to vector<4x384xf32>
    %308 = arith.mulf %305, %307 : vector<4x384xf32>
    %cst_264 = arith.constant dense<0.000000e+00> : vector<384xf32>
    %309 = vector.multi_reduction <add>, %308, %cst_264 [0] : vector<4x384xf32> to vector<384xf32>
    %310 = vector.shape_cast %309 : vector<384xf32> to vector<1x384xf32>
    %c0_265 = arith.constant 0 : index
    %c0_266 = arith.constant 0 : index
    %c0_267 = arith.constant 0 : index
    %311 = vector.load %arg2[%c0_265, %c0_266, %c0_267] : memref<1x4x384xf32, #tpu.memory_space<vmem>>, vector<1x4x384xf32>
    %312 = vector.shape_cast %311 : vector<1x4x384xf32> to vector<4x384xf32>
    %c0_268 = arith.constant 0 : index
    %c0_269 = arith.constant 0 : index
    %c101 = arith.constant 101 : index
    %313 = vector.load %arg3[%c0_268, %c0_269, %c101] : memref<1x4x640xf32, #tpu.memory_space<vmem>>, vector<1x4x384xf32>
    %314 = vector.shape_cast %313 : vector<1x4x384xf32> to vector<4x384xf32>
    %315 = arith.mulf %312, %314 : vector<4x384xf32>
    %cst_270 = arith.constant dense<0.000000e+00> : vector<384xf32>
    %316 = vector.multi_reduction <add>, %315, %cst_270 [0] : vector<4x384xf32> to vector<384xf32>
    %317 = vector.shape_cast %316 : vector<384xf32> to vector<1x384xf32>
    %c0_271 = arith.constant 0 : index
    %c0_272 = arith.constant 0 : index
    %c0_273 = arith.constant 0 : index
    %318 = vector.load %arg2[%c0_271, %c0_272, %c0_273] : memref<1x4x384xf32, #tpu.memory_space<vmem>>, vector<1x4x384xf32>
    %319 = vector.shape_cast %318 : vector<1x4x384xf32> to vector<4x384xf32>
    %c0_274 = arith.constant 0 : index
    %c0_275 = arith.constant 0 : index
    %c102 = arith.constant 102 : index
    %320 = vector.load %arg3[%c0_274, %c0_275, %c102] : memref<1x4x640xf32, #tpu.memory_space<vmem>>, vector<1x4x384xf32>
    %321 = vector.shape_cast %320 : vector<1x4x384xf32> to vector<4x384xf32>
    %322 = arith.mulf %319, %321 : vector<4x384xf32>
    %cst_276 = arith.constant dense<0.000000e+00> : vector<384xf32>
    %323 = vector.multi_reduction <add>, %322, %cst_276 [0] : vector<4x384xf32> to vector<384xf32>
    %324 = vector.shape_cast %323 : vector<384xf32> to vector<1x384xf32>
    %c0_277 = arith.constant 0 : index
    %c0_278 = arith.constant 0 : index
    %c0_279 = arith.constant 0 : index
    %325 = vector.load %arg2[%c0_277, %c0_278, %c0_279] : memref<1x4x384xf32, #tpu.memory_space<vmem>>, vector<1x4x384xf32>
    %326 = vector.shape_cast %325 : vector<1x4x384xf32> to vector<4x384xf32>
    %c0_280 = arith.constant 0 : index
    %c0_281 = arith.constant 0 : index
    %c103 = arith.constant 103 : index
    %327 = vector.load %arg3[%c0_280, %c0_281, %c103] : memref<1x4x640xf32, #tpu.memory_space<vmem>>, vector<1x4x384xf32>
    %328 = vector.shape_cast %327 : vector<1x4x384xf32> to vector<4x384xf32>
    %329 = arith.mulf %326, %328 : vector<4x384xf32>
    %cst_282 = arith.constant dense<0.000000e+00> : vector<384xf32>
    %330 = vector.multi_reduction <add>, %329, %cst_282 [0] : vector<4x384xf32> to vector<384xf32>
    %331 = vector.shape_cast %330 : vector<384xf32> to vector<1x384xf32>
    %c0_283 = arith.constant 0 : index
    %c0_284 = arith.constant 0 : index
    %c0_285 = arith.constant 0 : index
    %332 = vector.load %arg2[%c0_283, %c0_284, %c0_285] : memref<1x4x384xf32, #tpu.memory_space<vmem>>, vector<1x4x384xf32>
    %333 = vector.shape_cast %332 : vector<1x4x384xf32> to vector<4x384xf32>
    %c0_286 = arith.constant 0 : index
    %c0_287 = arith.constant 0 : index
    %c104 = arith.constant 104 : index
    %334 = vector.load %arg3[%c0_286, %c0_287, %c104] : memref<1x4x640xf32, #tpu.memory_space<vmem>>, vector<1x4x384xf32>
    %335 = vector.shape_cast %334 : vector<1x4x384xf32> to vector<4x384xf32>
    %336 = arith.mulf %333, %335 : vector<4x384xf32>
    %cst_288 = arith.constant dense<0.000000e+00> : vector<384xf32>
    %337 = vector.multi_reduction <add>, %336, %cst_288 [0] : vector<4x384xf32> to vector<384xf32>
    %338 = vector.shape_cast %337 : vector<384xf32> to vector<1x384xf32>
    %339 = tpu.concatenate %282, %289, %296, %303, %310, %317, %324, %331, %338 in 0 : vector<1x384xf32>, vector<1x384xf32>, vector<1x384xf32>, vector<1x384xf32>, vector<1x384xf32>, vector<1x384xf32>, vector<1x384xf32>, vector<1x384xf32>, vector<1x384xf32> -> vector<9x384xf32>
    %cst_289 = arith.constant 2.500000e-01 : f32
    %340 = vector.broadcast %cst_289 : f32 to vector<9x384xf32>
    %341 = arith.mulf %339, %340 : vector<9x384xf32>
    %c0_290 = arith.constant 0 : index
    %c4_291 = arith.constant 4 : index
    %c0_292 = arith.constant 0 : index
    %c0_293 = arith.constant 0 : index
    %342 = vector.load %arg4[%c0_290, %c4_291, %c0_292, %c0_293] : memref<1x9x9x384xf32, #tpu.memory_space<vmem>>, vector<1x1x9x384xf32>
    %343 = vector.shape_cast %342 : vector<1x1x9x384xf32> to vector<9x384xf32>
    %344 = vector.shape_cast %341 : vector<9x384xf32> to vector<1x1x9x384xf32>
    tpu.vector_store %arg4[%c0_290, %c4_291, %c0_292, %c0_293], %344 {strides = array<i32>} : memref<1x9x9x384xf32, #tpu.memory_space<vmem>>, vector<1x1x9x384xf32>,
    %c0_294 = arith.constant 0 : index
    %c0_295 = arith.constant 0 : index
    %c0_296 = arith.constant 0 : index
    %345 = vector.load %arg2[%c0_294, %c0_295, %c0_296] : memref<1x4x384xf32, #tpu.memory_space<vmem>>, vector<1x4x384xf32>
    %346 = vector.shape_cast %345 : vector<1x4x384xf32> to vector<4x384xf32>
    %c0_297 = arith.constant 0 : index
    %c0_298 = arith.constant 0 : index
    %c120 = arith.constant 120 : index
    %347 = vector.load %arg3[%c0_297, %c0_298, %c120] : memref<1x4x640xf32, #tpu.memory_space<vmem>>, vector<1x4x384xf32>
    %348 = vector.shape_cast %347 : vector<1x4x384xf32> to vector<4x384xf32>
    %349 = arith.mulf %346, %348 : vector<4x384xf32>
    %cst_299 = arith.constant dense<0.000000e+00> : vector<384xf32>
    %350 = vector.multi_reduction <add>, %349, %cst_299 [0] : vector<4x384xf32> to vector<384xf32>
    %351 = vector.shape_cast %350 : vector<384xf32> to vector<1x384xf32>
    %c0_300 = arith.constant 0 : index
    %c0_301 = arith.constant 0 : index
    %c0_302 = arith.constant 0 : index
    %352 = vector.load %arg2[%c0_300, %c0_301, %c0_302] : memref<1x4x384xf32, #tpu.memory_space<vmem>>, vector<1x4x384xf32>
    %353 = vector.shape_cast %352 : vector<1x4x384xf32> to vector<4x384xf32>
    %c0_303 = arith.constant 0 : index
    %c0_304 = arith.constant 0 : index
    %c121 = arith.constant 121 : index
    %354 = vector.load %arg3[%c0_303, %c0_304, %c121] : memref<1x4x640xf32, #tpu.memory_space<vmem>>, vector<1x4x384xf32>
    %355 = vector.shape_cast %354 : vector<1x4x384xf32> to vector<4x384xf32>
    %356 = arith.mulf %353, %355 : vector<4x384xf32>
    %cst_305 = arith.constant dense<0.000000e+00> : vector<384xf32>
    %357 = vector.multi_reduction <add>, %356, %cst_305 [0] : vector<4x384xf32> to vector<384xf32>
    %358 = vector.shape_cast %357 : vector<384xf32> to vector<1x384xf32>
    %c0_306 = arith.constant 0 : index
    %c0_307 = arith.constant 0 : index
    %c0_308 = arith.constant 0 : index
    %359 = vector.load %arg2[%c0_306, %c0_307, %c0_308] : memref<1x4x384xf32, #tpu.memory_space<vmem>>, vector<1x4x384xf32>
    %360 = vector.shape_cast %359 : vector<1x4x384xf32> to vector<4x384xf32>
    %c0_309 = arith.constant 0 : index
    %c0_310 = arith.constant 0 : index
    %c122 = arith.constant 122 : index
    %361 = vector.load %arg3[%c0_309, %c0_310, %c122] : memref<1x4x640xf32, #tpu.memory_space<vmem>>, vector<1x4x384xf32>
    %362 = vector.shape_cast %361 : vector<1x4x384xf32> to vector<4x384xf32>
    %363 = arith.mulf %360, %362 : vector<4x384xf32>
    %cst_311 = arith.constant dense<0.000000e+00> : vector<384xf32>
    %364 = vector.multi_reduction <add>, %363, %cst_311 [0] : vector<4x384xf32> to vector<384xf32>
    %365 = vector.shape_cast %364 : vector<384xf32> to vector<1x384xf32>
    %c0_312 = arith.constant 0 : index
    %c0_313 = arith.constant 0 : index
    %c0_314 = arith.constant 0 : index
    %366 = vector.load %arg2[%c0_312, %c0_313, %c0_314] : memref<1x4x384xf32, #tpu.memory_space<vmem>>, vector<1x4x384xf32>
    %367 = vector.shape_cast %366 : vector<1x4x384xf32> to vector<4x384xf32>
    %c0_315 = arith.constant 0 : index
    %c0_316 = arith.constant 0 : index
    %c123 = arith.constant 123 : index
    %368 = vector.load %arg3[%c0_315, %c0_316, %c123] : memref<1x4x640xf32, #tpu.memory_space<vmem>>, vector<1x4x384xf32>
    %369 = vector.shape_cast %368 : vector<1x4x384xf32> to vector<4x384xf32>
    %370 = arith.mulf %367, %369 : vector<4x384xf32>
    %cst_317 = arith.constant dense<0.000000e+00> : vector<384xf32>
    %371 = vector.multi_reduction <add>, %370, %cst_317 [0] : vector<4x384xf32> to vector<384xf32>
    %372 = vector.shape_cast %371 : vector<384xf32> to vector<1x384xf32>
    %c0_318 = arith.constant 0 : index
    %c0_319 = arith.constant 0 : index
    %c0_320 = arith.constant 0 : index
    %373 = vector.load %arg2[%c0_318, %c0_319, %c0_320] : memref<1x4x384xf32, #tpu.memory_space<vmem>>, vector<1x4x384xf32>
    %374 = vector.shape_cast %373 : vector<1x4x384xf32> to vector<4x384xf32>
    %c0_321 = arith.constant 0 : index
    %c0_322 = arith.constant 0 : index
    %c124 = arith.constant 124 : index
    %375 = vector.load %arg3[%c0_321, %c0_322, %c124] : memref<1x4x640xf32, #tpu.memory_space<vmem>>, vector<1x4x384xf32>
    %376 = vector.shape_cast %375 : vector<1x4x384xf32> to vector<4x384xf32>
    %377 = arith.mulf %374, %376 : vector<4x384xf32>
    %cst_323 = arith.constant dense<0.000000e+00> : vector<384xf32>
    %378 = vector.multi_reduction <add>, %377, %cst_323 [0] : vector<4x384xf32> to vector<384xf32>
    %379 = vector.shape_cast %378 : vector<384xf32> to vector<1x384xf32>
    %c0_324 = arith.constant 0 : index
    %c0_325 = arith.constant 0 : index
    %c0_326 = arith.constant 0 : index
    %380 = vector.load %arg2[%c0_324, %c0_325, %c0_326] : memref<1x4x384xf32, #tpu.memory_space<vmem>>, vector<1x4x384xf32>
    %381 = vector.shape_cast %380 : vector<1x4x384xf32> to vector<4x384xf32>
    %c0_327 = arith.constant 0 : index
    %c0_328 = arith.constant 0 : index
    %c125 = arith.constant 125 : index
    %382 = vector.load %arg3[%c0_327, %c0_328, %c125] : memref<1x4x640xf32, #tpu.memory_space<vmem>>, vector<1x4x384xf32>
    %383 = vector.shape_cast %382 : vector<1x4x384xf32> to vector<4x384xf32>
    %384 = arith.mulf %381, %383 : vector<4x384xf32>
    %cst_329 = arith.constant dense<0.000000e+00> : vector<384xf32>
    %385 = vector.multi_reduction <add>, %384, %cst_329 [0] : vector<4x384xf32> to vector<384xf32>
    %386 = vector.shape_cast %385 : vector<384xf32> to vector<1x384xf32>
    %c0_330 = arith.constant 0 : index
    %c0_331 = arith.constant 0 : index
    %c0_332 = arith.constant 0 : index
    %387 = vector.load %arg2[%c0_330, %c0_331, %c0_332] : memref<1x4x384xf32, #tpu.memory_space<vmem>>, vector<1x4x384xf32>
    %388 = vector.shape_cast %387 : vector<1x4x384xf32> to vector<4x384xf32>
    %c0_333 = arith.constant 0 : index
    %c0_334 = arith.constant 0 : index
    %c126 = arith.constant 126 : index
    %389 = vector.load %arg3[%c0_333, %c0_334, %c126] : memref<1x4x640xf32, #tpu.memory_space<vmem>>, vector<1x4x384xf32>
    %390 = vector.shape_cast %389 : vector<1x4x384xf32> to vector<4x384xf32>
    %391 = arith.mulf %388, %390 : vector<4x384xf32>
    %cst_335 = arith.constant dense<0.000000e+00> : vector<384xf32>
    %392 = vector.multi_reduction <add>, %391, %cst_335 [0] : vector<4x384xf32> to vector<384xf32>
    %393 = vector.shape_cast %392 : vector<384xf32> to vector<1x384xf32>
    %c0_336 = arith.constant 0 : index
    %c0_337 = arith.constant 0 : index
    %c0_338 = arith.constant 0 : index
    %394 = vector.load %arg2[%c0_336, %c0_337, %c0_338] : memref<1x4x384xf32, #tpu.memory_space<vmem>>, vector<1x4x384xf32>
    %395 = vector.shape_cast %394 : vector<1x4x384xf32> to vector<4x384xf32>
    %c0_339 = arith.constant 0 : index
    %c0_340 = arith.constant 0 : index
    %c127 = arith.constant 127 : index
    %396 = vector.load %arg3[%c0_339, %c0_340, %c127] : memref<1x4x640xf32, #tpu.memory_space<vmem>>, vector<1x4x384xf32>
    %397 = vector.shape_cast %396 : vector<1x4x384xf32> to vector<4x384xf32>
    %398 = arith.mulf %395, %397 : vector<4x384xf32>
    %cst_341 = arith.constant dense<0.000000e+00> : vector<384xf32>
    %399 = vector.multi_reduction <add>, %398, %cst_341 [0] : vector<4x384xf32> to vector<384xf32>
    %400 = vector.shape_cast %399 : vector<384xf32> to vector<1x384xf32>
    %c0_342 = arith.constant 0 : index
    %c0_343 = arith.constant 0 : index
    %c0_344 = arith.constant 0 : index
    %401 = vector.load %arg2[%c0_342, %c0_343, %c0_344] : memref<1x4x384xf32, #tpu.memory_space<vmem>>, vector<1x4x384xf32>
    %402 = vector.shape_cast %401 : vector<1x4x384xf32> to vector<4x384xf32>
    %c0_345 = arith.constant 0 : index
    %c0_346 = arith.constant 0 : index
    %c128 = arith.constant 128 : index
    %403 = vector.load %arg3[%c0_345, %c0_346, %c128] : memref<1x4x640xf32, #tpu.memory_space<vmem>>, vector<1x4x384xf32>
    %404 = vector.shape_cast %403 : vector<1x4x384xf32> to vector<4x384xf32>
    %405 = arith.mulf %402, %404 : vector<4x384xf32>
    %cst_347 = arith.constant dense<0.000000e+00> : vector<384xf32>
    %406 = vector.multi_reduction <add>, %405, %cst_347 [0] : vector<4x384xf32> to vector<384xf32>
    %407 = vector.shape_cast %406 : vector<384xf32> to vector<1x384xf32>
    %408 = tpu.concatenate %351, %358, %365, %372, %379, %386, %393, %400, %407 in 0 : vector<1x384xf32>, vector<1x384xf32>, vector<1x384xf32>, vector<1x384xf32>, vector<1x384xf32>, vector<1x384xf32>, vector<1x384xf32>, vector<1x384xf32>, vector<1x384xf32> -> vector<9x384xf32>
    %cst_348 = arith.constant 2.500000e-01 : f32
    %409 = vector.broadcast %cst_348 : f32 to vector<9x384xf32>
    %410 = arith.mulf %408, %409 : vector<9x384xf32>
    %c0_349 = arith.constant 0 : index
    %c5_350 = arith.constant 5 : index
    %c0_351 = arith.constant 0 : index
    %c0_352 = arith.constant 0 : index
    %411 = vector.load %arg4[%c0_349, %c5_350, %c0_351, %c0_352] : memref<1x9x9x384xf32, #tpu.memory_space<vmem>>, vector<1x1x9x384xf32>
    %412 = vector.shape_cast %411 : vector<1x1x9x384xf32> to vector<9x384xf32>
    %413 = vector.shape_cast %410 : vector<9x384xf32> to vector<1x1x9x384xf32>
    tpu.vector_store %arg4[%c0_349, %c5_350, %c0_351, %c0_352], %413 {strides = array<i32>} : memref<1x9x9x384xf32, #tpu.memory_space<vmem>>, vector<1x1x9x384xf32>,
    %c0_353 = arith.constant 0 : index
    %c0_354 = arith.constant 0 : index
    %c0_355 = arith.constant 0 : index
    %414 = vector.load %arg2[%c0_353, %c0_354, %c0_355] : memref<1x4x384xf32, #tpu.memory_space<vmem>>, vector<1x4x384xf32>
    %415 = vector.shape_cast %414 : vector<1x4x384xf32> to vector<4x384xf32>
    %c0_356 = arith.constant 0 : index
    %c0_357 = arith.constant 0 : index
    %c144 = arith.constant 144 : index
    %416 = vector.load %arg3[%c0_356, %c0_357, %c144] : memref<1x4x640xf32, #tpu.memory_space<vmem>>, vector<1x4x384xf32>
    %417 = vector.shape_cast %416 : vector<1x4x384xf32> to vector<4x384xf32>
    %418 = arith.mulf %415, %417 : vector<4x384xf32>
    %cst_358 = arith.constant dense<0.000000e+00> : vector<384xf32>
    %419 = vector.multi_reduction <add>, %418, %cst_358 [0] : vector<4x384xf32> to vector<384xf32>
    %420 = vector.shape_cast %419 : vector<384xf32> to vector<1x384xf32>
    %c0_359 = arith.constant 0 : index
    %c0_360 = arith.constant 0 : index
    %c0_361 = arith.constant 0 : index
    %421 = vector.load %arg2[%c0_359, %c0_360, %c0_361] : memref<1x4x384xf32, #tpu.memory_space<vmem>>, vector<1x4x384xf32>
    %422 = vector.shape_cast %421 : vector<1x4x384xf32> to vector<4x384xf32>
    %c0_362 = arith.constant 0 : index
    %c0_363 = arith.constant 0 : index
    %c145 = arith.constant 145 : index
    %423 = vector.load %arg3[%c0_362, %c0_363, %c145] : memref<1x4x640xf32, #tpu.memory_space<vmem>>, vector<1x4x384xf32>
    %424 = vector.shape_cast %423 : vector<1x4x384xf32> to vector<4x384xf32>
    %425 = arith.mulf %422, %424 : vector<4x384xf32>
    %cst_364 = arith.constant dense<0.000000e+00> : vector<384xf32>
    %426 = vector.multi_reduction <add>, %425, %cst_364 [0] : vector<4x384xf32> to vector<384xf32>
    %427 = vector.shape_cast %426 : vector<384xf32> to vector<1x384xf32>
    %c0_365 = arith.constant 0 : index
    %c0_366 = arith.constant 0 : index
    %c0_367 = arith.constant 0 : index
    %428 = vector.load %arg2[%c0_365, %c0_366, %c0_367] : memref<1x4x384xf32, #tpu.memory_space<vmem>>, vector<1x4x384xf32>
    %429 = vector.shape_cast %428 : vector<1x4x384xf32> to vector<4x384xf32>
    %c0_368 = arith.constant 0 : index
    %c0_369 = arith.constant 0 : index
    %c146 = arith.constant 146 : index
    %430 = vector.load %arg3[%c0_368, %c0_369, %c146] : memref<1x4x640xf32, #tpu.memory_space<vmem>>, vector<1x4x384xf32>
    %431 = vector.shape_cast %430 : vector<1x4x384xf32> to vector<4x384xf32>
    %432 = arith.mulf %429, %431 : vector<4x384xf32>
    %cst_370 = arith.constant dense<0.000000e+00> : vector<384xf32>
    %433 = vector.multi_reduction <add>, %432, %cst_370 [0] : vector<4x384xf32> to vector<384xf32>
    %434 = vector.shape_cast %433 : vector<384xf32> to vector<1x384xf32>
    %c0_371 = arith.constant 0 : index
    %c0_372 = arith.constant 0 : index
    %c0_373 = arith.constant 0 : index
    %435 = vector.load %arg2[%c0_371, %c0_372, %c0_373] : memref<1x4x384xf32, #tpu.memory_space<vmem>>, vector<1x4x384xf32>
    %436 = vector.shape_cast %435 : vector<1x4x384xf32> to vector<4x384xf32>
    %c0_374 = arith.constant 0 : index
    %c0_375 = arith.constant 0 : index
    %c147 = arith.constant 147 : index
    %437 = vector.load %arg3[%c0_374, %c0_375, %c147] : memref<1x4x640xf32, #tpu.memory_space<vmem>>, vector<1x4x384xf32>
    %438 = vector.shape_cast %437 : vector<1x4x384xf32> to vector<4x384xf32>
    %439 = arith.mulf %436, %438 : vector<4x384xf32>
    %cst_376 = arith.constant dense<0.000000e+00> : vector<384xf32>
    %440 = vector.multi_reduction <add>, %439, %cst_376 [0] : vector<4x384xf32> to vector<384xf32>
    %441 = vector.shape_cast %440 : vector<384xf32> to vector<1x384xf32>
    %c0_377 = arith.constant 0 : index
    %c0_378 = arith.constant 0 : index
    %c0_379 = arith.constant 0 : index
    %442 = vector.load %arg2[%c0_377, %c0_378, %c0_379] : memref<1x4x384xf32, #tpu.memory_space<vmem>>, vector<1x4x384xf32>
    %443 = vector.shape_cast %442 : vector<1x4x384xf32> to vector<4x384xf32>
    %c0_380 = arith.constant 0 : index
    %c0_381 = arith.constant 0 : index
    %c148 = arith.constant 148 : index
    %444 = vector.load %arg3[%c0_380, %c0_381, %c148] : memref<1x4x640xf32, #tpu.memory_space<vmem>>, vector<1x4x384xf32>
    %445 = vector.shape_cast %444 : vector<1x4x384xf32> to vector<4x384xf32>
    %446 = arith.mulf %443, %445 : vector<4x384xf32>
    %cst_382 = arith.constant dense<0.000000e+00> : vector<384xf32>
    %447 = vector.multi_reduction <add>, %446, %cst_382 [0] : vector<4x384xf32> to vector<384xf32>
    %448 = vector.shape_cast %447 : vector<384xf32> to vector<1x384xf32>
    %c0_383 = arith.constant 0 : index
    %c0_384 = arith.constant 0 : index
    %c0_385 = arith.constant 0 : index
    %449 = vector.load %arg2[%c0_383, %c0_384, %c0_385] : memref<1x4x384xf32, #tpu.memory_space<vmem>>, vector<1x4x384xf32>
    %450 = vector.shape_cast %449 : vector<1x4x384xf32> to vector<4x384xf32>
    %c0_386 = arith.constant 0 : index
    %c0_387 = arith.constant 0 : index
    %c149 = arith.constant 149 : index
    %451 = vector.load %arg3[%c0_386, %c0_387, %c149] : memref<1x4x640xf32, #tpu.memory_space<vmem>>, vector<1x4x384xf32>
    %452 = vector.shape_cast %451 : vector<1x4x384xf32> to vector<4x384xf32>
    %453 = arith.mulf %450, %452 : vector<4x384xf32>
    %cst_388 = arith.constant dense<0.000000e+00> : vector<384xf32>
    %454 = vector.multi_reduction <add>, %453, %cst_388 [0] : vector<4x384xf32> to vector<384xf32>
    %455 = vector.shape_cast %454 : vector<384xf32> to vector<1x384xf32>
    %c0_389 = arith.constant 0 : index
    %c0_390 = arith.constant 0 : index
    %c0_391 = arith.constant 0 : index
    %456 = vector.load %arg2[%c0_389, %c0_390, %c0_391] : memref<1x4x384xf32, #tpu.memory_space<vmem>>, vector<1x4x384xf32>
    %457 = vector.shape_cast %456 : vector<1x4x384xf32> to vector<4x384xf32>
    %c0_392 = arith.constant 0 : index
    %c0_393 = arith.constant 0 : index
    %c150 = arith.constant 150 : index
    %458 = vector.load %arg3[%c0_392, %c0_393, %c150] : memref<1x4x640xf32, #tpu.memory_space<vmem>>, vector<1x4x384xf32>
    %459 = vector.shape_cast %458 : vector<1x4x384xf32> to vector<4x384xf32>
    %460 = arith.mulf %457, %459 : vector<4x384xf32>
    %cst_394 = arith.constant dense<0.000000e+00> : vector<384xf32>
    %461 = vector.multi_reduction <add>, %460, %cst_394 [0] : vector<4x384xf32> to vector<384xf32>
    %462 = vector.shape_cast %461 : vector<384xf32> to vector<1x384xf32>
    %c0_395 = arith.constant 0 : index
    %c0_396 = arith.constant 0 : index
    %c0_397 = arith.constant 0 : index
    %463 = vector.load %arg2[%c0_395, %c0_396, %c0_397] : memref<1x4x384xf32, #tpu.memory_space<vmem>>, vector<1x4x384xf32>
    %464 = vector.shape_cast %463 : vector<1x4x384xf32> to vector<4x384xf32>
    %c0_398 = arith.constant 0 : index
    %c0_399 = arith.constant 0 : index
    %c151 = arith.constant 151 : index
    %465 = vector.load %arg3[%c0_398, %c0_399, %c151] : memref<1x4x640xf32, #tpu.memory_space<vmem>>, vector<1x4x384xf32>
    %466 = vector.shape_cast %465 : vector<1x4x384xf32> to vector<4x384xf32>
    %467 = arith.mulf %464, %466 : vector<4x384xf32>
    %cst_400 = arith.constant dense<0.000000e+00> : vector<384xf32>
    %468 = vector.multi_reduction <add>, %467, %cst_400 [0] : vector<4x384xf32> to vector<384xf32>
    %469 = vector.shape_cast %468 : vector<384xf32> to vector<1x384xf32>
    %c0_401 = arith.constant 0 : index
    %c0_402 = arith.constant 0 : index
    %c0_403 = arith.constant 0 : index
    %470 = vector.load %arg2[%c0_401, %c0_402, %c0_403] : memref<1x4x384xf32, #tpu.memory_space<vmem>>, vector<1x4x384xf32>
    %471 = vector.shape_cast %470 : vector<1x4x384xf32> to vector<4x384xf32>
    %c0_404 = arith.constant 0 : index
    %c0_405 = arith.constant 0 : index
    %c152 = arith.constant 152 : index
    %472 = vector.load %arg3[%c0_404, %c0_405, %c152] : memref<1x4x640xf32, #tpu.memory_space<vmem>>, vector<1x4x384xf32>
    %473 = vector.shape_cast %472 : vector<1x4x384xf32> to vector<4x384xf32>
    %474 = arith.mulf %471, %473 : vector<4x384xf32>
    %cst_406 = arith.constant dense<0.000000e+00> : vector<384xf32>
    %475 = vector.multi_reduction <add>, %474, %cst_406 [0] : vector<4x384xf32> to vector<384xf32>
    %476 = vector.shape_cast %475 : vector<384xf32> to vector<1x384xf32>
    %477 = tpu.concatenate %420, %427, %434, %441, %448, %455, %462, %469, %476 in 0 : vector<1x384xf32>, vector<1x384xf32>, vector<1x384xf32>, vector<1x384xf32>, vector<1x384xf32>, vector<1x384xf32>, vector<1x384xf32>, vector<1x384xf32>, vector<1x384xf32> -> vector<9x384xf32>
    %cst_407 = arith.constant 2.500000e-01 : f32
    %478 = vector.broadcast %cst_407 : f32 to vector<9x384xf32>
    %479 = arith.mulf %477, %478 : vector<9x384xf32>
    %c0_408 = arith.constant 0 : index
    %c6_409 = arith.constant 6 : index
    %c0_410 = arith.constant 0 : index
    %c0_411 = arith.constant 0 : index
    %480 = vector.load %arg4[%c0_408, %c6_409, %c0_410, %c0_411] : memref<1x9x9x384xf32, #tpu.memory_space<vmem>>, vector<1x1x9x384xf32>
    %481 = vector.shape_cast %480 : vector<1x1x9x384xf32> to vector<9x384xf32>
    %482 = vector.shape_cast %479 : vector<9x384xf32> to vector<1x1x9x384xf32>
    tpu.vector_store %arg4[%c0_408, %c6_409, %c0_410, %c0_411], %482 {strides = array<i32>} : memref<1x9x9x384xf32, #tpu.memory_space<vmem>>, vector<1x1x9x384xf32>,
    %c0_412 = arith.constant 0 : index
    %c0_413 = arith.constant 0 : index
    %c0_414 = arith.constant 0 : index
    %483 = vector.load %arg2[%c0_412, %c0_413, %c0_414] : memref<1x4x384xf32, #tpu.memory_space<vmem>>, vector<1x4x384xf32>
    %484 = vector.shape_cast %483 : vector<1x4x384xf32> to vector<4x384xf32>
    %c0_415 = arith.constant 0 : index
    %c0_416 = arith.constant 0 : index
    %c168 = arith.constant 168 : index
    %485 = vector.load %arg3[%c0_415, %c0_416, %c168] : memref<1x4x640xf32, #tpu.memory_space<vmem>>, vector<1x4x384xf32>
    %486 = vector.shape_cast %485 : vector<1x4x384xf32> to vector<4x384xf32>
    %487 = arith.mulf %484, %486 : vector<4x384xf32>
    %cst_417 = arith.constant dense<0.000000e+00> : vector<384xf32>
    %488 = vector.multi_reduction <add>, %487, %cst_417 [0] : vector<4x384xf32> to vector<384xf32>
    %489 = vector.shape_cast %488 : vector<384xf32> to vector<1x384xf32>
    %c0_418 = arith.constant 0 : index
    %c0_419 = arith.constant 0 : index
    %c0_420 = arith.constant 0 : index
    %490 = vector.load %arg2[%c0_418, %c0_419, %c0_420] : memref<1x4x384xf32, #tpu.memory_space<vmem>>, vector<1x4x384xf32>
    %491 = vector.shape_cast %490 : vector<1x4x384xf32> to vector<4x384xf32>
    %c0_421 = arith.constant 0 : index
    %c0_422 = arith.constant 0 : index
    %c169 = arith.constant 169 : index
    %492 = vector.load %arg3[%c0_421, %c0_422, %c169] : memref<1x4x640xf32, #tpu.memory_space<vmem>>, vector<1x4x384xf32>
    %493 = vector.shape_cast %492 : vector<1x4x384xf32> to vector<4x384xf32>
    %494 = arith.mulf %491, %493 : vector<4x384xf32>
    %cst_423 = arith.constant dense<0.000000e+00> : vector<384xf32>
    %495 = vector.multi_reduction <add>, %494, %cst_423 [0] : vector<4x384xf32> to vector<384xf32>
    %496 = vector.shape_cast %495 : vector<384xf32> to vector<1x384xf32>
    %c0_424 = arith.constant 0 : index
    %c0_425 = arith.constant 0 : index
    %c0_426 = arith.constant 0 : index
    %497 = vector.load %arg2[%c0_424, %c0_425, %c0_426] : memref<1x4x384xf32, #tpu.memory_space<vmem>>, vector<1x4x384xf32>
    %498 = vector.shape_cast %497 : vector<1x4x384xf32> to vector<4x384xf32>
    %c0_427 = arith.constant 0 : index
    %c0_428 = arith.constant 0 : index
    %c170 = arith.constant 170 : index
    %499 = vector.load %arg3[%c0_427, %c0_428, %c170] : memref<1x4x640xf32, #tpu.memory_space<vmem>>, vector<1x4x384xf32>
    %500 = vector.shape_cast %499 : vector<1x4x384xf32> to vector<4x384xf32>
    %501 = arith.mulf %498, %500 : vector<4x384xf32>
    %cst_429 = arith.constant dense<0.000000e+00> : vector<384xf32>
    %502 = vector.multi_reduction <add>, %501, %cst_429 [0] : vector<4x384xf32> to vector<384xf32>
    %503 = vector.shape_cast %502 : vector<384xf32> to vector<1x384xf32>
    %c0_430 = arith.constant 0 : index
    %c0_431 = arith.constant 0 : index
    %c0_432 = arith.constant 0 : index
    %504 = vector.load %arg2[%c0_430, %c0_431, %c0_432] : memref<1x4x384xf32, #tpu.memory_space<vmem>>, vector<1x4x384xf32>
    %505 = vector.shape_cast %504 : vector<1x4x384xf32> to vector<4x384xf32>
    %c0_433 = arith.constant 0 : index
    %c0_434 = arith.constant 0 : index
    %c171 = arith.constant 171 : index
    %506 = vector.load %arg3[%c0_433, %c0_434, %c171] : memref<1x4x640xf32, #tpu.memory_space<vmem>>, vector<1x4x384xf32>
    %507 = vector.shape_cast %506 : vector<1x4x384xf32> to vector<4x384xf32>
    %508 = arith.mulf %505, %507 : vector<4x384xf32>
    %cst_435 = arith.constant dense<0.000000e+00> : vector<384xf32>
    %509 = vector.multi_reduction <add>, %508, %cst_435 [0] : vector<4x384xf32> to vector<384xf32>
    %510 = vector.shape_cast %509 : vector<384xf32> to vector<1x384xf32>
    %c0_436 = arith.constant 0 : index
    %c0_437 = arith.constant 0 : index
    %c0_438 = arith.constant 0 : index
    %511 = vector.load %arg2[%c0_436, %c0_437, %c0_438] : memref<1x4x384xf32, #tpu.memory_space<vmem>>, vector<1x4x384xf32>
    %512 = vector.shape_cast %511 : vector<1x4x384xf32> to vector<4x384xf32>
    %c0_439 = arith.constant 0 : index
    %c0_440 = arith.constant 0 : index
    %c172 = arith.constant 172 : index
    %513 = vector.load %arg3[%c0_439, %c0_440, %c172] : memref<1x4x640xf32, #tpu.memory_space<vmem>>, vector<1x4x384xf32>
    %514 = vector.shape_cast %513 : vector<1x4x384xf32> to vector<4x384xf32>
    %515 = arith.mulf %512, %514 : vector<4x384xf32>
    %cst_441 = arith.constant dense<0.000000e+00> : vector<384xf32>
    %516 = vector.multi_reduction <add>, %515, %cst_441 [0] : vector<4x384xf32> to vector<384xf32>
    %517 = vector.shape_cast %516 : vector<384xf32> to vector<1x384xf32>
    %c0_442 = arith.constant 0 : index
    %c0_443 = arith.constant 0 : index
    %c0_444 = arith.constant 0 : index
    %518 = vector.load %arg2[%c0_442, %c0_443, %c0_444] : memref<1x4x384xf32, #tpu.memory_space<vmem>>, vector<1x4x384xf32>
    %519 = vector.shape_cast %518 : vector<1x4x384xf32> to vector<4x384xf32>
    %c0_445 = arith.constant 0 : index
    %c0_446 = arith.constant 0 : index
    %c173 = arith.constant 173 : index
    %520 = vector.load %arg3[%c0_445, %c0_446, %c173] : memref<1x4x640xf32, #tpu.memory_space<vmem>>, vector<1x4x384xf32>
    %521 = vector.shape_cast %520 : vector<1x4x384xf32> to vector<4x384xf32>
    %522 = arith.mulf %519, %521 : vector<4x384xf32>
    %cst_447 = arith.constant dense<0.000000e+00> : vector<384xf32>
    %523 = vector.multi_reduction <add>, %522, %cst_447 [0] : vector<4x384xf32> to vector<384xf32>
    %524 = vector.shape_cast %523 : vector<384xf32> to vector<1x384xf32>
    %c0_448 = arith.constant 0 : index
    %c0_449 = arith.constant 0 : index
    %c0_450 = arith.constant 0 : index
    %525 = vector.load %arg2[%c0_448, %c0_449, %c0_450] : memref<1x4x384xf32, #tpu.memory_space<vmem>>, vector<1x4x384xf32>
    %526 = vector.shape_cast %525 : vector<1x4x384xf32> to vector<4x384xf32>
    %c0_451 = arith.constant 0 : index
    %c0_452 = arith.constant 0 : index
    %c174 = arith.constant 174 : index
    %527 = vector.load %arg3[%c0_451, %c0_452, %c174] : memref<1x4x640xf32, #tpu.memory_space<vmem>>, vector<1x4x384xf32>
    %528 = vector.shape_cast %527 : vector<1x4x384xf32> to vector<4x384xf32>
    %529 = arith.mulf %526, %528 : vector<4x384xf32>
    %cst_453 = arith.constant dense<0.000000e+00> : vector<384xf32>
    %530 = vector.multi_reduction <add>, %529, %cst_453 [0] : vector<4x384xf32> to vector<384xf32>
    %531 = vector.shape_cast %530 : vector<384xf32> to vector<1x384xf32>
    %c0_454 = arith.constant 0 : index
    %c0_455 = arith.constant 0 : index
    %c0_456 = arith.constant 0 : index
    %532 = vector.load %arg2[%c0_454, %c0_455, %c0_456] : memref<1x4x384xf32, #tpu.memory_space<vmem>>, vector<1x4x384xf32>
    %533 = vector.shape_cast %532 : vector<1x4x384xf32> to vector<4x384xf32>
    %c0_457 = arith.constant 0 : index
    %c0_458 = arith.constant 0 : index
    %c175 = arith.constant 175 : index
    %534 = vector.load %arg3[%c0_457, %c0_458, %c175] : memref<1x4x640xf32, #tpu.memory_space<vmem>>, vector<1x4x384xf32>
    %535 = vector.shape_cast %534 : vector<1x4x384xf32> to vector<4x384xf32>
    %536 = arith.mulf %533, %535 : vector<4x384xf32>
    %cst_459 = arith.constant dense<0.000000e+00> : vector<384xf32>
    %537 = vector.multi_reduction <add>, %536, %cst_459 [0] : vector<4x384xf32> to vector<384xf32>
    %538 = vector.shape_cast %537 : vector<384xf32> to vector<1x384xf32>
    %c0_460 = arith.constant 0 : index
    %c0_461 = arith.constant 0 : index
    %c0_462 = arith.constant 0 : index
    %539 = vector.load %arg2[%c0_460, %c0_461, %c0_462] : memref<1x4x384xf32, #tpu.memory_space<vmem>>, vector<1x4x384xf32>
    %540 = vector.shape_cast %539 : vector<1x4x384xf32> to vector<4x384xf32>
    %c0_463 = arith.constant 0 : index
    %c0_464 = arith.constant 0 : index
    %c176 = arith.constant 176 : index
    %541 = vector.load %arg3[%c0_463, %c0_464, %c176] : memref<1x4x640xf32, #tpu.memory_space<vmem>>, vector<1x4x384xf32>
    %542 = vector.shape_cast %541 : vector<1x4x384xf32> to vector<4x384xf32>
    %543 = arith.mulf %540, %542 : vector<4x384xf32>
    %cst_465 = arith.constant dense<0.000000e+00> : vector<384xf32>
    %544 = vector.multi_reduction <add>, %543, %cst_465 [0] : vector<4x384xf32> to vector<384xf32>
    %545 = vector.shape_cast %544 : vector<384xf32> to vector<1x384xf32>
    %546 = tpu.concatenate %489, %496, %503, %510, %517, %524, %531, %538, %545 in 0 : vector<1x384xf32>, vector<1x384xf32>, vector<1x384xf32>, vector<1x384xf32>, vector<1x384xf32>, vector<1x384xf32>, vector<1x384xf32>, vector<1x384xf32>, vector<1x384xf32> -> vector<9x384xf32>
    %cst_466 = arith.constant 2.500000e-01 : f32
    %547 = vector.broadcast %cst_466 : f32 to vector<9x384xf32>
    %548 = arith.mulf %546, %547 : vector<9x384xf32>
    %c0_467 = arith.constant 0 : index
    %c7_468 = arith.constant 7 : index
    %c0_469 = arith.constant 0 : index
    %c0_470 = arith.constant 0 : index
    %549 = vector.load %arg4[%c0_467, %c7_468, %c0_469, %c0_470] : memref<1x9x9x384xf32, #tpu.memory_space<vmem>>, vector<1x1x9x384xf32>
    %550 = vector.shape_cast %549 : vector<1x1x9x384xf32> to vector<9x384xf32>
    %551 = vector.shape_cast %548 : vector<9x384xf32> to vector<1x1x9x384xf32>
    tpu.vector_store %arg4[%c0_467, %c7_468, %c0_469, %c0_470], %551 {strides = array<i32>} : memref<1x9x9x384xf32, #tpu.memory_space<vmem>>, vector<1x1x9x384xf32>,
    %c0_471 = arith.constant 0 : index
    %c0_472 = arith.constant 0 : index
    %c0_473 = arith.constant 0 : index
    %552 = vector.load %arg2[%c0_471, %c0_472, %c0_473] : memref<1x4x384xf32, #tpu.memory_space<vmem>>, vector<1x4x384xf32>
    %553 = vector.shape_cast %552 : vector<1x4x384xf32> to vector<4x384xf32>
    %c0_474 = arith.constant 0 : index
    %c0_475 = arith.constant 0 : index
    %c192 = arith.constant 192 : index
    %554 = vector.load %arg3[%c0_474, %c0_475, %c192] : memref<1x4x640xf32, #tpu.memory_space<vmem>>, vector<1x4x384xf32>
    %555 = vector.shape_cast %554 : vector<1x4x384xf32> to vector<4x384xf32>
    %556 = arith.mulf %553, %555 : vector<4x384xf32>
    %cst_476 = arith.constant dense<0.000000e+00> : vector<384xf32>
    %557 = vector.multi_reduction <add>, %556, %cst_476 [0] : vector<4x384xf32> to vector<384xf32>
    %558 = vector.shape_cast %557 : vector<384xf32> to vector<1x384xf32>
    %c0_477 = arith.constant 0 : index
    %c0_478 = arith.constant 0 : index
    %c0_479 = arith.constant 0 : index
    %559 = vector.load %arg2[%c0_477, %c0_478, %c0_479] : memref<1x4x384xf32, #tpu.memory_space<vmem>>, vector<1x4x384xf32>
    %560 = vector.shape_cast %559 : vector<1x4x384xf32> to vector<4x384xf32>
    %c0_480 = arith.constant 0 : index
    %c0_481 = arith.constant 0 : index
    %c193 = arith.constant 193 : index
    %561 = vector.load %arg3[%c0_480, %c0_481, %c193] : memref<1x4x640xf32, #tpu.memory_space<vmem>>, vector<1x4x384xf32>
    %562 = vector.shape_cast %561 : vector<1x4x384xf32> to vector<4x384xf32>
    %563 = arith.mulf %560, %562 : vector<4x384xf32>
    %cst_482 = arith.constant dense<0.000000e+00> : vector<384xf32>
    %564 = vector.multi_reduction <add>, %563, %cst_482 [0] : vector<4x384xf32> to vector<384xf32>
    %565 = vector.shape_cast %564 : vector<384xf32> to vector<1x384xf32>
    %c0_483 = arith.constant 0 : index
    %c0_484 = arith.constant 0 : index
    %c0_485 = arith.constant 0 : index
    %566 = vector.load %arg2[%c0_483, %c0_484, %c0_485] : memref<1x4x384xf32, #tpu.memory_space<vmem>>, vector<1x4x384xf32>
    %567 = vector.shape_cast %566 : vector<1x4x384xf32> to vector<4x384xf32>
    %c0_486 = arith.constant 0 : index
    %c0_487 = arith.constant 0 : index
    %c194 = arith.constant 194 : index
    %568 = vector.load %arg3[%c0_486, %c0_487, %c194] : memref<1x4x640xf32, #tpu.memory_space<vmem>>, vector<1x4x384xf32>
    %569 = vector.shape_cast %568 : vector<1x4x384xf32> to vector<4x384xf32>
    %570 = arith.mulf %567, %569 : vector<4x384xf32>
    %cst_488 = arith.constant dense<0.000000e+00> : vector<384xf32>
    %571 = vector.multi_reduction <add>, %570, %cst_488 [0] : vector<4x384xf32> to vector<384xf32>
    %572 = vector.shape_cast %571 : vector<384xf32> to vector<1x384xf32>
    %c0_489 = arith.constant 0 : index
    %c0_490 = arith.constant 0 : index
    %c0_491 = arith.constant 0 : index
    %573 = vector.load %arg2[%c0_489, %c0_490, %c0_491] : memref<1x4x384xf32, #tpu.memory_space<vmem>>, vector<1x4x384xf32>
    %574 = vector.shape_cast %573 : vector<1x4x384xf32> to vector<4x384xf32>
    %c0_492 = arith.constant 0 : index
    %c0_493 = arith.constant 0 : index
    %c195 = arith.constant 195 : index
    %575 = vector.load %arg3[%c0_492, %c0_493, %c195] : memref<1x4x640xf32, #tpu.memory_space<vmem>>, vector<1x4x384xf32>
    %576 = vector.shape_cast %575 : vector<1x4x384xf32> to vector<4x384xf32>
    %577 = arith.mulf %574, %576 : vector<4x384xf32>
    %cst_494 = arith.constant dense<0.000000e+00> : vector<384xf32>
    %578 = vector.multi_reduction <add>, %577, %cst_494 [0] : vector<4x384xf32> to vector<384xf32>
    %579 = vector.shape_cast %578 : vector<384xf32> to vector<1x384xf32>
    %c0_495 = arith.constant 0 : index
    %c0_496 = arith.constant 0 : index
    %c0_497 = arith.constant 0 : index
    %580 = vector.load %arg2[%c0_495, %c0_496, %c0_497] : memref<1x4x384xf32, #tpu.memory_space<vmem>>, vector<1x4x384xf32>
    %581 = vector.shape_cast %580 : vector<1x4x384xf32> to vector<4x384xf32>
    %c0_498 = arith.constant 0 : index
    %c0_499 = arith.constant 0 : index
    %c196 = arith.constant 196 : index
    %582 = vector.load %arg3[%c0_498, %c0_499, %c196] : memref<1x4x640xf32, #tpu.memory_space<vmem>>, vector<1x4x384xf32>
    %583 = vector.shape_cast %582 : vector<1x4x384xf32> to vector<4x384xf32>
    %584 = arith.mulf %581, %583 : vector<4x384xf32>
    %cst_500 = arith.constant dense<0.000000e+00> : vector<384xf32>
    %585 = vector.multi_reduction <add>, %584, %cst_500 [0] : vector<4x384xf32> to vector<384xf32>
    %586 = vector.shape_cast %585 : vector<384xf32> to vector<1x384xf32>
    %c0_501 = arith.constant 0 : index
    %c0_502 = arith.constant 0 : index
    %c0_503 = arith.constant 0 : index
    %587 = vector.load %arg2[%c0_501, %c0_502, %c0_503] : memref<1x4x384xf32, #tpu.memory_space<vmem>>, vector<1x4x384xf32>
    %588 = vector.shape_cast %587 : vector<1x4x384xf32> to vector<4x384xf32>
    %c0_504 = arith.constant 0 : index
    %c0_505 = arith.constant 0 : index
    %c197 = arith.constant 197 : index
    %589 = vector.load %arg3[%c0_504, %c0_505, %c197] : memref<1x4x640xf32, #tpu.memory_space<vmem>>, vector<1x4x384xf32>
    %590 = vector.shape_cast %589 : vector<1x4x384xf32> to vector<4x384xf32>
    %591 = arith.mulf %588, %590 : vector<4x384xf32>
    %cst_506 = arith.constant dense<0.000000e+00> : vector<384xf32>
    %592 = vector.multi_reduction <add>, %591, %cst_506 [0] : vector<4x384xf32> to vector<384xf32>
    %593 = vector.shape_cast %592 : vector<384xf32> to vector<1x384xf32>
    %c0_507 = arith.constant 0 : index
    %c0_508 = arith.constant 0 : index
    %c0_509 = arith.constant 0 : index
    %594 = vector.load %arg2[%c0_507, %c0_508, %c0_509] : memref<1x4x384xf32, #tpu.memory_space<vmem>>, vector<1x4x384xf32>
    %595 = vector.shape_cast %594 : vector<1x4x384xf32> to vector<4x384xf32>
    %c0_510 = arith.constant 0 : index
    %c0_511 = arith.constant 0 : index
    %c198 = arith.constant 198 : index
    %596 = vector.load %arg3[%c0_510, %c0_511, %c198] : memref<1x4x640xf32, #tpu.memory_space<vmem>>, vector<1x4x384xf32>
    %597 = vector.shape_cast %596 : vector<1x4x384xf32> to vector<4x384xf32>
    %598 = arith.mulf %595, %597 : vector<4x384xf32>
    %cst_512 = arith.constant dense<0.000000e+00> : vector<384xf32>
    %599 = vector.multi_reduction <add>, %598, %cst_512 [0] : vector<4x384xf32> to vector<384xf32>
    %600 = vector.shape_cast %599 : vector<384xf32> to vector<1x384xf32>
    %c0_513 = arith.constant 0 : index
    %c0_514 = arith.constant 0 : index
    %c0_515 = arith.constant 0 : index
    %601 = vector.load %arg2[%c0_513, %c0_514, %c0_515] : memref<1x4x384xf32, #tpu.memory_space<vmem>>, vector<1x4x384xf32>
    %602 = vector.shape_cast %601 : vector<1x4x384xf32> to vector<4x384xf32>
    %c0_516 = arith.constant 0 : index
    %c0_517 = arith.constant 0 : index
    %c199 = arith.constant 199 : index
    %603 = vector.load %arg3[%c0_516, %c0_517, %c199] : memref<1x4x640xf32, #tpu.memory_space<vmem>>, vector<1x4x384xf32>
    %604 = vector.shape_cast %603 : vector<1x4x384xf32> to vector<4x384xf32>
    %605 = arith.mulf %602, %604 : vector<4x384xf32>
    %cst_518 = arith.constant dense<0.000000e+00> : vector<384xf32>
    %606 = vector.multi_reduction <add>, %605, %cst_518 [0] : vector<4x384xf32> to vector<384xf32>
    %607 = vector.shape_cast %606 : vector<384xf32> to vector<1x384xf32>
    %c0_519 = arith.constant 0 : index
    %c0_520 = arith.constant 0 : index
    %c0_521 = arith.constant 0 : index
    %608 = vector.load %arg2[%c0_519, %c0_520, %c0_521] : memref<1x4x384xf32, #tpu.memory_space<vmem>>, vector<1x4x384xf32>
    %609 = vector.shape_cast %608 : vector<1x4x384xf32> to vector<4x384xf32>
    %c0_522 = arith.constant 0 : index
    %c0_523 = arith.constant 0 : index
    %c200 = arith.constant 200 : index
    %610 = vector.load %arg3[%c0_522, %c0_523, %c200] : memref<1x4x640xf32, #tpu.memory_space<vmem>>, vector<1x4x384xf32>
    %611 = vector.shape_cast %610 : vector<1x4x384xf32> to vector<4x384xf32>
    %612 = arith.mulf %609, %611 : vector<4x384xf32>
    %cst_524 = arith.constant dense<0.000000e+00> : vector<384xf32>
    %613 = vector.multi_reduction <add>, %612, %cst_524 [0] : vector<4x384xf32> to vector<384xf32>
    %614 = vector.shape_cast %613 : vector<384xf32> to vector<1x384xf32>
    %615 = tpu.concatenate %558, %565, %572, %579, %586, %593, %600, %607, %614 in 0 : vector<1x384xf32>, vector<1x384xf32>, vector<1x384xf32>, vector<1x384xf32>, vector<1x384xf32>, vector<1x384xf32>, vector<1x384xf32>, vector<1x384xf32>, vector<1x384xf32> -> vector<9x384xf32>
    %cst_525 = arith.constant 2.500000e-01 : f32
    %616 = vector.broadcast %cst_525 : f32 to vector<9x384xf32>
    %617 = arith.mulf %615, %616 : vector<9x384xf32>
    %c0_526 = arith.constant 0 : index
    %c8_527 = arith.constant 8 : index
    %c0_528 = arith.constant 0 : index
    %c0_529 = arith.constant 0 : index
    %618 = vector.load %arg4[%c0_526, %c8_527, %c0_528, %c0_529] : memref<1x9x9x384xf32, #tpu.memory_space<vmem>>, vector<1x1x9x384xf32>
    %619 = vector.shape_cast %618 : vector<1x1x9x384xf32> to vector<9x384xf32>
    %620 = vector.shape_cast %617 : vector<9x384xf32> to vector<1x1x9x384xf32>
    tpu.vector_store %arg4[%c0_526, %c8_527, %c0_528, %c0_529], %620 {strides = array<i32>} : memref<1x9x9x384xf32, #tpu.memory_space<vmem>>, vector<1x1x9x384xf32>,
    return
  }
  func.func @transform_0(%arg0: i32, %arg1: i32) -> (i32, i32, i32) {
    %c0_i32 = arith.constant 0 : i32
    %c0_i32_0 = arith.constant 0 : i32
    %c0_i32_1 = arith.constant 0 : i32
    return %arg0, %c0_i32, %c0_i32_0 : i32, i32, i32
  }
  func.func @transform_1(%arg0: i32, %arg1: i32) -> (i32, i32, i32) {
    %c0_i32 = arith.constant 0 : i32
    %c0_i32_0 = arith.constant 0 : i32
    %c0_i32_1 = arith.constant 0 : i32
    return %arg0, %c0_i32, %c0_i32_0 : i32, i32, i32
  }
  func.func @transform_2(%arg0: i32, %arg1: i32) -> (i32, i32, i32, i32) {
    %c0_i32 = arith.constant 0 : i32
    %c0_i32_0 = arith.constant 0 : i32
    %c0_i32_1 = arith.constant 0 : i32
    return %arg0, %arg1, %c0_i32, %c0_i32_0 : i32, i32, i32, i32
  }
}

</mosaic_0001>

<bundles_post_ra>
// kernel: tpu_custom_call.1
= control target key start
LH: loop header
LB: loop body
LE: loop exit
PB: predicated region body
PF: predicated region fallthrough
CT: control target
= control target key end

     0   :  { %7 = vsyncpa [#allocation3], 0  ;;  %s5707_s0 = inlined_call_operand.hbm [shape: f32[2,4,384], index: 0, kind: input, shape index: {}]   ;;  %s5708_s1 = inlined_call_operand.hbm [shape: f32[2,4,640], index: 1, kind: input, shape index: {}]   ;;  %s5709_s2 = inlined_call_operand.vmem [shape: f32[2,9,9,384], index: 2, kind: output, shape index: {}]  }
   0x1   :  { %9 = vsyncpa [#allocation3 + $0x1], 0 }
   0x2   :  { %10 = vsyncpa [#allocation5], 0 }
   0x3   :  { %12 = vsyncpa [#allocation5 + $0x1], 0  ;;  %s4185_s9 = smov 0   ;;  %s4187_s10 = smov 0  }
   0x4   :  { %s4189_s11 = smov 0   ;;  %s4191_s12 = smov 0  }
   0x5   :  { %s4193_s13 = smov 0   ;;  %s4195_s14 = smov 0  }
   0x6 LB: > { %s3766_s15 = sadd.s32 4294967295, %s4090_s14   ;;  %s30_s16 = sadd.s32 1, %s4086_s13  ;;  %s4090_s14 = sphi %s4195_s14, %s18_s14   ;;  %s4086_s13 = sphi %s4193_s13, %s5722_s13   ;;  %s4082_s12 = sphi %s4191_s12, %s5721_s12   ;;  %s4078_s11 = sphi %s4189_s11, %s5720_s11   ;;  %s4074_s10 = sphi %s4187_s10, %s5719_s10   ;;  %s4070_s9 = sphi %s4185_s9, %s5718_s9  }
   0x7   : > { %p32_p0 = scmp.ge.s32.totalorder %s30_s16, 2  ;;  %s37_s17 = sadd.s32 1, %s4078_s11 }
   0x8   : > { %p44_p1 = scmp.ne.s32.totalorder %s4078_s11, %s4074_s10  ;;  %p45_p2 = scmp.eq.s32.totalorder %s4090_s14, 0 }
   0x9   : > { %s5724_s16 = smov (%p32_p0, %s30_s16), 0  ;;  %p50_p4 = scmp.ne.s32.totalorder %s4074_s10, %s4070_s9 }
   0xa   : > { %p46_p3 = por %p45_p2, %p44_p1  ;;  %s34_s18 = ssub.s32 %s4086_s13, %s5724_s16 }
   0xb   : > { %p51_p5 = scmp.eq.s32.totalorder %s3766_s15, 0  ;;  %p35_p6 = scmp.eq.s32.totalorder %s34_s18, 0 }
   0xc   : > { %p3842_p8 = scmp.lt.s32.totalorder %s4090_s14, 2  ;;  %s4233_s21 = sand.u32 1, %s4078_s11  }
   0xd   : > { %p4224_p7 = por %p51_p5, %p50_p4  ;;  %s3825_s22 = smul.u32 192, %s4086_s13 }
   0xe   : > { %s4230_s20 = scalar_select %p35_p6, %s4078_s11, %s37_s17  }
   0xf   : > { %s5711_s19 = scalar_select %p4224_p7, 1, 0 }
  0x10   : > { %s3824_s23 = smul.u32 12, %s4233_s21  ;;  %s4240_s26 = scalar_lea.hbm %s5707_s0, %s3825_s22 }
  0x11   : > { %p4242_p9 = pnand %p3842_p8, %p46_p3  ;;  %s129_s30 = scalar_lea.sflag [#allocation3], %s4233_s21 }
  0x12   : > { %s132_s28 = scalar_lea.vmem [#allocation2], %s3824_s23  ;;  %s3976_s3 = scalar_lea.hbm %s4240_s26, 192 }
  0x13   : > { %s140_s29 = sshll.u32 %s132_s28, 4  ;;  %p3977_p12 = scmp.ne.s32.totalorder %s4240_s26, %s3976_s3  ;;  %s4247_s29 = int_to_ptr.vmem [resolvable:$true] %s140_s29 }
  0x14   : > { %p3978_p13 = pneg %p4242_p9  ;;  %s3981_s6 = scalar_lea.hbm %s5707_s0, 384 }
  0x15   : > { %p3982_p2 = scmp.lt.u32.totalorder %s4240_s26, %s5707_s0  ;;  %p3983_p3 = scmp.lt.u32.totalorder %s3981_s6, %s3976_s3 }
  0x16   : > { %p3979_p0 = pnand %p3978_p13, %p3977_p12  ;;  %p3985_p5 = scmp.lt.u32.totalorder %s3976_s3, %s4240_s26 }
  0x17   : > { %p3984_p4 = por %p3983_p3, %p3982_p2 }
  0x18   : > { %p3980_p1 = pneg %p3979_p0 }
  0x19   : > { %p3986_p6 = por %p3985_p5, %p3984_p4 }
  0x1b   : > { %p3987_p8 = pnand %p3986_p6, %p3980_p1 }
  0x1d   : > { %3990 = shalt.err (!%p3987_p8)
}
  0x1e   : > { %s3991_s9 = scalar_lea.vmem %s4247_s29, 192  ;;  %s4092_s15 = smov [#allocation2]  }
  0x1f   : > { %p3992_p12 = scmp.ne.s32.totalorder %s4247_s29, %s3991_s9  ;;  %s3996_s17 = sshll.u32 %s4092_s15, 4  ;;  %s3997_s17 = int_to_ptr.vmem [resolvable:$false] %s3996_s17 }
  0x20   : > { %s3998_s18 = scalar_lea.vmem %s3997_s17, 384  ;;  %p3999_p11 = scmp.lt.s32.totalorder %s4247_s29, %s3997_s17 }
  0x21   : > { %p3994_p0 = pnand %p3992_p12, %p3978_p13  ;;  %p4000_p2 = scmp.lt.s32.totalorder %s3998_s18, %s3991_s9 }
  0x23   : > { %p3995_p10 = pneg %p3994_p0  ;;  %p4001_p3 = por %p4000_p2, %p3999_p11 }
  0x25   : > { %p4002_p4 = pnand %p4001_p3, %p3995_p10 }
  0x27   : > { %4005 = shalt.err (!%p4002_p4)
}
  0x28   : > { %3838 = dma.hbm_to_vmem [thread:$0]  (!%p4242_p9), %s4240_s26, 192, %s4247_s29, %s129_s30  }
  0x29   : > { %p5713_p1 = scmp.lt.s32.totalorder %s4090_s14, 3  ;;  %p5714_p5 = scmp.ge.s32.totalorder %s4090_s14, 1 }
  0x2a   : > { %s3826_s23 = smul.u32 20, %s4233_s21  ;;  %s148_s26 = scalar_lea.sflag [#allocation5], %s4233_s21 }
  0x2b   : > { %p4280_p6 = pnand %p5714_p5, %p5713_p1  ;;  %s3827_s24 = smul.u32 320, %s4086_s13 }
  0x2c   : > { %s151_s4 = scalar_lea.vmem [#allocation4], %s3826_s23  ;;  %s4011_s7 = scalar_lea.hbm %s5708_s1, 640 }
  0x2d   : > { %s5715_s22 = scalar_select %p4280_p6, 1, 0 }
  0x2e   : > { %s4289_s3 = scalar_lea.hbm %s5708_s1, %s3827_s24  ;;  %s159_s5 = sshll.u32 %s151_s4, 4  ;;  %s160_s5 = int_to_ptr.vmem [resolvable:$true] %s159_s5 }
  0x2f   : > { %s4006_s29 = scalar_lea.hbm %s4289_s3, 320  ;;  %p4012_p12 = scmp.lt.u32.totalorder %s4289_s3, %s5708_s1 }
  0x30   : > { %p4007_p10 = scmp.ne.s32.totalorder %s4289_s3, %s4006_s29  ;;  %p4013_p0 = scmp.lt.u32.totalorder %s4011_s7, %s4006_s29 }
  0x31   : > { %p4015_p3 = scmp.lt.u32.totalorder %s4006_s29, %s4289_s3 }
  0x32   : > { %p4009_p11 = pnand %p4007_p10, %p3978_p13  ;;  %p4014_p2 = por %p4013_p0, %p4012_p12 }
  0x34   : > { %p4010_p8 = pneg %p4009_p11  ;;  %p4016_p4 = por %p4015_p3, %p4014_p2 }
  0x36   : > { %p4017_p1 = pnand %p4016_p4, %p4010_p8 }
  0x38   : > { %4020 = shalt.err (!%p4017_p1)
}
  0x39   : > { %s4021_s21 = scalar_lea.vmem %s160_s5, 320  ;;  %s4093_s15 = smov [#allocation4]  }
  0x3a   : > { %p4022_p5 = scmp.ne.s32.totalorder %s160_s5, %s4021_s21  ;;  %s4026_s17 = sshll.u32 %s4093_s15, 4  ;;  %s4027_s17 = int_to_ptr.vmem [resolvable:$false] %s4026_s17 }
  0x3b   : > { %s4028_s18 = scalar_lea.vmem %s4027_s17, 640  ;;  %p4029_p7 = scmp.lt.s32.totalorder %s160_s5, %s4027_s17 }
  0x3c   : > { %p4024_p10 = pnand %p4022_p5, %p3978_p13  ;;  %p4030_p6 = scmp.lt.s32.totalorder %s4028_s18, %s4021_s21 }
  0x3e   : > { %p4025_p11 = pneg %p4024_p10  ;;  %p4031_p0 = por %p4030_p6, %p4029_p7 }
  0x40   : > { %p4032_p12 = pnand %p4031_p0, %p4025_p11 }
  0x42   : > { %4035 = shalt.err (!%p4032_p12)
}
  0x43   : > { %3841 = dma.hbm_to_vmem [thread:$0]  (!%p4242_p9), %s4289_s3, 320, %s160_s5, %s148_s26  }
  0x44   : > { %p5716_p8 = scmp.ne.s32.totalorder %s5715_s22, 0 }
  0x45   : > { %s170_s23 = sand.u32 (!%p5716_p8), 1, %s4074_s10   ;;  %p5717_p13 = scmp.ne.s32.totalorder (!%p5716_p8), %s5711_s19, 0 }
  0x46   : > { %168 = sbr.rel (%p5716_p8) target bundleno = 871 (0x367), region = 28  ;;  %s171_s25 = scalar_lea.sflag (!%p5716_p8), [#allocation3], %s170_s23 }
  0x47   : > { %s3828_s24 = smul.u32 (!%p5716_p8), 12, %s170_s23 }
  0x49   : > { %s4314_s28 = scalar_lea.vmem (!%p5716_p8), [#allocation2], %s3828_s24 }
  0x4d   : > { %4061 = dma.done.wait (%p5717_p13), %s171_s25, 192  }
  0x4e   : > { %4063 = vsyncadd (%p5717_p13), %s171_s25, 4294967104  ;;  %s3829_s4 = smul.u32 20, %s170_s23  ;;  %s180_s27 = scalar_lea.sflag [#allocation5], %s170_s23 }
  0x50   : > { %s4320_s29 = scalar_lea.vmem [#allocation4], %s3829_s4 }
  0x51   : > { %4065 = dma.done.wait (%p5717_p13), %s180_s27, 320  }
  0x52   : > { %4067 = vsyncadd (%p5717_p13), %s180_s27, 4294966976  ;;  %v4327_v0 = vld [vmem:[%s4320_s29] sm:$0xff]  ;;  %s4094_s22 = smov 126   ;;  %s4095_s3 = smov 127   ;;  %v4332_v1 = vld [vmem:[%s4320_s29 + $0x8] sm:$0xff]  ;;  %vm234_vm0 = vcmask 1043456  }
  0x53   : > { %297 = vrot.lane.b32.xlu1 %v4327_v0, %s4094_s22  ;;  %259 = vrot.lane.b32.xlu0 %v4327_v0, %s4095_s3  ;;  %s4096_s5 = smov 125   ;;  %s4097_s19 = smov 124   ;;  %v4383_v2 = vld [vmem:[%s4314_s28] sm:$0xff]  ;;  %v4388_v3 = vld [vmem:[%s4314_s28 + $0x8] sm:$0xf]  ;;  %vm304_vm1 = vcmask 1031168  }
  0x54   : > { %s4098_s26 = smov 123   ;;  %s4099_s30 = smov 122   ;;  %v228_v4 = vld [vmem:[%s4320_s29 + $0x8] sm:$0xf]  ;;  %v229_v5 = vmul.f32 %v4327_v0, %v4383_v2  ;;  %vm266_vm2 = vcmask 1039360   ;;  %vm342_vm3 = vcmask 1022976  }
  0x55   : > { %s4100_s6 = smov 121   ;;  %s4101_s7 = smov 120   ;;  %v230_v6 = vmul.f32 %v228_v4, %v4388_v3  ;;  %vm563_vm4 = vcmask 1040384   ;;  %vm567_vm5 = vcmask 1041408   ;;  %vm380_vm6 = vcmask 1014784  }
  0x56   : > { %s4102_s8 = smov 104   ;;  %s4103_s9 = smov 103   ;;  %v232_v7 = vcombine.high %v229_v5, %v229_v5  ;;  %v235_v8 = vsel %vm234_vm0, %v229_v5, 0.0  ;;  %vm418_vm7 = vcmask 1006592   ;;  %vm571_vm8 = vcmask 1042432  }
  0x57   : > { %299 = vrot.lane.b32.xlu1 %v4332_v1, %s4094_s22  ;;  %261 = vrot.lane.b32.xlu0 %v4332_v1, %s4095_s3  ;;  %s4104_s21 = smov 102   ;;  %s4105_s15 = smov 101   ;;  %v249_v9 = vsel %vm234_vm0, %v230_v6, 0.0  ;;  %v236_v10 = vrot.slane %v235_v8, 4  ;;  %vm456_vm9 = vcmask 998400   ;;  %vm578_vm10 = vcmask 1044480  }
  0x58   : > { %s4106_s17 = smov 100   ;;  %s4107_s18 = smov 99   ;;  %v242_v11 = vsel %vm234_vm0, %v232_v7, 0.0  ;;  %v250_v12 = vrot.slane %v249_v9, 4  ;;  %vm494_vm11 = vcmask 990208   ;;  %vm532_vm12 = vcmask 982016  }
  0x59   : > { %s4108_s23 = smov 98   ;;  %s4109_s24 = smov 97   ;;  %v237_v13 = vadd.f32 %v236_v10, %v235_v8  ;;  %v243_v14 = vrot.slane %v242_v11, 4  ;;  %vm582_vm13 = vcmask 1045504   ;;  %vm615_vm14 = vcmask 850944  }
  0x5a   : > { %s4110_s25 = smov 96   ;;  %s4111_s4 = smov 80   ;;  %v251_v15 = vadd.f32 %v250_v12, %v249_v9  ;;  %vm586_vm15 = vcmask 1046528  }
  0x5b   : > { %337 = vrot.lane.b32.xlu1 %v4332_v1, %s4096_s5  ;;  %335 = vrot.lane.b32.xlu0 %v4327_v0, %s4096_s5  ;;  %s4112_s27 = smov 79   ;;  %s4113_s22 = smov 78   ;;  %v238_v16 = vrot.slane %v237_v13, 2  ;;  %v244_v17 = vadd.f32 %v243_v14, %v242_v11 }
  0x5c   : > { %s4114_s3 = smov 77   ;;  %s4115_s5 = smov 76   ;;  %v252_v18 = vrot.slane %v251_v15, 2 }
  0x5d   : > { %v239_v19 = vadd.f32 %v238_v16, %v237_v13  ;;  %v245_v20 = vrot.slane %v244_v17, 2  ;;  %p215_p7 = scmp.lt.s32.totalorder %s4082_s12, 1 }
  0x5e   : > { %v253_v23 = vadd.f32 %v252_v18, %v251_v15 }
  0x5f   : > { %375 = vrot.lane.b32.xlu1 %v4332_v1, %s4097_s19  ;;  %373 = vrot.lane.b32.xlu0 %v4327_v0, %s4097_s19  ;;  %s4116_s19 = smov 75   ;;  %v240_v24 = vrot.slane %v239_v19, 1  ;;  %v246_v25 = vadd.f32 %v245_v20, %v244_v17  ;;  %s5726_s12 = smov (!%p215_p7, %s4082_s12), 1 }
  0x60   : > { %v254_v28 = vrot.slane %v253_v23, 1 }
  0x61   : > { %v4413_v33 = vadd.f32 %v240_v24, %v239_v19  ;;  %v247_v34 = vrot.slane %v246_v25, 1 }
  0x62   : > { %v4424_v46 = vadd.f32 %v254_v28, %v253_v23 }
  0x63   : > { %413 = vrot.lane.b32.xlu1 %v4332_v1, %s4098_s26  ;;  %411 = vrot.lane.b32.xlu0 %v4327_v0, %s4098_s26  ;;  %s4117_s26 = smov 74   ;;  %v4429_v51 = vadd.f32 %v247_v34, %v246_v25 }
  0x67   : > { %451 = vrot.lane.b32.xlu1 %v4332_v1, %s4099_s30  ;;  %449 = vrot.lane.b32.xlu0 %v4327_v0, %s4099_s30  ;;  %s4118_s30 = smov 73  }
  0x6b   : > { %489 = vrot.lane.b32.xlu1 %v4332_v1, %s4100_s6  ;;  %487 = vrot.lane.b32.xlu0 %v4327_v0, %s4100_s6  ;;  %s4119_s6 = smov 72  }
  0x6f   : > { %527 = vrot.lane.b32.xlu1 %v4332_v1, %s4101_s7  ;;  %525 = vrot.lane.b32.xlu0 %v4327_v0, %s4101_s7  ;;  %s4120_s7 = smov 56  }
  0x73   : > { %610 = vrot.lane.b32.xlu1 %v4332_v1, %s4102_s8  ;;  %608 = vrot.lane.b32.xlu0 %v4327_v0, %s4102_s8 }
  0x77   : > { %648 = vrot.lane.b32.xlu1 %v4332_v1, %s4103_s9  ;;  %646 = vrot.lane.b32.xlu0 %v4327_v0, %s4103_s9  ;;  %s4121_s9 = smov 55  }
  0x7b   : > { %686 = vrot.lane.b32.xlu1 %v4332_v1, %s4104_s21  ;;  %684 = vrot.lane.b32.xlu0 %v4327_v0, %s4104_s21  ;;  %s4122_s21 = smov 54  }
  0x7f   : > { %724 = vrot.lane.b32.xlu1 %v4332_v1, %s4105_s15  ;;  %722 = vrot.lane.b32.xlu0 %v4327_v0, %s4105_s15  ;;  %s4123_s15 = smov 53  }
  0x83   : > { %762 = vrot.lane.b32.xlu1 %v4332_v1, %s4106_s17  ;;  %760 = vrot.lane.b32.xlu0 %v4327_v0, %s4106_s17  ;;  %s4124_s17 = smov 52  }
  0x87   : > { %800 = vrot.lane.b32.xlu1 %v4332_v1, %s4107_s18  ;;  %798 = vrot.lane.b32.xlu0 %v4327_v0, %s4107_s18  ;;  %s4125_s18 = smov 51  }
  0x8b   : > { %838 = vrot.lane.b32.xlu1 %v4332_v1, %s4108_s23  ;;  %836 = vrot.lane.b32.xlu0 %v4327_v0, %s4108_s23  ;;  %s4126_s23 = smov 50  }
  0x8f   : > { %876 = vrot.lane.b32.xlu1 %v4332_v1, %s4109_s24  ;;  %874 = vrot.lane.b32.xlu0 %v4327_v0, %s4109_s24  ;;  %s4127_s24 = smov 49  }
  0x93   : > { %914 = vrot.lane.b32.xlu1 %v4332_v1, %s4110_s25  ;;  %912 = vrot.lane.b32.xlu0 %v4327_v0, %s4110_s25  ;;  %s4128_s25 = smov 48  }
  0x97   : > { %992 = vrot.lane.b32.xlu1 %v4332_v1, %s4111_s4  ;;  %990 = vrot.lane.b32.xlu0 %v4327_v0, %s4111_s4 }
  0x9b   : > { %1030 = vrot.lane.b32.xlu1 %v4332_v1, %s4112_s27  ;;  %1028 = vrot.lane.b32.xlu0 %v4327_v0, %s4112_s27  ;;  %s4129_s27 = smov 32  }
  0x9f   : > { %1068 = vrot.lane.b32.xlu1 %v4332_v1, %s4113_s22  ;;  %1066 = vrot.lane.b32.xlu0 %v4327_v0, %s4113_s22  ;;  %s4130_s22 = smov 31  }
  0xa3   : > { %1106 = vrot.lane.b32.xlu1 %v4332_v1, %s4114_s3  ;;  %1104 = vrot.lane.b32.xlu0 %v4327_v0, %s4114_s3  ;;  %s4131_s3 = smov 30  }
  0xa7   : > { %1144 = vrot.lane.b32.xlu1 %v4332_v1, %s4115_s5  ;;  %1142 = vrot.lane.b32.xlu0 %v4327_v0, %s4115_s5  ;;  %s4132_s5 = smov 29  }
  0xab   : > { %1182 = vrot.lane.b32.xlu1 %v4332_v1, %s4116_s19  ;;  %1180 = vrot.lane.b32.xlu0 %v4327_v0, %s4116_s19  ;;  %s4133_s19 = smov 28  }
  0xaf   : > { %1220 = vrot.lane.b32.xlu1 %v4332_v1, %s4117_s26  ;;  %1218 = vrot.lane.b32.xlu0 %v4327_v0, %s4117_s26  ;;  %s4134_s26 = smov 27  }
  0xb3   : > { %1258 = vrot.lane.b32.xlu1 %v4332_v1, %s4118_s30  ;;  %1256 = vrot.lane.b32.xlu0 %v4327_v0, %s4118_s30  ;;  %s4135_s30 = smov 26  }
  0xb7   : > { %1296 = vrot.lane.b32.xlu1 %v4332_v1, %s4119_s6  ;;  %1294 = vrot.lane.b32.xlu0 %v4327_v0, %s4119_s6  ;;  %s4136_s6 = smov 25  }
  0xbb   : > { %1374 = vrot.lane.b32.xlu1 %v4332_v1, %s4120_s7  ;;  %1372 = vrot.lane.b32.xlu0 %v4327_v0, %s4120_s7 }
  0xbf   : > { %1412 = vrot.lane.b32.xlu1 %v4332_v1, %s4121_s9  ;;  %1410 = vrot.lane.b32.xlu0 %v4327_v0, %s4121_s9  ;;  %s4137_s9 = smov 24  }
  0xc3   : > { %1450 = vrot.lane.b32.xlu1 %v4332_v1, %s4122_s21  ;;  %1448 = vrot.lane.b32.xlu0 %v4327_v0, %s4122_s21  ;;  %s4138_s21 = smov 8  }
  0xc5   : > { %v298_v21 = vpop.permute.xlu1 %297  ;;  %v260_v22 = vpop.permute.xlu0 %259 }
  0xc6   : > { %v301_v29 = vrot.slane %v298_v21, 4  ;;  %v263_v30 = vrot.slane %v260_v22, 4 }
  0xc7   : > { %1488 = vrot.lane.b32.xlu1 %v4332_v1, %s4123_s15  ;;  %1486 = vrot.lane.b32.xlu0 %v4327_v0, %s4123_s15  ;;  %s3830_s15 = smul.u32 432, %s5726_s12  ;;  %s4139_s12 = smov 7  }
  0xc9   : > { %v300_v26 = vpop.permute.xlu1 %299  ;;  %v262_v27 = vpop.permute.xlu0 %261 }
  0xca   : > { %v302_v31 = vrot.slane %v300_v26, 4  ;;  %v264_v32 = vrot.slane %v262_v27, 4 }
  0xcb   : > { %1526 = vrot.lane.b32.xlu1 %v4332_v1, %s4124_s17  ;;  %1524 = vrot.lane.b32.xlu0 %v4327_v0, %s4124_s17  ;;  %s4154_s17 = smov 63  }
  0xcc   : > { %v303_v35 = vsel %vm234_vm0, %v301_v29, %v302_v31  ;;  %v306_v36 = vsel %vm304_vm1, %v300_v26, %v302_v31  ;;  %v265_v37 = vsel %vm234_vm0, %v263_v30, %v264_v32  ;;  %v268_v38 = vsel %vm266_vm2, %v262_v27, %v264_v32 }
  0xcd   : > { %v305_v39 = vsel %vm304_vm1, %v298_v21, %v303_v35  ;;  %v310_v40 = vmul.f32 %v306_v36, %v4388_v3  ;;  %v267_v41 = vsel %vm266_vm2, %v260_v22, %v265_v37  ;;  %v272_v42 = vmul.f32 %v268_v38, %v4388_v3  ;;  %v338_v43 = vpop.permute.xlu1 %337  ;;  %v336_v44 = vpop.permute.xlu0 %335 }
  0xce   : > { %v309_v45 = vmul.f32 %v305_v39, %v4383_v2  ;;  %v271_v47 = vmul.f32 %v267_v41, %v4383_v2  ;;  %v340_v48 = vrot.slane %v338_v43, 4  ;;  %v339_v52 = vrot.slane %v336_v44, 4 }
  0xcf   : > { %v328_v49 = vsel %vm234_vm0, %v310_v40, 0.0  ;;  %v290_v50 = vsel %vm234_vm0, %v272_v42, 0.0  ;;  %1564 = vrot.lane.b32.xlu1 %v4332_v1, %s4125_s18  ;;  %1562 = vrot.lane.b32.xlu0 %v4327_v0, %s4125_s18  ;;  %vm653_vm1 = vcmask 842752   ;;  %vm691_vm2 = vcmask 834560   ;;  %s4155_s18 = smov 86  }
  0xd0   : > { %v312_v53 = vcombine.high %v309_v45, %v309_v45  ;;  %v314_v54 = vsel %vm234_vm0, %v309_v45, 0.0  ;;  %v329_v55 = vrot.slane %v328_v49, 4  ;;  %v274_v56 = vcombine.high %v271_v47, %v271_v47 }
  0xd1   : > { %v315_v57 = vrot.slane %v314_v54, 4  ;;  %v276_v58 = vsel %vm234_vm0, %v271_v47, 0.0  ;;  %v291_v59 = vrot.slane %v290_v50, 4  ;;  %v344_v60 = vsel %vm342_vm3, %v338_v43, %v340_v48  ;;  %v376_v29 = vpop.permute.xlu1 %375  ;;  %v374_v30 = vpop.permute.xlu0 %373 }
  0xd2   : > { %v321_v61 = vsel %vm234_vm0, %v312_v53, 0.0  ;;  %v330_v62 = vadd.f32 %v329_v55, %v328_v49  ;;  %v277_v63 = vrot.slane %v276_v58, 4  ;;  %v283_v4 = vsel %vm234_vm0, %v274_v56, 0.0 }
  0xd3   : > { %v316_v5 = vadd.f32 %v315_v57, %v314_v54  ;;  %v322_v6 = vrot.slane %v321_v61, 4  ;;  %v284_v7 = vrot.slane %v283_v4, 4  ;;  %v292_v8 = vadd.f32 %v291_v59, %v290_v50  ;;  %1602 = vrot.lane.b32.xlu1 %v4332_v1, %s4126_s23  ;;  %1600 = vrot.lane.b32.xlu0 %v4327_v0, %s4126_s23  ;;  %s4569_s23 = scalar_lea.vmem %s5709_s2, %s3830_s15  ;;  %s4152_s15 = smov 87  }
  0xd4   : > { %v331_v9 = vrot.slane %v330_v62, 2  ;;  %v278_v10 = vadd.f32 %v277_v63, %v276_v58  ;;  %v348_v11 = vmul.f32 %v344_v60, %v4388_v3  ;;  %v341_v12 = vsel %vm234_vm0, %v339_v52, %v340_v48 }
  0xd5   : > { %v317_v13 = vrot.slane %v316_v5, 2  ;;  %v323_v14 = vadd.f32 %v322_v6, %v321_v61  ;;  %v285_v15 = vadd.f32 %v284_v7, %v283_v4  ;;  %v293_v16 = vrot.slane %v292_v8, 2  ;;  %v414_v58 = vpop.permute.xlu1 %413  ;;  %v412_v59 = vpop.permute.xlu0 %411 }
  0xd6   : > { %v332_v17 = vadd.f32 %v331_v9, %v330_v62  ;;  %v279_v18 = vrot.slane %v278_v10, 2  ;;  %v366_v19 = vsel %vm234_vm0, %v348_v11, 0.0  ;;  %v343_v20 = vsel %vm342_vm3, %v336_v44, %v341_v12 }
  0xd7   : > { %v318_v21 = vadd.f32 %v317_v13, %v316_v5  ;;  %v324_v22 = vrot.slane %v323_v14, 2  ;;  %v286_v23 = vrot.slane %v285_v15, 2  ;;  %v294_v24 = vadd.f32 %v293_v16, %v292_v8  ;;  %1640 = vrot.lane.b32.xlu1 %v4332_v1, %s4127_s24  ;;  %1638 = vrot.lane.b32.xlu0 %v4327_v0, %s4127_s24  ;;  %s4140_s24 = smov 6  }
  0xd8   : > { %v333_v25 = vrot.slane %v332_v17, 1  ;;  %v280_v26 = vadd.f32 %v279_v18, %v278_v10  ;;  %v367_v27 = vrot.slane %v366_v19, 4  ;;  %v347_v28 = vmul.f32 %v343_v20, %v4383_v2 }
  0xd9   : > { %v319_v31 = vrot.slane %v318_v21, 1  ;;  %v325_v32 = vadd.f32 %v324_v22, %v323_v14  ;;  %v287_v34 = vadd.f32 %v286_v23, %v285_v15  ;;  %v295_v35 = vrot.slane %v294_v24, 1 }
  0xda   : > { %v334_v36 = vadd.f32 %v333_v25, %v332_v17  ;;  %v281_v37 = vrot.slane %v280_v26, 1  ;;  %v368_v38 = vadd.f32 %v367_v27, %v366_v19  ;;  %v350_v39 = vcombine.high %v347_v28, %v347_v28  ;;  %v452_v25 = vpop.permute.xlu1 %451 }
  0xdb   : > { %v320_v40 = vadd.f32 %v319_v31, %v318_v21  ;;  %v326_v41 = vrot.slane %v325_v32, 1  ;;  %v288_v42 = vrot.slane %v287_v34, 1  ;;  %v296_v43 = vadd.f32 %v295_v35, %v294_v24  ;;  %1678 = vrot.lane.b32.xlu1 %v4332_v1, %s4128_s25  ;;  %1676 = vrot.lane.b32.xlu0 %v4327_v0, %s4128_s25  ;;  %s4141_s25 = smov 5  }
  0xdc   : > { %v282_v44 = vadd.f32 %v281_v37, %v280_v26  ;;  %v369_v45 = vrot.slane %v368_v38, 2  ;;  %v352_v47 = vsel %vm234_vm0, %v347_v28, 0.0  ;;  %v359_v48 = vsel %vm234_vm0, %v350_v39, 0.0 }
  0xdd   : > { %v327_v49 = vadd.f32 %v326_v41, %v325_v32  ;;  %v289_v50 = vadd.f32 %v288_v42, %v287_v34  ;;  %v566_v52 = vsel %vm563_vm4, %v4424_v46, %v296_v43  ;;  %v353_v53 = vrot.slane %v352_v47, 4  ;;  %v450_v43 = vpop.permute.xlu0 %449 }
  0xde   : > { %v370_v54 = vadd.f32 %v369_v45, %v368_v38  ;;  %v570_v55 = vsel %vm567_vm5, %v566_v52, %v334_v36  ;;  %v360_v56 = vrot.slane %v359_v48, 4  ;;  %v564_v57 = vsel %vm563_vm4, %v4413_v33, %v282_v44 }
  0xdf   : > { %v354_v60 = vadd.f32 %v353_v53, %v352_v47  ;;  %v565_v61 = vsel %vm563_vm4, %v4429_v51, %v289_v50  ;;  %v568_v62 = vsel %vm567_vm5, %v564_v57, %v320_v40  ;;  %v378_v63 = vrot.slane %v376_v29, 4  ;;  %1756 = vrot.lane.b32.xlu1 %v4332_v1, %s4129_s27  ;;  %1754 = vrot.lane.b32.xlu0 %v4327_v0, %s4129_s27  ;;  %s4142_s27 = smov 4  }
  0xe0   : > { %v371_v46 = vrot.slane %v370_v54, 1  ;;  %v361_v4 = vadd.f32 %v360_v56, %v359_v48  ;;  %v569_v5 = vsel %vm567_vm5, %v565_v61, %v327_v49  ;;  %v377_v6 = vrot.slane %v374_v30, 4 }
  0xe1   : > { %v355_v33 = vrot.slane %v354_v60, 2  ;;  %v382_v7 = vsel %vm380_vm6, %v376_v29, %v378_v63  ;;  %v416_v8 = vrot.slane %v414_v58, 4  ;;  %v415_v9 = vrot.slane %v412_v59, 4 }
  0xe2   : > { %v372_v10 = vadd.f32 %v371_v46, %v370_v54  ;;  %v362_v51 = vrot.slane %v361_v4, 2  ;;  %v386_v11 = vmul.f32 %v382_v7, %v4388_v3  ;;  %v379_v12 = vsel %vm234_vm0, %v377_v6, %v378_v63  ;;  %v4487_v54 = vpop.permute.xlu1 %489 }
  0xe3   : > { %v356_v13 = vadd.f32 %v355_v33, %v354_v60  ;;  %v381_v14 = vsel %vm380_vm6, %v374_v30, %v379_v12  ;;  %v420_v15 = vsel %vm418_vm7, %v414_v58, %v416_v8  ;;  %v417_v16 = vsel %vm234_vm0, %v415_v9, %v416_v8  ;;  %1794 = vrot.lane.b32.xlu1 %v4332_v1, %s4130_s22 }
  0xe4   : > { %v4470_v17 = vsel %vm571_vm8, %v570_v55, %v372_v10  ;;  %v363_v18 = vadd.f32 %v362_v51, %v361_v4  ;;  %v404_v19 = vsel %vm234_vm0, %v386_v11, 0.0  ;;  %v385_v20 = vmul.f32 %v381_v14, %v4383_v2  ;;  %1792 = vrot.lane.b32.xlu0 %v4327_v0, %s4130_s22  ;;  %s4143_s22 = smov 3  }
  0xe5   : > { %v357_v21 = vrot.slane %v356_v13, 1  ;;  %v405_v22 = vrot.slane %v404_v19, 4  ;;  %v424_v23 = vmul.f32 %v420_v15, %v4388_v3  ;;  %v419_v24 = vsel %vm418_vm7, %v412_v59, %v417_v16  ;;  %v488_v16 = vpop.permute.xlu0 %487 }
  0xe6   : > { %v364_v26 = vrot.slane %v363_v18, 1  ;;  %v388_v27 = vcombine.high %v385_v20, %v385_v20  ;;  %v390_v28 = vsel %vm234_vm0, %v385_v20, 0.0  ;;  %v423_v29 = vmul.f32 %v419_v24, %v4383_v2 }
  0xe7   : > { %v358_v30 = vadd.f32 %v357_v21, %v356_v13  ;;  %v406_v31 = vadd.f32 %v405_v22, %v404_v19  ;;  %v391_v32 = vrot.slane %v390_v28, 4  ;;  %v442_v34 = vsel %vm234_vm0, %v424_v23, 0.0  ;;  %1832 = vrot.lane.b32.xlu1 %v4332_v1, %s4131_s3 }
  0xe8   : > { %v365_v35 = vadd.f32 %v364_v26, %v363_v18  ;;  %v397_v36 = vsel %vm234_vm0, %v388_v27, 0.0  ;;  %v443_v37 = vrot.slane %v442_v34, 4  ;;  %v426_v38 = vcombine.high %v423_v29, %v423_v29  ;;  %1830 = vrot.lane.b32.xlu0 %v4327_v0, %s4131_s3  ;;  %v528_v18 = vpop.permute.xlu1 %527  ;;  %s4144_s3 = smov 2  }
  0xe9   : > { %v572_v39 = vsel %vm571_vm8, %v568_v62, %v358_v30  ;;  %v407_v40 = vrot.slane %v406_v31, 2  ;;  %v392_v41 = vadd.f32 %v391_v32, %v390_v28  ;;  %v398_v42 = vrot.slane %v397_v36, 4 }
  0xea   : > { %v573_v44 = vsel %vm571_vm8, %v569_v5, %v365_v35  ;;  %v444_v45 = vadd.f32 %v443_v37, %v442_v34  ;;  %v428_v47 = vsel %vm234_vm0, %v423_v29, 0.0  ;;  %v435_v48 = vsel %vm234_vm0, %v426_v38, 0.0 }
  0xeb   : > { %v408_v49 = vadd.f32 %v407_v40, %v406_v31  ;;  %v393_v50 = vrot.slane %v392_v41, 2  ;;  %v399_v52 = vadd.f32 %v398_v42, %v397_v36  ;;  %v429_v53 = vrot.slane %v428_v47, 4  ;;  %1870 = vrot.lane.b32.xlu1 %v4332_v1, %s4132_s5 }
  0xec   : > { %v445_v55 = vrot.slane %v444_v45, 2  ;;  %v436_v56 = vrot.slane %v435_v48, 4  ;;  %v454_v57 = vrot.slane %v452_v25, 4  ;;  %v453_v58 = vrot.slane %v450_v43, 4  ;;  %1868 = vrot.lane.b32.xlu0 %v4327_v0, %s4132_s5  ;;  %s4145_s5 = smov 1  }
  0xed   : > { %v409_v59 = vrot.slane %v408_v49, 1  ;;  %v394_v60 = vadd.f32 %v393_v50, %v392_v41  ;;  %v400_v61 = vrot.slane %v399_v52, 2  ;;  %v430_v62 = vadd.f32 %v429_v53, %v428_v47 }
  0xee   : > { %v446_v63 = vadd.f32 %v445_v55, %v444_v45  ;;  %v437_v46 = vadd.f32 %v436_v56, %v435_v48  ;;  %v458_v4 = vsel %vm456_vm9, %v452_v25, %v454_v57  ;;  %v455_v5 = vsel %vm234_vm0, %v453_v58, %v454_v57  ;;  %v4510_v45 = vpop.permute.xlu1 %610 }
  0xef   : > { %v410_v6 = vadd.f32 %v409_v59, %v408_v49  ;;  %v395_v33 = vrot.slane %v394_v60, 1  ;;  %v401_v7 = vadd.f32 %v400_v61, %v399_v52  ;;  %v431_v8 = vrot.slane %v430_v62, 2  ;;  %1908 = vrot.lane.b32.xlu1 %v4332_v1, %s4133_s19 }
  0xf0   : > { %v447_v9 = vrot.slane %v446_v63, 1  ;;  %v438_v10 = vrot.slane %v437_v46, 2  ;;  %v462_v51 = vmul.f32 %v458_v4, %v4388_v3  ;;  %v457_v11 = vsel %vm456_vm9, %v450_v43, %v455_v5  ;;  %1906 = vrot.lane.b32.xlu0 %v4327_v0, %s4133_s19  ;;  %v526_v43 = vpop.permute.xlu0 %525  ;;  %s4146_s19 = smov 112  }
  0xf1   : > { %v577_v12 = vsel %vm234_vm0, %v4470_v17, %v410_v6  ;;  %v396_v13 = vadd.f32 %v395_v33, %v394_v60  ;;  %v402_v14 = vrot.slane %v401_v7, 1  ;;  %v432_v15 = vadd.f32 %v431_v8, %v430_v62 }
  0xf2   : > { %v448_v19 = vadd.f32 %v447_v9, %v446_v63  ;;  %v439_v20 = vadd.f32 %v438_v10, %v437_v46  ;;  %v480_v21 = vsel %vm234_vm0, %v462_v51, 0.0  ;;  %v461_v22 = vmul.f32 %v457_v11, %v4383_v2 }
  0xf3   : > { %v403_v23 = vadd.f32 %v402_v14, %v401_v7  ;;  %v575_v24 = vsel %vm234_vm0, %v572_v39, %v396_v13  ;;  %v433_v25 = vrot.slane %v432_v15, 1  ;;  %v481_v26 = vrot.slane %v480_v21, 4  ;;  %1946 = vrot.lane.b32.xlu1 %v4332_v1, %s4134_s26 }
  0xf4   : > { %v581_v17 = vsel %vm578_vm10, %v577_v12, %v448_v19  ;;  %v440_v27 = vrot.slane %v439_v20, 1  ;;  %v464_v28 = vcombine.high %v461_v22, %v461_v22  ;;  %v466_v29 = vsel %vm234_vm0, %v461_v22, 0.0  ;;  %1944 = vrot.lane.b32.xlu0 %v4327_v0, %s4134_s26  ;;  %s4147_s26 = smov 111  }
  0xf5   : > { %v576_v30 = vsel %vm234_vm0, %v573_v44, %v403_v23  ;;  %v434_v31 = vadd.f32 %v433_v25, %v432_v15  ;;  %v482_v32 = vadd.f32 %v481_v26, %v480_v21  ;;  %v467_v34 = vrot.slane %v466_v29, 4  ;;  %v4547_v25 = vld [vmem:[%s4320_s29] sm:$0xff] }
  0xf6   : > { %v441_v35 = vadd.f32 %v440_v27, %v439_v20  ;;  %v473_v36 = vsel %vm234_vm0, %v464_v28, 0.0  ;;  %v492_v37 = vrot.slane %v4487_v54, 4  ;;  %v491_v38 = vrot.slane %v488_v16, 4  ;;  %v4543_v20 = vld [vmem:[%s4320_s29 + $0x8] sm:$0xff]  ;;  %v609_v28 = vpop.permute.xlu0 %608 }
  0xf7   : > { %v579_v39 = vsel %vm578_vm10, %v575_v24, %v434_v31  ;;  %v483_v40 = vrot.slane %v482_v32, 2  ;;  %v468_v41 = vadd.f32 %v467_v34, %v466_v29  ;;  %v474_v42 = vrot.slane %v473_v36, 4  ;;  %1984 = vrot.lane.b32.xlu1 %v4332_v1, %s4135_s30 }
  0xf8   : > { %v580_v44 = vsel %vm578_vm10, %v576_v30, %v441_v35  ;;  %v496_v47 = vsel %vm494_vm11, %v4487_v54, %v492_v37  ;;  %v493_v48 = vsel %vm234_vm0, %v491_v38, %v492_v37  ;;  %v530_v49 = vrot.slane %v528_v18, 4  ;;  %1982 = vrot.lane.b32.xlu0 %v4327_v0, %s4135_s30  ;;  %s4148_s30 = smov 110  }
  0xf9   : > { %v484_v50 = vadd.f32 %v483_v40, %v482_v32  ;;  %v469_v52 = vrot.slane %v468_v41, 2  ;;  %v475_v53 = vadd.f32 %v474_v42, %v473_v36  ;;  %v500_v55 = vmul.f32 %v496_v47, %v4388_v3  ;;  %v4552_v32 = vld [vmem:[%s4314_s28 + $0x8] sm:$0xf] }
  0xfa   : > { %v495_v56 = vsel %vm494_vm11, %v488_v16, %v493_v48  ;;  %v534_v57 = vsel %vm532_vm12, %v528_v18, %v530_v49  ;;  %v529_v58 = vrot.slane %v526_v43, 4  ;;  %v613_v59 = vrot.slane %v4510_v45, 4  ;;  %v4563_v48 = vpop.permute.xlu1 %648 }
  0xfb   : > { %v485_v54 = vrot.slane %v484_v50, 1  ;;  %v470_v60 = vadd.f32 %v469_v52, %v468_v41  ;;  %v476_v61 = vrot.slane %v475_v53, 2  ;;  %v518_v62 = vsel %vm234_vm0, %v500_v55, 0.0  ;;  %2022 = vrot.lane.b32.xlu1 %v4332_v1, %s4136_s6 }
  0xfc   : > { %v519_v63 = vrot.slane %v518_v62, 4  ;;  %v499_v46 = vmul.f32 %v495_v56, %v4383_v2  ;;  %v538_v4 = vmul.f32 %v534_v57, %v4388_v3  ;;  %v531_v5 = vsel %vm234_vm0, %v529_v58, %v530_v49  ;;  %2020 = vrot.lane.b32.xlu0 %v4327_v0, %s4136_s6  ;;  %s4149_s6 = smov 109  }
  0xfd   : > { %v486_v6 = vadd.f32 %v485_v54, %v484_v50  ;;  %v471_v33 = vrot.slane %v470_v60, 1  ;;  %v477_v7 = vadd.f32 %v476_v61, %v475_v53  ;;  %v533_v8 = vsel %vm532_vm12, %v526_v43, %v531_v5  ;;  %v647_v54 = vpop.permute.xlu0 %646 }
  0xfe   : > { %v520_v9 = vadd.f32 %v519_v63, %v518_v62  ;;  %v502_v10 = vcombine.high %v499_v46, %v499_v46  ;;  %v504_v51 = vsel %vm234_vm0, %v499_v46, 0.0  ;;  %v556_v11 = vsel %vm234_vm0, %v538_v4, 0.0 }
  0xff   : > { %v585_v12 = vsel %vm582_vm13, %v581_v17, %v486_v6  ;;  %v472_v3 = vadd.f32 %v471_v33, %v470_v60  ;;  %v478_v13 = vrot.slane %v477_v7, 1  ;;  %v505_v14 = vrot.slane %v504_v51, 4  ;;  %2060 = vrot.lane.b32.xlu1 %v4332_v1, %s4137_s9 }
 0x100   : > { %v521_v15 = vrot.slane %v520_v9, 2  ;;  %v511_v16 = vsel %vm234_vm0, %v502_v10, 0.0  ;;  %v557_v18 = vrot.slane %v556_v11, 4  ;;  %v537_v19 = vmul.f32 %v533_v8, %v4383_v2  ;;  %2058 = vrot.lane.b32.xlu0 %v4327_v0, %s4137_s9  ;;  %s4150_s9 = smov 108  }
 0x101   : > { %v479_v21 = vadd.f32 %v478_v13, %v477_v7  ;;  %v583_v22 = vsel %vm582_vm13, %v579_v39, %v472_v3  ;;  %v506_v23 = vadd.f32 %v505_v14, %v504_v51  ;;  %v512_v24 = vrot.slane %v511_v16, 4 }
 0x102   : > { %v522_v1 = vadd.f32 %v521_v15, %v520_v9  ;;  %v558_v26 = vadd.f32 %v557_v18, %v556_v11  ;;  %v540_v17 = vcombine.high %v537_v19, %v537_v19  ;;  %v542_v27 = vsel %vm234_vm0, %v537_v19, 0.0  ;;  %v687_v11 = vpop.permute.xlu1 %686 }
 0x103   : > { %v584_v29 = vsel %vm582_vm13, %v580_v44, %v479_v21  ;;  %v507_v0 = vrot.slane %v506_v23, 2  ;;  %v513_v30 = vadd.f32 %v512_v24, %v511_v16  ;;  %v543_v31 = vrot.slane %v542_v27, 4  ;;  %2138 = vrot.lane.b32.xlu1 %v4543_v20, %s4138_s21  ;;  %v685_v21 = vpop.permute.xlu0 %684 }
 0x104   : > { %v523_v34 = vrot.slane %v522_v1, 1  ;;  %v559_v35 = vrot.slane %v558_v26, 2  ;;  %v549_v36 = vsel %vm234_vm0, %v540_v17, 0.0  ;;  %v617_v37 = vsel %vm615_vm14, %v4510_v45, %v613_v59  ;;  %2136 = vrot.lane.b32.xlu0 %v4547_v25, %s4138_s21  ;;  %s4151_s21 = smov 88  }
 0x105   : > { %v508_v38 = vadd.f32 %v507_v0, %v506_v23  ;;  %v514_v39 = vrot.slane %v513_v30, 2  ;;  %v544_v40 = vadd.f32 %v543_v31, %v542_v27  ;;  %v550_v41 = vrot.slane %v549_v36, 4 }
 0x106   : > { %v524_v42 = vadd.f32 %v523_v34, %v522_v1  ;;  %v560_v43 = vadd.f32 %v559_v35, %v558_v26  ;;  %v621_v44 = vmul.f32 %v617_v37, %v4552_v32  ;;  %v612_v47 = vrot.slane %v609_v28, 4 }
 0x107   : > { %v509_v49 = vrot.slane %v508_v38, 1  ;;  %v515_v50 = vadd.f32 %v514_v39, %v513_v30  ;;  %v545_v52 = vrot.slane %v544_v40, 2  ;;  %v551_v53 = vadd.f32 %v550_v41, %v549_v36  ;;  %2176 = vrot.lane.b32.xlu1 %v4543_v20, %s4139_s12 }
 0x108   : > { %v589_v55 = vsel %vm586_vm15, %v585_v12, %v524_v42  ;;  %v561_v56 = vrot.slane %v560_v43, 1  ;;  %v639_v57 = vsel %vm234_vm0, %v621_v44, 0.0  ;;  %v614_v58 = vsel %vm234_vm0, %v612_v47, %v613_v59  ;;  %2174 = vrot.lane.b32.xlu0 %v4547_v25, %s4139_s12  ;;  %s4153_s12 = smov 64  }
 0x109   : > { %v592_v60 = vmul.f32 0.25, %v589_v55  ;;  %v510_v61 = vadd.f32 %v509_v49, %v508_v38  ;;  %v516_v62 = vrot.slane %v515_v50, 1  ;;  %v546_v63 = vadd.f32 %v545_v52, %v544_v40  ;;  %v4596_v38 = vpop.permute.xlu1 %724 }
 0x10a   : > { %v562_v46 = vadd.f32 %v561_v56, %v560_v43  ;;  %v552_v4 = vrot.slane %v551_v53, 2  ;;  %v640_v5 = vrot.slane %v639_v57, 4  ;;  %v616_v6 = vsel %vm615_vm14, %v609_v28, %v614_v58 }
 0x10b   : > { %598 = vst [vmem:[%s4569_s23 + $0x10] sm:$0xff] %v592_v60  ;;  %v517_v33 = vadd.f32 %v516_v62, %v515_v50  ;;  %v587_v7 = vsel %vm586_vm15, %v583_v22, %v510_v61  ;;  %v547_v45 = vrot.slane %v546_v63, 1  ;;  %v620_v59 = vmul.f32 %v616_v6, %v4383_v2  ;;  %2214 = vrot.lane.b32.xlu1 %v4543_v20, %s4140_s24 }
 0x10c   : > { %v590_v8 = vmul.f32 0.25, %v587_v7  ;;  %v595_v9 = vmul.f32 0.25, %v562_v46  ;;  %v553_v10 = vadd.f32 %v552_v4, %v551_v53  ;;  %v641_v51 = vadd.f32 %v640_v5, %v639_v57  ;;  %2212 = vrot.lane.b32.xlu0 %v4547_v25, %s4140_s24  ;;  %s4156_s24 = smov 62  }
 0x10d   : > { %vm729_vm3 = vcmask 826368   ;;  %v588_v12 = vsel %vm586_vm15, %v584_v29, %v517_v33  ;;  %v548_v3 = vadd.f32 %v547_v45, %v546_v63  ;;  %v623_v13 = vcombine.high %v620_v59, %v620_v59 }
 0x10e   : > { %v625_v14 = vsel %vm234_vm0, %v620_v59, 0.0  ;;  %v591_v15 = vmul.f32 0.25, %v588_v12  ;;  %596 = vst [vmem:[%s4569_s23] sm:$0xff] %v590_v8  ;;  %601 = vst [vmem:[%s4569_s23 + $0x28] sm:$0x1] %v595_v9  ;;  %v554_v16 = vrot.slane %v553_v10, 1  ;;  %v642_v18 = vrot.slane %v641_v51, 2 }
 0x10f   : > { %v626_v19 = vrot.slane %v625_v14, 4  ;;  %v593_v22 = vmul.f32 0.25, %v548_v3  ;;  %v632_v23 = vsel %vm234_vm0, %v623_v13, 0.0  ;;  %v651_v24 = vrot.slane %v4563_v48, 4  ;;  %2252 = vrot.lane.b32.xlu1 %v4543_v20, %s4141_s25  ;;  %v4627_v13 = vpop.permute.xlu1 %762 }
 0x110   : > { %v650_v1 = vrot.slane %v647_v54, 4  ;;  %597 = vst [vmem:[%s4569_s23 + $0x8] sm:$0xff] %v591_v15  ;;  %v555_v26 = vadd.f32 %v554_v16, %v553_v10  ;;  %v643_v17 = vadd.f32 %v642_v18, %v641_v51  ;;  %v633_v28 = vrot.slane %v632_v23, 4  ;;  %2250 = vrot.lane.b32.xlu0 %v4547_v25, %s4141_s25  ;;  %v723_v10 = vpop.permute.xlu0 %722  ;;  %s4157_s25 = smov 85  }
 0x111   : > { %v627_v27 = vadd.f32 %v626_v19, %v625_v14  ;;  %599 = vst [vmem:[%s4569_s23 + $0x18] sm:$0x1] %v593_v22  ;;  %v655_v29 = vsel %vm653_vm1, %v4563_v48, %v651_v24  ;;  %v689_v30 = vrot.slane %v687_v11, 4  ;;  %v688_v31 = vrot.slane %v685_v21, 4 }
 0x112   : > { %v652_v0 = vsel %vm234_vm0, %v650_v1, %v651_v24  ;;  %v594_v34 = vmul.f32 0.25, %v555_v26  ;;  %v644_v35 = vrot.slane %v643_v17, 1  ;;  %v634_v37 = vadd.f32 %v633_v28, %v632_v23 }
 0x113   : > { %v628_v36 = vrot.slane %v627_v27, 2  ;;  %v659_v39 = vmul.f32 %v655_v29, %v4552_v32  ;;  %v654_v40 = vsel %vm653_vm1, %v647_v54, %v652_v0  ;;  %v693_v41 = vsel %vm691_vm2, %v687_v11, %v689_v30  ;;  %2290 = vrot.lane.b32.xlu1 %v4543_v20, %s4142_s27 }
 0x114   : > { %v690_v42 = vsel %vm234_vm0, %v688_v31, %v689_v30  ;;  %600 = vst [vmem:[%s4569_s23 + $0x20] sm:$0x1] %v594_v34  ;;  %v4604_v43 = vadd.f32 %v644_v35, %v643_v17  ;;  %v635_v47 = vrot.slane %v634_v37, 2  ;;  %v658_v48 = vmul.f32 %v654_v40, %v4383_v2  ;;  %2288 = vrot.lane.b32.xlu0 %v4547_v25, %s4142_s27  ;;  %s4158_s27 = smov 61  }
 0x115   : > { %v629_v44 = vadd.f32 %v628_v36, %v627_v27  ;;  %v677_v49 = vsel %vm234_vm0, %v659_v39, 0.0  ;;  %v697_v50 = vmul.f32 %v693_v41, %v4552_v32  ;;  %v692_v52 = vsel %vm691_vm2, %v685_v21, %v690_v42  ;;  %v761_v36 = vpop.permute.xlu0 %760  ;;  %v801_v42 = vpop.permute.xlu1 %800 }
 0x116   : > { %v727_v53 = vrot.slane %v4596_v38, 4  ;;  %v636_v56 = vadd.f32 %v635_v47, %v634_v37  ;;  %v678_v57 = vrot.slane %v677_v49, 4  ;;  %v661_v58 = vcombine.high %v658_v48, %v658_v48  ;;  %v4636_v37 = vld [vmem:[%s4320_s29 + $0xc] sm:$0xff] }
 0x117   : > { %v630_v55 = vrot.slane %v629_v44, 1  ;;  %v663_v54 = vsel %vm234_vm0, %v658_v48, 0.0  ;;  %v715_v60 = vsel %vm234_vm0, %v697_v50, 0.0  ;;  %v696_v61 = vmul.f32 %v692_v52, %v4383_v2  ;;  %2328 = vrot.lane.b32.xlu1 %v4543_v20, %s4143_s22 }
 0x118   : > { %v731_v62 = vsel %vm729_vm3, %v4596_v38, %v727_v53  ;;  %v637_v46 = vrot.slane %v636_v56, 1  ;;  %v679_v4 = vadd.f32 %v678_v57, %v677_v49  ;;  %v664_v5 = vrot.slane %v663_v54, 4  ;;  %2326 = vrot.lane.b32.xlu0 %v4547_v25, %s4143_s22  ;;  %s4159_s22 = smov 84  }
 0x119   : > { %v4618_v63 = vadd.f32 %v630_v55, %v629_v44  ;;  %v670_v6 = vsel %vm234_vm0, %v661_v58, 0.0  ;;  %v716_v33 = vrot.slane %v715_v60, 4  ;;  %v699_v7 = vcombine.high %v696_v61, %v696_v61  ;;  %v4640_v44 = vld [vmem:[%s4320_s29 + $0x4] sm:$0xff] }
 0x11a   : > { %v701_v45 = vsel %vm234_vm0, %v696_v61, 0.0  ;;  %v4623_v2 = vadd.f32 %v637_v46, %v636_v56  ;;  %v680_v59 = vrot.slane %v679_v4, 2  ;;  %v665_v8 = vadd.f32 %v664_v5, %v663_v54 }
 0x11b   : > { %v671_v9 = vrot.slane %v670_v6, 4  ;;  %v717_v51 = vadd.f32 %v716_v33, %v715_v60  ;;  %v702_v11 = vrot.slane %v701_v45, 4  ;;  %v708_v12 = vsel %vm234_vm0, %v699_v7, 0.0  ;;  %2366 = vrot.lane.b32.xlu1 %v4543_v20, %s4144_s3 }
 0x11c   : > { %v735_v3 = vmul.f32 %v731_v62, %v4552_v32  ;;  %vm767_vm6 = vcmask 818176   ;;  %v681_v14 = vadd.f32 %v680_v59, %v679_v4  ;;  %v666_v15 = vrot.slane %v665_v8, 2  ;;  %2364 = vrot.lane.b32.xlu0 %v4547_v25, %s4144_s3  ;;  %s4160_s3 = smov 60  }
 0x11d   : > { %v672_v16 = vadd.f32 %v671_v9, %v670_v6  ;;  %v709_v18 = vrot.slane %v708_v12, 4  ;;  %v718_v19 = vrot.slane %v717_v51, 2  ;;  %v703_v21 = vadd.f32 %v702_v11, %v701_v45 }
 0x11e   : > { %v753_v22 = vsel %vm234_vm0, %v735_v3, 0.0  ;;  %v726_v23 = vrot.slane %v723_v10, 4  ;;  %v682_v24 = vrot.slane %v681_v14, 1  ;;  %v667_v1 = vadd.f32 %v666_v15, %v665_v8  ;;  %v4661_v8 = vpop.permute.xlu1 %838 }
 0x11f   : > { %v673_v26 = vrot.slane %v672_v16, 2  ;;  %v710_v17 = vadd.f32 %v709_v18, %v708_v12  ;;  %v719_v27 = vadd.f32 %v718_v19, %v717_v51  ;;  %v704_v28 = vrot.slane %v703_v21, 2  ;;  %2404 = vrot.lane.b32.xlu1 %v4543_v20, %s4145_s5 }
 0x120   : > { %v754_v29 = vrot.slane %v753_v22, 4  ;;  %v728_v0 = vsel %vm234_vm0, %v726_v23, %v727_v53  ;;  %v683_v30 = vadd.f32 %v682_v24, %v681_v14  ;;  %v668_v31 = vrot.slane %v667_v1, 1  ;;  %2402 = vrot.lane.b32.xlu0 %v4547_v25, %s4145_s5  ;;  %v4645_v53 = vld [vmem:[%s4314_s28] sm:$0xff]  ;;  %s4161_s5 = smov 107  }
 0x121   : > { %v674_v34 = vadd.f32 %v673_v26, %v672_v16  ;;  %v711_v35 = vrot.slane %v710_v17, 2  ;;  %v720_v38 = vrot.slane %v719_v27, 1  ;;  %v705_v39 = vadd.f32 %v704_v28, %v703_v21 }
 0x122   : > { %v755_v40 = vadd.f32 %v754_v29, %v753_v22  ;;  %v730_v41 = vsel %vm729_vm3, %v723_v10, %v728_v0  ;;  %vm805_vm7 = vcmask 809984   ;;  %v952_v20 = vsel %vm563_vm4, %v4604_v43, %v683_v30 }
 0x123   : > { %v669_v47 = vadd.f32 %v668_v31, %v667_v1  ;;  %v675_v48 = vrot.slane %v674_v34, 1  ;;  %v712_v49 = vadd.f32 %v711_v35, %v710_v17  ;;  %v721_v50 = vadd.f32 %v720_v38, %v719_v27  ;;  %2510 = vrot.lane.b32.xlu1 %v4636_v37, %s4146_s19 }
 0x124   : > { %v706_v25 = vrot.slane %v705_v39, 1  ;;  %v756_v52 = vrot.slane %v755_v40, 2  ;;  %v734_v55 = vmul.f32 %v4645_v53, %v730_v41  ;;  %v765_v43 = vrot.slane %v4627_v13, 4  ;;  %2508 = vrot.lane.b32.xlu0 %v4640_v44, %s4146_s19  ;;  %s4162_s19 = smov 83  }
 0x125   : > { %v676_v56 = vadd.f32 %v675_v48, %v674_v34  ;;  %v950_v57 = vsel %vm563_vm4, %v4618_v63, %v669_v47  ;;  %v713_v58 = vrot.slane %v712_v49, 1  ;;  %v955_v54 = vsel %vm567_vm5, %v952_v20, %v721_v50  ;;  %v799_v63 = vpop.permute.xlu0 %798 }
 0x126   : > { %v707_v60 = vadd.f32 %v706_v25, %v705_v39  ;;  %v757_v61 = vadd.f32 %v756_v52, %v755_v40  ;;  %v737_v62 = vcombine.high %v734_v55, %v734_v55  ;;  %v739_v5 = vsel %vm234_vm0, %v734_v55, 0.0 }
 0x127   : > { %v951_v46 = vsel %vm563_vm4, %v4623_v2, %v676_v56  ;;  %v714_v4 = vadd.f32 %v713_v58, %v712_v49  ;;  %v769_v6 = vsel %vm767_vm6, %v4627_v13, %v765_v43  ;;  %v740_v45 = vrot.slane %v739_v5, 4  ;;  %2548 = vrot.lane.b32.xlu1 %v4636_v37, %s4147_s26 }
 0x128   : > { %v953_v33 = vsel %vm567_vm5, %v950_v57, %v707_v60  ;;  %v758_v7 = vrot.slane %v757_v61, 1  ;;  %v746_v59 = vsel %vm234_vm0, %v737_v62, 0.0  ;;  %v773_v10 = vmul.f32 %v769_v6, %v4552_v32  ;;  %2546 = vrot.lane.b32.xlu0 %v4640_v44, %s4147_s26  ;;  %s4163_s26 = smov 59  }
 0x129   : > { %v954_v2 = vsel %vm567_vm5, %v951_v46, %v714_v4  ;;  %v747_v9 = vrot.slane %v746_v59, 4  ;;  %v764_v51 = vrot.slane %v761_v36, 4  ;;  %v741_v12 = vadd.f32 %v740_v45, %v739_v5  ;;  %v837_v5 = vpop.permute.xlu0 %836 }
 0x12a   : > { %v759_v11 = vadd.f32 %v758_v7, %v757_v61  ;;  %v803_v3 = vrot.slane %v801_v42, 4  ;;  %v802_v13 = vrot.slane %v799_v63, 4  ;;  %v791_v15 = vsel %vm234_vm0, %v773_v10, 0.0 }
 0x12b   : > { %v748_v14 = vadd.f32 %v747_v9, %v746_v59  ;;  %v766_v16 = vsel %vm234_vm0, %v764_v51, %v765_v43  ;;  %vm843_vm9 = vcmask 801792   ;;  %v841_v18 = vrot.slane %v4661_v8, 4  ;;  %2586 = vrot.lane.b32.xlu1 %v4636_v37, %s4148_s30 }
 0x12c   : > { %v958_v19 = vsel %vm571_vm8, %v955_v54, %v759_v11  ;;  %v742_v21 = vrot.slane %v741_v12, 2  ;;  %v792_v22 = vrot.slane %v791_v15, 4  ;;  %v768_v23 = vsel %vm767_vm6, %v761_v36, %v766_v16  ;;  %2584 = vrot.lane.b32.xlu0 %v4640_v44, %s4148_s30  ;;  %v877_v16 = vpop.permute.xlu1 %876  ;;  %s4164_s30 = smov 106  }
 0x12d   : > { %v749_v24 = vrot.slane %v748_v14, 2  ;;  %v772_v1 = vmul.f32 %v4645_v53, %v768_v23  ;;  %v807_v26 = vsel %vm805_vm7, %v801_v42, %v803_v3  ;;  %v804_v17 = vsel %vm234_vm0, %v802_v13, %v803_v3 }
 0x12e   : > { %v743_v27 = vadd.f32 %v742_v21, %v741_v12  ;;  %v793_v28 = vadd.f32 %v792_v22, %v791_v15  ;;  %v811_v29 = vmul.f32 %v807_v26, %v4552_v32  ;;  %v806_v0 = vsel %vm805_vm7, %v799_v63, %v804_v17 }
 0x12f   : > { %v750_v30 = vadd.f32 %v749_v24, %v748_v14  ;;  %v775_v31 = vcombine.high %v772_v1, %v772_v1  ;;  %v777_v34 = vsel %vm234_vm0, %v772_v1, 0.0  ;;  %v810_v35 = vmul.f32 %v4645_v53, %v806_v0  ;;  %2624 = vrot.lane.b32.xlu1 %v4636_v37, %s4149_s6 }
 0x130   : > { %v744_v36 = vrot.slane %v743_v27, 1  ;;  %v794_v38 = vrot.slane %v793_v28, 2  ;;  %v778_v39 = vrot.slane %v777_v34, 4  ;;  %v829_v40 = vsel %vm234_vm0, %v811_v29, 0.0  ;;  %2622 = vrot.lane.b32.xlu0 %v4640_v44, %s4149_s6  ;;  %s4165_s6 = smov 82  }
 0x131   : > { %v751_v41 = vrot.slane %v750_v30, 1  ;;  %v784_v42 = vsel %vm234_vm0, %v775_v31, 0.0  ;;  %v830_v20 = vrot.slane %v829_v40, 4  ;;  %v813_v47 = vcombine.high %v810_v35, %v810_v35 }
 0x132   : > { %v745_v48 = vadd.f32 %v744_v36, %v743_v27  ;;  %v795_v49 = vadd.f32 %v794_v38, %v793_v28  ;;  %v779_v50 = vadd.f32 %v778_v39, %v777_v34  ;;  %v785_v25 = vrot.slane %v784_v42, 4  ;;  %v875_v27 = vpop.permute.xlu0 %874 }
 0x133   : > { %v752_v52 = vadd.f32 %v751_v41, %v750_v30  ;;  %v831_v55 = vadd.f32 %v830_v20, %v829_v40  ;;  %v815_v56 = vsel %vm234_vm0, %v810_v35, 0.0  ;;  %v822_v57 = vsel %vm234_vm0, %v813_v47, 0.0  ;;  %2662 = vrot.lane.b32.xlu1 %v4636_v37, %s4150_s9  ;;  %v915_v47 = vpop.permute.xlu1 %914 }
 0x134   : > { %v956_v58 = vsel %vm571_vm8, %v953_v33, %v745_v48  ;;  %v796_v43 = vrot.slane %v795_v49, 1  ;;  %v780_v54 = vrot.slane %v779_v50, 2  ;;  %v786_v60 = vadd.f32 %v785_v25, %v784_v42  ;;  %2660 = vrot.lane.b32.xlu0 %v4640_v44, %s4150_s9  ;;  %s4166_s9 = smov 58  }
 0x135   : > { %vm881_vm11 = vcmask 793600   ;;  %v957_v61 = vsel %vm571_vm8, %v954_v2, %v752_v52  ;;  %v832_v62 = vrot.slane %v831_v55, 2  ;;  %v816_v46 = vrot.slane %v815_v56, 4 }
 0x136   : > { %v823_v4 = vrot.slane %v822_v57, 4  ;;  %v797_v6 = vadd.f32 %v796_v43, %v795_v49  ;;  %v781_v63 = vadd.f32 %v780_v54, %v779_v50  ;;  %v787_v7 = vrot.slane %v786_v60, 2 }
 0x137   : > { %v845_v33 = vsel %vm843_vm9, %v4661_v8, %v841_v18  ;;  %v833_v45 = vadd.f32 %v832_v62, %v831_v55  ;;  %v817_v59 = vadd.f32 %v816_v46, %v815_v56  ;;  %v840_v12 = vrot.slane %v837_v5, 4  ;;  %2891 = vrot.lane.b32.xlu1 %v4636_v37, %s4151_s21 }
 0x138   : > { %v824_v9 = vadd.f32 %v823_v4, %v822_v57  ;;  %v849_v10 = vmul.f32 %v845_v33, %v4552_v32  ;;  %v961_v2 = vsel %vm234_vm0, %v958_v19, %v797_v6  ;;  %v782_v51 = vrot.slane %v781_v63, 1  ;;  %2889 = vrot.lane.b32.xlu0 %v4640_v44, %s4151_s21  ;;  %s4167_s21 = smov 105  }
 0x139   : > { %v788_v11 = vadd.f32 %v787_v7, %v786_v60  ;;  %v834_v3 = vrot.slane %v833_v45, 1  ;;  %v818_v13 = vrot.slane %v817_v59, 2  ;;  %vm919_vm12 = vcmask 785408  }
 0x13a   : > { %v825_v14 = vrot.slane %v824_v9, 2  ;;  %v867_v15 = vsel %vm234_vm0, %v849_v10, 0.0  ;;  %v783_v21 = vadd.f32 %v782_v51, %v781_v63  ;;  %v842_v19 = vsel %vm234_vm0, %v840_v12, %v841_v18 }
 0x13b   : > { %v789_v22 = vrot.slane %v788_v11, 1  ;;  %v868_v23 = vrot.slane %v867_v15, 4  ;;  %v835_v24 = vadd.f32 %v834_v3, %v833_v45  ;;  %v819_v1 = vadd.f32 %v818_v13, %v817_v59  ;;  %2929 = vrot.lane.b32.xlu1 %v4636_v37, %s4152_s15 }
 0x13c   : > { %v826_v26 = vadd.f32 %v825_v14, %v824_v9  ;;  %v844_v17 = vsel %vm843_vm9, %v837_v5, %v842_v19  ;;  %v959_v29 = vsel %vm234_vm0, %v956_v58, %v783_v21  ;;  %v879_v18 = vrot.slane %v877_v16, 4  ;;  %2927 = vrot.lane.b32.xlu0 %v4640_v44, %s4152_s15  ;;  %v913_v58 = vpop.permute.xlu0 %912  ;;  %s4168_s15 = smov 81  }
 0x13d   : > { %v790_v28 = vadd.f32 %v789_v22, %v788_v11  ;;  %v869_v0 = vadd.f32 %v868_v23, %v867_v15  ;;  %v848_v30 = vmul.f32 %v4645_v53, %v844_v17  ;;  %v964_v31 = vsel %vm578_vm10, %v961_v2, %v835_v24  ;;  %v4724_v2 = vpop.permute.xlu1 %992 }
 0x13e   : > { %v820_v8 = vrot.slane %v819_v1, 1  ;;  %v827_v34 = vrot.slane %v826_v26, 1  ;;  %v883_v20 = vsel %vm881_vm11, %v877_v16, %v879_v18  ;;  %vm997_vm1 = vcmask 654336  }
 0x13f   : > { %v960_v35 = vsel %vm234_vm0, %v957_v61, %v790_v28  ;;  %v870_v36 = vrot.slane %v869_v0, 2  ;;  %v851_v38 = vcombine.high %v848_v30, %v848_v30  ;;  %v853_v39 = vsel %vm234_vm0, %v848_v30, 0.0  ;;  %3272 = vrot.lane.b32.xlu1 %v4636_v37, %s4153_s12 }
 0x140   : > { %v821_v40 = vadd.f32 %v820_v8, %v819_v1  ;;  %v828_v41 = vadd.f32 %v827_v34, %v826_v26  ;;  %v854_v42 = vrot.slane %v853_v39, 4  ;;  %v887_v50 = vmul.f32 %v883_v20, %v4552_v32  ;;  %3270 = vrot.lane.b32.xlu0 %v4640_v44, %s4153_s12  ;;  %v4740_v34 = vld [vmem:[%s4314_s28 + $0x8] sm:$0xf]  ;;  %s4169_s12 = smov 57  }
 0x141   : > { %v871_v48 = vadd.f32 %v870_v36, %v869_v0  ;;  %v860_v49 = vsel %vm234_vm0, %v851_v38, 0.0  ;;  %v878_v25 = vrot.slane %v875_v27, 4  ;;  %v917_v61 = vrot.slane %v915_v47, 4 }
 0x142   : > { %v962_v52 = vsel %vm578_vm10, %v959_v29, %v821_v40  ;;  %v963_v55 = vsel %vm578_vm10, %v960_v35, %v828_v41  ;;  %v855_v56 = vadd.f32 %v854_v42, %v853_v39  ;;  %v861_v57 = vrot.slane %v860_v49, 4  ;;  %v991_v42 = vpop.permute.xlu0 %990 }
 0x143   : > { %v872_v43 = vrot.slane %v871_v48, 1  ;;  %v905_v54 = vsel %vm234_vm0, %v887_v50, 0.0  ;;  %v880_v60 = vsel %vm234_vm0, %v878_v25, %v879_v18  ;;  %v921_v7 = vsel %vm919_vm12, %v915_v47, %v917_v61  ;;  %3310 = vrot.lane.b32.xlu1 %v4636_v37, %s4154_s17 }
 0x144   : > { %v856_v62 = vrot.slane %v855_v56, 2  ;;  %v862_v46 = vadd.f32 %v861_v57, %v860_v49  ;;  %v906_v4 = vrot.slane %v905_v54, 4  ;;  %v882_v5 = vsel %vm881_vm11, %v875_v27, %v880_v60  ;;  %3308 = vrot.lane.b32.xlu0 %v4640_v44, %s4154_s17 }
 0x145   : > { %v873_v6 = vadd.f32 %v872_v43, %v871_v48  ;;  %v886_v63 = vmul.f32 %v4645_v53, %v882_v5  ;;  %v916_v33 = vrot.slane %v913_v58, 4  ;;  %v925_v10 = vmul.f32 %v921_v7, %v4552_v32 }
 0x146   : > { %v857_v45 = vadd.f32 %v856_v62, %v855_v56  ;;  %v863_v59 = vrot.slane %v862_v46, 2  ;;  %v907_v9 = vadd.f32 %v906_v4, %v905_v54  ;;  %v995_v23 = vrot.slane %v4724_v2, 4  ;;  %v1031_v56 = vpop.permute.xlu1 %1030 }
 0x147   : > { %v967_v51 = vsel %vm582_vm13, %v964_v31, %v873_v6  ;;  %v889_v11 = vcombine.high %v886_v63, %v886_v63  ;;  %v891_v12 = vsel %vm234_vm0, %v886_v63, 0.0  ;;  %v918_v3 = vsel %vm234_vm0, %v916_v33, %v917_v61  ;;  %2967 = vrot.lane.b32.xlu1 %v4636_v37, %s4155_s18 }
 0x148   : > { %v858_v13 = vrot.slane %v857_v45, 1  ;;  %v864_v14 = vadd.f32 %v863_v59, %v862_v46  ;;  %v908_v15 = vrot.slane %v907_v9, 2  ;;  %v892_v16 = vrot.slane %v891_v12, 4  ;;  %2965 = vrot.lane.b32.xlu0 %v4640_v44, %s4155_s18  ;;  %v4753_v59 = vld [vmem:[%s4314_s28] sm:$0xff] }
 0x149   : > { %v898_v32 = vsel %vm234_vm0, %v889_v11, 0.0  ;;  %v943_v21 = vsel %vm234_vm0, %v925_v10, 0.0  ;;  %v920_v22 = vsel %vm919_vm12, %v913_v58, %v918_v3  ;;  %v999_v29 = vsel %vm997_vm1, %v4724_v2, %v995_v23 }
 0x14a   : > { %v859_v19 = vadd.f32 %v858_v13, %v857_v45  ;;  %v865_v24 = vrot.slane %v864_v14, 1  ;;  %v909_v1 = vadd.f32 %v908_v15, %v907_v9  ;;  %v893_v26 = vadd.f32 %v892_v16, %v891_v12  ;;  %v1029_v9 = vpop.permute.xlu0 %1028  ;;  %v1069_v15 = vpop.permute.xlu1 %1068 }
 0x14b   : > { %v899_v17 = vrot.slane %v898_v32, 4  ;;  %v944_v27 = vrot.slane %v943_v21, 4  ;;  %v924_v28 = vmul.f32 %v4645_v53, %v920_v22  ;;  %v1003_v49 = vmul.f32 %v999_v29, %v4740_v34  ;;  %3348 = vrot.lane.b32.xlu1 %v4636_v37, %s4156_s24 }
 0x14c   : > { %v866_v0 = vadd.f32 %v865_v24, %v864_v14  ;;  %v965_v30 = vsel %vm582_vm13, %v962_v52, %v859_v19  ;;  %v910_v31 = vrot.slane %v909_v1, 1  ;;  %v894_v8 = vrot.slane %v893_v26, 2  ;;  %3346 = vrot.lane.b32.xlu0 %v4640_v44, %s4156_s24 }
 0x14d   : > { %v900_v18 = vadd.f32 %v899_v17, %v898_v32  ;;  %v945_v35 = vadd.f32 %v944_v27, %v943_v21  ;;  %v927_v36 = vcombine.high %v924_v28, %v924_v28  ;;  %v929_v38 = vsel %vm234_vm0, %v924_v28, 0.0 }
 0x14e   : > { %v966_v39 = vsel %vm582_vm13, %v963_v55, %v866_v0  ;;  %v911_v40 = vadd.f32 %v910_v31, %v909_v1  ;;  %v895_v41 = vadd.f32 %v894_v8, %v893_v26  ;;  %v930_v53 = vrot.slane %v929_v38, 4  ;;  %v1067_v8 = vpop.permute.xlu0 %1066 }
 0x14f   : > { %v901_v20 = vrot.slane %v900_v18, 2  ;;  %v946_v47 = vrot.slane %v945_v35, 2  ;;  %v936_v48 = vsel %vm234_vm0, %v927_v36, 0.0  ;;  %v1021_v54 = vsel %vm234_vm0, %v1003_v49, 0.0  ;;  %3005 = vrot.lane.b32.xlu1 %v4636_v37, %s4157_s25 }
 0x150   : > { %v970_v50 = vsel %vm586_vm15, %v967_v51, %v911_v40  ;;  %v896_v25 = vrot.slane %v895_v41, 1  ;;  %v931_v52 = vadd.f32 %v930_v53, %v929_v38  ;;  %v937_v55 = vrot.slane %v936_v48, 4  ;;  %v4772_v53 = vpop.permute.xlu1 %1106  ;;  %3003 = vrot.lane.b32.xlu0 %v4640_v44, %s4157_s25 }
 0x151   : > { %v973_v57 = vmul.f32 0.25, %v970_v50  ;;  %v902_v58 = vadd.f32 %v901_v20, %v900_v18  ;;  %v947_v43 = vadd.f32 %v946_v47, %v945_v35  ;;  %v1022_v46 = vrot.slane %v1021_v54, 4 }
 0x152   : > { %v897_v60 = vadd.f32 %v896_v25, %v895_v41  ;;  %v932_v61 = vrot.slane %v931_v52, 2  ;;  %v938_v62 = vadd.f32 %v937_v55, %v936_v48  ;;  %v994_v6 = vrot.slane %v991_v42, 4 }
 0x153   : > { %3776 = vst [vmem:[%s4569_s23 + $0x40] sm:$0xff] %v973_v57  ;;  %v903_v4 = vrot.slane %v902_v58, 1  ;;  %v948_v5 = vrot.slane %v947_v43, 1  ;;  %vm1035_vm2 = vcmask 646144   ;;  %v1023_v45 = vadd.f32 %v1022_v46, %v1021_v54  ;;  %3386 = vrot.lane.b32.xlu1 %v4636_v37, %s4158_s27 }
 0x154   : > { %v968_v63 = vsel %vm586_vm15, %v965_v30, %v897_v60  ;;  %v933_v7 = vadd.f32 %v932_v61, %v931_v52  ;;  %v939_v33 = vrot.slane %v938_v62, 2  ;;  %v996_v11 = vsel %vm234_vm0, %v994_v6, %v995_v23  ;;  %3384 = vrot.lane.b32.xlu0 %v4640_v44, %s4158_s27 }
 0x155   : > { %v904_v10 = vadd.f32 %v903_v4, %v902_v58  ;;  %v971_v2 = vmul.f32 0.25, %v968_v63  ;;  %v949_v51 = vadd.f32 %v948_v5, %v947_v43  ;;  %v1024_v13 = vrot.slane %v1023_v45, 2 }
 0x156   : > { %v934_v12 = vrot.slane %v933_v7, 1  ;;  %v940_v3 = vadd.f32 %v939_v33, %v938_v62  ;;  %v998_v14 = vsel %vm997_vm1, %v991_v42, %v996_v11  ;;  %v1033_v22 = vrot.slane %v1031_v56, 4 }
 0x157   : > { %v969_v16 = vsel %vm586_vm15, %v966_v39, %v904_v10  ;;  %3774 = vst [vmem:[%s4569_s23 + $0x30] sm:$0xff] %v971_v2  ;;  %v976_v32 = vmul.f32 0.25, %v949_v51  ;;  %v1002_v21 = vmul.f32 %v998_v14, %v4753_v59  ;;  %v1025_v1 = vadd.f32 %v1024_v13, %v1023_v45  ;;  %3043 = vrot.lane.b32.xlu1 %v4636_v37, %s4159_s22 }
 0x158   : > { %v972_v23 = vmul.f32 0.25, %v969_v16  ;;  %v935_v19 = vadd.f32 %v934_v12, %v933_v7  ;;  %v941_v24 = vrot.slane %v940_v3, 1  ;;  %v1037_v27 = vsel %vm1035_vm2, %v1031_v56, %v1033_v22  ;;  %3041 = vrot.lane.b32.xlu0 %v4640_v44, %s4159_s22 }
 0x159   : > { %3779 = vst [vmem:[%s4569_s23 + $0x58] sm:$0x1] %v976_v32  ;;  %v1005_v26 = vcombine.high %v1002_v21, %v1002_v21  ;;  %v1007_v17 = vsel %vm234_vm0, %v1002_v21, 0.0  ;;  %v1032_v28 = vrot.slane %v1029_v9, 4  ;;  %v1026_v30 = vrot.slane %v1025_v1, 1 }
 0x15a   : > { %3775 = vst [vmem:[%s4569_s23 + $0x38] sm:$0xff] %v972_v23  ;;  %v942_v29 = vadd.f32 %v941_v24, %v940_v3  ;;  %v974_v0 = vmul.f32 0.25, %v935_v19  ;;  %v1008_v31 = vrot.slane %v1007_v17, 4  ;;  %v1041_v35 = vmul.f32 %v1037_v27, %v4740_v34  ;;  %v1105_v23 = vpop.permute.xlu0 %1104 }
 0x15b   : > { %v1014_v18 = vsel %vm234_vm0, %v1005_v26, 0.0  ;;  %v1034_v36 = vsel %vm234_vm0, %v1032_v28, %v1033_v22  ;;  %vm1073_vm3 = vcmask 637952   ;;  %v4770_v39 = vadd.f32 %v1026_v30, %v1025_v1  ;;  %3424 = vrot.lane.b32.xlu1 %v4636_v37, %s4160_s3 }
 0x15c   : > { %v975_v38 = vmul.f32 0.25, %v942_v29  ;;  %3777 = vst [vmem:[%s4569_s23 + $0x48] sm:$0x1] %v974_v0  ;;  %v1009_v40 = vadd.f32 %v1008_v31, %v1007_v17  ;;  %v1015_v41 = vrot.slane %v1014_v18, 4  ;;  %v1059_v42 = vsel %vm234_vm0, %v1041_v35, 0.0  ;;  %3422 = vrot.lane.b32.xlu0 %v4640_v44, %s4160_s3 }
 0x15d   : > { %v1036_v20 = vsel %vm1035_vm2, %v1029_v9, %v1034_v36  ;;  %v1071_v47 = vrot.slane %v1069_v15, 4  ;;  %v1070_v48 = vrot.slane %v1067_v8, 4  ;;  %v1060_v25 = vrot.slane %v1059_v42, 4 }
 0x15e   : > { %3778 = vst [vmem:[%s4569_s23 + $0x50] sm:$0x1] %v975_v38  ;;  %v1010_v49 = vrot.slane %v1009_v40, 2  ;;  %v1016_v50 = vadd.f32 %v1015_v41, %v1014_v18  ;;  %v1040_v52 = vmul.f32 %v1036_v20, %v4753_v59  ;;  %vm1111_vm6 = vcmask 629760   ;;  %v1145_v20 = vpop.permute.xlu1 %1144 }
 0x15f   : > { %v1075_v55 = vsel %vm1073_vm3, %v1069_v15, %v1071_v47  ;;  %v1072_v56 = vsel %vm234_vm0, %v1070_v48, %v1071_v47  ;;  %v1109_v57 = vrot.slane %v4772_v53, 4  ;;  %v1061_v54 = vadd.f32 %v1060_v25, %v1059_v42  ;;  %2700 = vrot.lane.b32.xlu1 %v4636_v37, %s4161_s5 }
 0x160   : > { %v1011_v58 = vadd.f32 %v1010_v49, %v1009_v40  ;;  %v1017_v43 = vrot.slane %v1016_v50, 2  ;;  %v1043_v60 = vcombine.high %v1040_v52, %v1040_v52  ;;  %v1045_v61 = vsel %vm234_vm0, %v1040_v52, 0.0  ;;  %2698 = vrot.lane.b32.xlu0 %v4640_v44, %s4161_s5 }
 0x161   : > { %v1079_v62 = vmul.f32 %v1075_v55, %v4740_v34  ;;  %v1074_v46 = vsel %vm1073_vm3, %v1067_v8, %v1072_v56  ;;  %v1113_v4 = vsel %vm1111_vm6, %v4772_v53, %v1109_v57  ;;  %v1062_v63 = vrot.slane %v1061_v54, 2 }
 0x162   : > { %v1012_v5 = vrot.slane %v1011_v58, 1  ;;  %v1018_v6 = vadd.f32 %v1017_v43, %v1016_v50  ;;  %v1046_v7 = vrot.slane %v1045_v61, 4  ;;  %v1052_v33 = vsel %vm234_vm0, %v1043_v60, 0.0 }
 0x163   : > { %v1097_v45 = vsel %vm234_vm0, %v1079_v62, 0.0  ;;  %v1078_v9 = vmul.f32 %v1074_v46, %v4753_v59  ;;  %v1117_v10 = vmul.f32 %v1113_v4, %v4740_v34  ;;  %v1063_v11 = vadd.f32 %v1062_v63, %v1061_v54  ;;  %3081 = vrot.lane.b32.xlu1 %v4636_v37, %s4162_s19 }
 0x164   : > { %v1013_v2 = vadd.f32 %v1012_v5, %v1011_v58  ;;  %v1019_v51 = vrot.slane %v1018_v6, 1  ;;  %v1047_v12 = vadd.f32 %v1046_v7, %v1045_v61  ;;  %v1053_v3 = vrot.slane %v1052_v33, 4  ;;  %3079 = vrot.lane.b32.xlu0 %v4640_v44, %s4162_s19 }
 0x165   : > { %v1098_v13 = vrot.slane %v1097_v45, 4  ;;  %v1081_v14 = vcombine.high %v1078_v9, %v1078_v9  ;;  %v1083_v15 = vsel %vm234_vm0, %v1078_v9, 0.0  ;;  %v1064_v32 = vrot.slane %v1063_v11, 1  ;;  %v1183_v9 = vpop.permute.xlu1 %1182 }
 0x166   : > { %v1020_v16 = vadd.f32 %v1019_v51, %v1018_v6  ;;  %v1048_v21 = vrot.slane %v1047_v12, 2  ;;  %v1084_v22 = vrot.slane %v1083_v15, 4  ;;  %v1054_v19 = vadd.f32 %v1053_v3, %v1052_v33 }
 0x167   : > { %v1099_v24 = vadd.f32 %v1098_v13, %v1097_v45  ;;  %v1090_v1 = vsel %vm234_vm0, %v1081_v14, 0.0  ;;  %v1135_v26 = vsel %vm234_vm0, %v1117_v10, 0.0  ;;  %v1065_v17 = vadd.f32 %v1064_v32, %v1063_v11 }
 0x168   : > { %v1049_v27 = vadd.f32 %v1048_v21, %v1047_v12  ;;  %v1085_v28 = vadd.f32 %v1084_v22, %v1083_v15  ;;  %v1091_v29 = vrot.slane %v1090_v1, 4  ;;  %v1055_v0 = vrot.slane %v1054_v19, 2 }
 0x169   : > { %v1100_v30 = vrot.slane %v1099_v24, 2  ;;  %v1136_v31 = vrot.slane %v1135_v26, 4  ;;  %v1108_v8 = vrot.slane %v1105_v23, 4  ;;  %v1334_v18 = vsel %vm563_vm4, %v4770_v39, %v1065_v17  ;;  %v1143_v39 = vpop.permute.xlu0 %1142 }
 0x16a   : > { %v1050_v35 = vrot.slane %v1049_v27, 1  ;;  %v1086_v36 = vrot.slane %v1085_v28, 2  ;;  %v1092_v38 = vadd.f32 %v1091_v29, %v1090_v1  ;;  %v1056_v40 = vadd.f32 %v1055_v0, %v1054_v19 }
 0x16b   : > { %v1101_v41 = vadd.f32 %v1100_v30, %v1099_v24  ;;  %v1137_v53 = vadd.f32 %v1136_v31, %v1135_v26  ;;  %v1110_v42 = vsel %vm234_vm0, %v1108_v8, %v1109_v57  ;;  %vm1149_vm7 = vcmask 621568  }
 0x16c   : > { %v1051_v47 = vadd.f32 %v1050_v35, %v1049_v27  ;;  %v1087_v48 = vadd.f32 %v1086_v36, %v1085_v28  ;;  %v1093_v49 = vrot.slane %v1092_v38, 2  ;;  %v1112_v50 = vsel %vm1111_vm6, %v1105_v23, %v1110_v42 }
 0x16d   : > { %v1057_v25 = vrot.slane %v1056_v40, 1  ;;  %v1102_v52 = vrot.slane %v1101_v41, 1  ;;  %v1138_v55 = vrot.slane %v1137_v53, 2  ;;  %v1116_v56 = vmul.f32 %v1112_v50, %v4753_v59  ;;  %v1181_v15 = vpop.permute.xlu0 %1180 }
 0x16e   : > { %v1332_v58 = vsel %vm563_vm4, %v1013_v2, %v1051_v47  ;;  %v1088_v43 = vrot.slane %v1087_v48, 1  ;;  %v1094_v54 = vadd.f32 %v1093_v49, %v1092_v38  ;;  %v1147_v6 = vrot.slane %v1145_v20, 4 }
 0x16f   : > { %v1058_v57 = vadd.f32 %v1057_v25, %v1056_v40  ;;  %v1103_v60 = vadd.f32 %v1102_v52, %v1101_v41  ;;  %v1139_v61 = vadd.f32 %v1138_v55, %v1137_v53  ;;  %v1119_v62 = vcombine.high %v1116_v56, %v1116_v56  ;;  %v1221_v41 = vpop.permute.xlu1 %1220 }
 0x170   : > { %v1089_v46 = vadd.f32 %v1088_v43, %v1087_v48  ;;  %v1095_v4 = vrot.slane %v1094_v54, 1  ;;  %v1121_v5 = vsel %vm234_vm0, %v1116_v56, 0.0  ;;  %v1151_v11 = vsel %vm1149_vm7, %v1145_v20, %v1147_v6 }
 0x171   : > { %v1333_v63 = vsel %vm563_vm4, %v1020_v16, %v1058_v57  ;;  %v1337_v7 = vsel %vm567_vm5, %v1334_v18, %v1103_v60  ;;  %v1140_v33 = vrot.slane %v1139_v61, 1  ;;  %v1122_v45 = vrot.slane %v1121_v5, 4 }
 0x172   : > { %v1096_v10 = vadd.f32 %v1095_v4, %v1094_v54  ;;  %v1335_v2 = vsel %vm567_vm5, %v1332_v58, %v1089_v46  ;;  %v1128_v51 = vsel %vm234_vm0, %v1119_v62, 0.0  ;;  %v1155_v14 = vmul.f32 %v1151_v11, %v4740_v34 }
 0x173   : > { %v1141_v12 = vadd.f32 %v1140_v33, %v1139_v61  ;;  %v1123_v3 = vadd.f32 %v1122_v45, %v1121_v5  ;;  %v1129_v13 = vrot.slane %v1128_v51, 4  ;;  %v1146_v32 = vrot.slane %v1143_v39, 4 }
 0x174   : > { %v1336_v16 = vsel %vm567_vm5, %v1333_v63, %v1096_v10  ;;  %vm1187_vm9 = vcmask 613376   ;;  %v1185_v21 = vrot.slane %v1183_v9, 4  ;;  %v1173_v24 = vsel %vm234_vm0, %v1155_v14, 0.0 }
 0x175   : > { %v1340_v22 = vsel %vm571_vm8, %v1337_v7, %v1141_v12  ;;  %v1124_v23 = vrot.slane %v1123_v3, 2  ;;  %v1130_v19 = vadd.f32 %v1129_v13, %v1128_v51  ;;  %v1174_v1 = vrot.slane %v1173_v24, 4  ;;  %v1219_v7 = vpop.permute.xlu0 %1218 }
 0x176   : > { %v1148_v26 = vsel %vm234_vm0, %v1146_v32, %v1147_v6  ;;  %v1189_v17 = vsel %vm1187_vm9, %v1183_v9, %v1185_v21  ;;  %v1184_v27 = vrot.slane %v1181_v15, 4  ;;  %vm1225_vm11 = vcmask 605184  }
 0x177   : > { %v1125_v28 = vadd.f32 %v1124_v23, %v1123_v3  ;;  %v1131_v29 = vrot.slane %v1130_v19, 2  ;;  %v1150_v0 = vsel %vm1149_vm7, %v1143_v39, %v1148_v26  ;;  %v1193_v30 = vmul.f32 %v1189_v17, %v4740_v34 }
 0x178   : > { %v1175_v31 = vadd.f32 %v1174_v1, %v1173_v24  ;;  %v1154_v8 = vmul.f32 %v1150_v0, %v4753_v59  ;;  %v1186_v18 = vsel %vm234_vm0, %v1184_v27, %v1185_v21  ;;  %v1223_v39 = vrot.slane %v1221_v41, 4 }
 0x179   : > { %v1126_v35 = vrot.slane %v1125_v28, 1  ;;  %v1132_v36 = vadd.f32 %v1131_v29, %v1130_v19  ;;  %v1211_v38 = vsel %vm234_vm0, %v1193_v30, 0.0  ;;  %v1188_v40 = vsel %vm1187_vm9, %v1181_v15, %v1186_v18  ;;  %v1259_v19 = vpop.permute.xlu1 %1258 }
 0x17a   : > { %v1176_v53 = vrot.slane %v1175_v31, 2  ;;  %v1157_v42 = vcombine.high %v1154_v8, %v1154_v8  ;;  %v1159_v20 = vsel %vm234_vm0, %v1154_v8, 0.0  ;;  %v1212_v47 = vrot.slane %v1211_v38, 4 }
 0x17b   : > { %v1127_v48 = vadd.f32 %v1126_v35, %v1125_v28  ;;  %v1133_v49 = vrot.slane %v1132_v36, 1  ;;  %v1160_v50 = vrot.slane %v1159_v20, 4  ;;  %v1192_v25 = vmul.f32 %v1188_v40, %v4753_v59 }
 0x17c   : > { %v1177_v52 = vadd.f32 %v1176_v53, %v1175_v31  ;;  %v1166_v55 = vsel %vm234_vm0, %v1157_v42, 0.0  ;;  %v1213_v56 = vadd.f32 %v1212_v47, %v1211_v38  ;;  %v1227_v10 = vsel %vm1225_vm11, %v1221_v41, %v1223_v39 }
 0x17d   : > { %v1134_v58 = vadd.f32 %v1133_v49, %v1132_v36  ;;  %v1338_v43 = vsel %vm571_vm8, %v1335_v2, %v1127_v48  ;;  %v1161_v54 = vadd.f32 %v1160_v50, %v1159_v20  ;;  %v1167_v57 = vrot.slane %v1166_v55, 4 }
 0x17e   : > { %v1178_v60 = vrot.slane %v1177_v52, 1  ;;  %v1214_v61 = vrot.slane %v1213_v56, 2  ;;  %v1195_v62 = vcombine.high %v1192_v25, %v1192_v25  ;;  %v1197_v46 = vsel %vm234_vm0, %v1192_v25, 0.0 }
 0x17f   : > { %v1339_v4 = vsel %vm571_vm8, %v1336_v16, %v1134_v58  ;;  %v1162_v5 = vrot.slane %v1161_v54, 2  ;;  %v1168_v6 = vadd.f32 %v1167_v57, %v1166_v55  ;;  %v1198_v63 = vrot.slane %v1197_v46, 4 }
 0x180   : > { %v1179_v33 = vadd.f32 %v1178_v60, %v1177_v52  ;;  %v1215_v45 = vadd.f32 %v1214_v61, %v1213_v56  ;;  %v1204_v9 = vsel %vm234_vm0, %v1195_v62, 0.0  ;;  %v1231_v14 = vmul.f32 %v1227_v10, %v4740_v34 }
 0x181   : > { %v1163_v2 = vadd.f32 %v1162_v5, %v1161_v54  ;;  %v1169_v51 = vrot.slane %v1168_v6, 2  ;;  %v1199_v11 = vadd.f32 %v1198_v63, %v1197_v46  ;;  %v1205_v12 = vrot.slane %v1204_v9, 4 }
 0x182   : > { %v1343_v3 = vsel %vm234_vm0, %v1340_v22, %v1179_v33  ;;  %v1216_v13 = vrot.slane %v1215_v45, 1  ;;  %v1222_v15 = vrot.slane %v1219_v7, 4  ;;  %v1249_v1 = vsel %vm234_vm0, %v1231_v14, 0.0  ;;  %v1257_v22 = vpop.permute.xlu0 %1256 }
 0x183   : > { %v1164_v16 = vrot.slane %v1163_v2, 1  ;;  %v1170_v32 = vadd.f32 %v1169_v51, %v1168_v6  ;;  %v1200_v21 = vrot.slane %v1199_v11, 2  ;;  %v1206_v23 = vadd.f32 %v1205_v12, %v1204_v9 }
 0x184   : > { %v1217_v24 = vadd.f32 %v1216_v13, %v1215_v45  ;;  %v1224_v26 = vsel %vm234_vm0, %v1222_v15, %v1223_v39  ;;  %vm1263_vm12 = vcmask 596992   ;;  %v1250_v30 = vrot.slane %v1249_v1, 4 }
 0x185   : > { %v1165_v17 = vadd.f32 %v1164_v16, %v1163_v2  ;;  %v1171_v27 = vrot.slane %v1170_v32, 1  ;;  %v1201_v28 = vadd.f32 %v1200_v21, %v1199_v11  ;;  %v1207_v29 = vrot.slane %v1206_v23, 2  ;;  %v4861_v16 = vld [vmem:[%s4320_s29 + $0xc] sm:$0xff] }
 0x186   : > { %v1346_v0 = vsel %vm578_vm10, %v1343_v3, %v1217_v24  ;;  %v1226_v31 = vsel %vm1225_vm11, %v1219_v7, %v1224_v26  ;;  %v1261_v8 = vrot.slane %v1259_v19, 4  ;;  %v1251_v40 = vadd.f32 %v1250_v30, %v1249_v1  ;;  %v1295_v12 = vpop.permute.xlu0 %1294  ;;  %3462 = vrot.lane.b32.xlu1 %v4861_v16, %s4163_s26 }
 0x187   : > { %v1172_v18 = vadd.f32 %v1171_v27, %v1170_v32  ;;  %v1341_v35 = vsel %vm234_vm0, %v1338_v43, %v1165_v17  ;;  %v1202_v36 = vrot.slane %v1201_v28, 1  ;;  %v1208_v38 = vadd.f32 %v1207_v29, %v1206_v23  ;;  %v1297_v43 = vpop.permute.xlu1 %1296  ;;  %v4865_v32 = vld [vmem:[%s4320_s29 + $0x4] sm:$0xff] }
 0x188   : > { %v1230_v41 = vmul.f32 %v1226_v31, %v4753_v59  ;;  %v1265_v53 = vsel %vm1263_vm12, %v1259_v19, %v1261_v8  ;;  %v1260_v42 = vrot.slane %v1257_v22, 4  ;;  %v1252_v50 = vrot.slane %v1251_v40, 2  ;;  %3460 = vrot.lane.b32.xlu0 %v4865_v32, %s4163_s26 }
 0x189   : > { %v1342_v20 = vsel %vm234_vm0, %v1339_v4, %v1172_v18  ;;  %v1203_v47 = vadd.f32 %v1202_v36, %v1201_v28  ;;  %v1209_v48 = vrot.slane %v1208_v38, 1  ;;  %v1269_v49 = vmul.f32 %v1265_v53, %v4740_v34 }
 0x18a   : > { %v1233_v25 = vcombine.high %v1230_v41, %v1230_v41  ;;  %v1235_v52 = vsel %vm234_vm0, %v1230_v41, 0.0  ;;  %v1262_v55 = vsel %vm234_vm0, %v1260_v42, %v1261_v8  ;;  %v1253_v44 = vadd.f32 %v1252_v50, %v1251_v40  ;;  %2738 = vrot.lane.b32.xlu1 %v4861_v16, %s4164_s30  ;;  %v4876_v42 = vld [vmem:[%s4314_s28 + $0x8] sm:$0xf] }
 0x18b   : > { %v1210_v56 = vadd.f32 %v1209_v48, %v1208_v38  ;;  %v1344_v39 = vsel %vm578_vm10, %v1341_v35, %v1203_v47  ;;  %v1236_v58 = vrot.slane %v1235_v52, 4  ;;  %v1287_v37 = vsel %vm234_vm0, %v1269_v49, 0.0  ;;  %v1375_v30 = vpop.permute.xlu1 %1374 }
 0x18c   : > { %v1242_v54 = vsel %vm234_vm0, %v1233_v25, 0.0  ;;  %v1288_v57 = vrot.slane %v1287_v37, 4  ;;  %v1264_v60 = vsel %vm1263_vm12, %v1257_v22, %v1262_v55  ;;  %v1254_v5 = vrot.slane %v1253_v44, 1  ;;  %2736 = vrot.lane.b32.xlu0 %v4865_v32, %s4164_s30  ;;  %v1373_v25 = vpop.permute.xlu0 %1372 }
 0x18d   : > { %v1345_v61 = vsel %vm578_vm10, %v1342_v20, %v1210_v56  ;;  %v1237_v62 = vadd.f32 %v1236_v58, %v1235_v52  ;;  %v1243_v46 = vrot.slane %v1242_v54, 4  ;;  %v1268_v4 = vmul.f32 %v1264_v60, %v4753_v59 }
 0x18e   : > { %v1289_v6 = vadd.f32 %v1288_v57, %v1287_v37  ;;  %vm1301_vm2 = vcmask 588800   ;;  %v1299_v63 = vrot.slane %v1297_v43, 4  ;;  %v1255_v10 = vadd.f32 %v1254_v5, %v1253_v44  ;;  %3119 = vrot.lane.b32.xlu1 %v4861_v16, %s4165_s6 }
 0x18f   : > { %v1238_v7 = vrot.slane %v1237_v62, 2  ;;  %v1244_v33 = vadd.f32 %v1243_v46, %v1242_v54  ;;  %v1271_v45 = vcombine.high %v1268_v4, %v1268_v4  ;;  %v1273_v9 = vsel %vm234_vm0, %v1268_v4, 0.0  ;;  %v1413_v5 = vpop.permute.xlu1 %1412 }
 0x190   : > { %v1290_v2 = vrot.slane %v1289_v6, 2  ;;  %v1274_v51 = vrot.slane %v1273_v9, 4  ;;  %v1303_v11 = vsel %vm1301_vm2, %v1297_v43, %v1299_v63  ;;  %v1349_v21 = vsel %vm582_vm13, %v1346_v0, %v1255_v10  ;;  %3117 = vrot.lane.b32.xlu0 %v4865_v32, %s4165_s6 }
 0x191   : > { %v1239_v3 = vadd.f32 %v1238_v7, %v1237_v62  ;;  %v1245_v13 = vrot.slane %v1244_v33, 2  ;;  %v1280_v14 = vsel %vm234_vm0, %v1271_v45, 0.0  ;;  %v1307_v15 = vmul.f32 %v1303_v11, %v4740_v34 }
 0x192   : > { %v1291_v23 = vadd.f32 %v1290_v2, %v1289_v6  ;;  %v1275_v19 = vadd.f32 %v1274_v51, %v1273_v9  ;;  %v1281_v24 = vrot.slane %v1280_v14, 4  ;;  %v1298_v27 = vrot.slane %v1295_v12, 4  ;;  %v1411_v51 = vpop.permute.xlu0 %1410  ;;  %3500 = vrot.lane.b32.xlu1 %v4861_v16, %s4166_s9 }
 0x193   : > { %v1240_v1 = vrot.slane %v1239_v3, 1  ;;  %v1246_v26 = vadd.f32 %v1245_v13, %v1244_v33  ;;  %v1325_v17 = vsel %vm234_vm0, %v1307_v15, 0.0  ;;  %vm1379_vm3 = vcmask 457728  }
 0x194   : > { %v1292_v34 = vrot.slane %v1291_v23, 1  ;;  %v1276_v28 = vrot.slane %v1275_v19, 2  ;;  %v1282_v29 = vadd.f32 %v1281_v24, %v1280_v14  ;;  %v1326_v22 = vrot.slane %v1325_v17, 4  ;;  %3498 = vrot.lane.b32.xlu0 %v4865_v32, %s4166_s9 }
 0x195   : > { %v1241_v31 = vadd.f32 %v1240_v1, %v1239_v3  ;;  %v1247_v8 = vrot.slane %v1246_v26, 1  ;;  %v1300_v18 = vsel %vm234_vm0, %v1298_v27, %v1299_v63  ;;  %v1377_v20 = vrot.slane %v1375_v30, 4 }
 0x196   : > { %v1293_v0 = vadd.f32 %v1292_v34, %v1291_v23  ;;  %v1277_v35 = vadd.f32 %v1276_v28, %v1275_v19  ;;  %v1283_v36 = vrot.slane %v1282_v29, 2  ;;  %v1327_v38 = vadd.f32 %v1326_v22, %v1325_v17  ;;  %2776 = vrot.lane.b32.xlu1 %v4861_v16, %s4167_s21 }
 0x197   : > { %v1248_v40 = vadd.f32 %v1247_v8, %v1246_v26  ;;  %v1347_v41 = vsel %vm582_vm13, %v1344_v39, %v1241_v31  ;;  %v1302_v53 = vsel %vm1301_vm2, %v1295_v12, %v1300_v18  ;;  %v1381_v58 = vsel %vm1379_vm3, %v1375_v30, %v1377_v20 }
 0x198   : > { %v1352_v47 = vsel %vm586_vm15, %v1349_v21, %v1293_v0  ;;  %v1278_v48 = vrot.slane %v1277_v35, 1  ;;  %v1284_v49 = vadd.f32 %v1283_v36, %v1282_v29  ;;  %v1328_v50 = vrot.slane %v1327_v38, 2  ;;  %2774 = vrot.lane.b32.xlu0 %v4865_v32, %s4167_s21 }
 0x199   : > { %v1348_v52 = vsel %vm582_vm13, %v1345_v61, %v1248_v40  ;;  %v1355_v55 = vmul.f32 0.25, %v1352_v47  ;;  %v1306_v56 = vmul.f32 %v1302_v53, %v4753_v59  ;;  %v1385_v44 = vmul.f32 %v1381_v58, %v4876_v42 }
 0x19a   : > { %v1279_v39 = vadd.f32 %v1278_v48, %v1277_v35  ;;  %v1285_v37 = vrot.slane %v1284_v49, 1  ;;  %v1329_v43 = vadd.f32 %v1328_v50, %v1327_v38  ;;  %v1376_v60 = vrot.slane %v1373_v25, 4  ;;  %v1451_v35 = vpop.permute.xlu1 %1450  ;;  %3157 = vrot.lane.b32.xlu1 %v4861_v16, %s4168_s15 }
 0x19b   : > { %3782 = vst [vmem:[%s4569_s23 + $0x70] sm:$0xff] %v1355_v55  ;;  %v1309_v54 = vcombine.high %v1306_v56, %v1306_v56  ;;  %v1311_v57 = vsel %vm234_vm0, %v1306_v56, 0.0  ;;  %vm1417_vm6 = vcmask 449536   ;;  %v1403_v7 = vsel %vm234_vm0, %v1385_v44, 0.0 }
 0x19c   : > { %v1286_v62 = vadd.f32 %v1285_v37, %v1284_v49  ;;  %v1350_v61 = vsel %vm586_vm15, %v1347_v41, %v1279_v39  ;;  %v1330_v46 = vrot.slane %v1329_v43, 1  ;;  %v1312_v4 = vrot.slane %v1311_v57, 4  ;;  %v1449_v37 = vpop.permute.xlu0 %1448  ;;  %3155 = vrot.lane.b32.xlu0 %v4865_v32, %s4168_s15 }
 0x19d   : > { %v1353_v6 = vmul.f32 0.25, %v1350_v61  ;;  %v1318_v63 = vsel %vm234_vm0, %v1309_v54, 0.0  ;;  %v1378_v33 = vsel %vm234_vm0, %v1376_v60, %v1377_v20  ;;  %v1404_v12 = vrot.slane %v1403_v7, 4 }
 0x19e   : > { %v1351_v45 = vsel %vm586_vm15, %v1348_v52, %v1286_v62  ;;  %v1331_v9 = vadd.f32 %v1330_v46, %v1329_v43  ;;  %v1313_v10 = vadd.f32 %v1312_v4, %v1311_v57  ;;  %v1319_v2 = vrot.slane %v1318_v63, 4  ;;  %3538 = vrot.lane.b32.xlu1 %v4861_v16, %s4169_s12 }
 0x19f   : > { %v1354_v11 = vmul.f32 0.25, %v1351_v45  ;;  %3780 = vst [vmem:[%s4569_s23 + $0x60] sm:$0xff] %v1353_v6  ;;  %v1380_v3 = vsel %vm1379_vm3, %v1373_v25, %v1378_v33  ;;  %v1415_v13 = vrot.slane %v1413_v5, 4  ;;  %v1405_v19 = vadd.f32 %v1404_v12, %v1403_v7 }
 0x1a0   : > { %v1358_v14 = vmul.f32 0.25, %v1331_v9  ;;  %v1314_v15 = vrot.slane %v1313_v10, 2  ;;  %v1320_v21 = vadd.f32 %v1319_v2, %v1318_v63  ;;  %v1384_v23 = vmul.f32 %v1380_v3, %v4753_v59  ;;  %3536 = vrot.lane.b32.xlu0 %v4865_v32, %s4169_s12 }
 0x1a1   : > { %3781 = vst [vmem:[%s4569_s23 + $0x68] sm:$0xff] %v1354_v11  ;;  %v1419_v24 = vsel %vm1417_vm6, %v1413_v5, %v1415_v13  ;;  %v1414_v1 = vrot.slane %v1411_v51, 4  ;;  %vm1455_vm7 = vcmask 441344   ;;  %v1406_v28 = vrot.slane %v1405_v19, 2  ;;  %v1489_v11 = vpop.permute.xlu1 %1488 }
 0x1a2   : > { %3785 = vst [vmem:[%s4569_s23 + $0x88] sm:$0x1] %v1358_v14  ;;  %v1315_v26 = vadd.f32 %v1314_v15, %v1313_v10  ;;  %v1321_v17 = vrot.slane %v1320_v21, 2  ;;  %v1387_v27 = vcombine.high %v1384_v23, %v1384_v23  ;;  %v1389_v34 = vsel %vm234_vm0, %v1384_v23, 0.0  ;;  %v1487_v15 = vpop.permute.xlu0 %1486  ;;  %2814 = vrot.lane.b32.xlu1 %v4861_v16, %s4102_s8 }
 0x1a3   : > { %v1390_v29 = vrot.slane %v1389_v34, 4  ;;  %v1423_v22 = vmul.f32 %v1419_v24, %v4876_v42  ;;  %v1416_v30 = vsel %vm234_vm0, %v1414_v1, %v1415_v13  ;;  %v1407_v36 = vadd.f32 %v1406_v28, %v1405_v19 }
 0x1a4   : > { %v1316_v31 = vrot.slane %v1315_v26, 1  ;;  %v1322_v8 = vadd.f32 %v1321_v17, %v1320_v21  ;;  %v1396_v18 = vsel %vm234_vm0, %v1387_v27, 0.0  ;;  %v1418_v0 = vsel %vm1417_vm6, %v1411_v51, %v1416_v30  ;;  %2812 = vrot.lane.b32.xlu0 %v4865_v32, %s4102_s8 }
 0x1a5   : > { %v1391_v38 = vadd.f32 %v1390_v29, %v1389_v34  ;;  %v1397_v40 = vrot.slane %v1396_v18, 4  ;;  %v1441_v41 = vsel %vm234_vm0, %v1423_v22, 0.0  ;;  %v1422_v48 = vmul.f32 %v1418_v0, %v4753_v59 }
 0x1a6   : > { %v1317_v53 = vadd.f32 %v1316_v31, %v1315_v26  ;;  %v1323_v20 = vrot.slane %v1322_v8, 1  ;;  %v1442_v47 = vrot.slane %v1441_v41, 4  ;;  %v1408_v49 = vrot.slane %v1407_v36, 1  ;;  %3195 = vrot.lane.b32.xlu1 %v4861_v16, %s4111_s4 }
 0x1a7   : > { %v1392_v50 = vrot.slane %v1391_v38, 2  ;;  %v1398_v25 = vadd.f32 %v1397_v40, %v1396_v18  ;;  %v1453_v52 = vrot.slane %v1451_v35, 4  ;;  %v1425_v39 = vcombine.high %v1422_v48, %v1422_v48 }
 0x1a8   : > { %v1324_v55 = vadd.f32 %v1323_v20, %v1322_v8  ;;  %v1356_v56 = vmul.f32 0.25, %v1317_v53  ;;  %v1443_v58 = vadd.f32 %v1442_v47, %v1441_v41  ;;  %v1409_v43 = vadd.f32 %v1408_v49, %v1407_v36  ;;  %3193 = vrot.lane.b32.xlu0 %v4865_v32, %s4111_s4 }
 0x1a9   : > { %v1393_v44 = vadd.f32 %v1392_v50, %v1391_v38  ;;  %v1399_v54 = vrot.slane %v1398_v25, 2  ;;  %v1427_v57 = vsel %vm234_vm0, %v1422_v48, 0.0  ;;  %v1434_v46 = vsel %vm234_vm0, %v1425_v39, 0.0  ;;  %v1527_v38 = vpop.permute.xlu1 %1526 }
 0x1aa   : > { %v1357_v60 = vmul.f32 0.25, %v1324_v55  ;;  %3783 = vst [vmem:[%s4569_s23 + $0x78] sm:$0x1] %v1356_v56  ;;  %v1444_v62 = vrot.slane %v1443_v58, 2  ;;  %v1428_v61 = vrot.slane %v1427_v57, 4  ;;  %v1435_v6 = vrot.slane %v1434_v46, 4  ;;  %3576 = vrot.lane.b32.xlu1 %v4861_v16, %s4120_s7 }
 0x1ab   : > { %v1394_v4 = vrot.slane %v1393_v44, 1  ;;  %v1400_v5 = vadd.f32 %v1399_v54, %v1398_v25  ;;  %v1457_v63 = vsel %vm1455_vm7, %v1451_v35, %v1453_v52  ;;  %v1452_v9 = vrot.slane %v1449_v37, 4  ;;  %v1525_v25 = vpop.permute.xlu0 %1524 }
 0x1ac   : > { %3784 = vst [vmem:[%s4569_s23 + $0x80] sm:$0x1] %v1357_v60  ;;  %v1445_v7 = vadd.f32 %v1444_v62, %v1443_v58  ;;  %v1429_v33 = vadd.f32 %v1428_v61, %v1427_v57  ;;  %v1461_v45 = vmul.f32 %v1457_v63, %v4876_v42  ;;  %v1436_v51 = vadd.f32 %v1435_v6, %v1434_v46 }
 0x1ad   : > { %v1395_v10 = vadd.f32 %v1394_v4, %v1393_v44  ;;  %v1401_v2 = vrot.slane %v1400_v5, 1  ;;  %vm1493_vm9 = vcmask 433152   ;;  %v1454_v14 = vsel %vm234_vm0, %v1452_v9, %v1453_v52  ;;  %3574 = vrot.lane.b32.xlu0 %v4865_v32, %s4120_s7 }
 0x1ae   : > { %v1446_v12 = vrot.slane %v1445_v7, 1  ;;  %v1430_v3 = vrot.slane %v1429_v33, 2  ;;  %v1479_v13 = vsel %vm234_vm0, %v1461_v45, 0.0  ;;  %v1437_v23 = vrot.slane %v1436_v51, 2 }
 0x1af   : > { %v1402_v21 = vadd.f32 %v1401_v2, %v1400_v5  ;;  %v1480_v19 = vrot.slane %v1479_v13, 4  ;;  %v1456_v24 = vsel %vm1455_vm7, %v1449_v37, %v1454_v14  ;;  %v1491_v27 = vrot.slane %v1489_v11, 4 }
 0x1b0   : > { %v1447_v1 = vadd.f32 %v1446_v12, %v1445_v7  ;;  %v1431_v26 = vadd.f32 %v1430_v3, %v1429_v33  ;;  %v1460_v17 = vmul.f32 %v1456_v24, %v4753_v59  ;;  %v1438_v34 = vadd.f32 %v1437_v23, %v1436_v51 }
 0x1b1   : > { %v1481_v28 = vadd.f32 %v1480_v19, %v1479_v13  ;;  %v1490_v29 = vrot.slane %v1487_v15, 4  ;;  %vm1531_vm11 = vcmask 424960   ;;  %v1495_v36 = vsel %vm1493_vm9, %v1489_v11, %v1491_v27 }
 0x1b2   : > { %v1716_v22 = vsel %vm563_vm4, %v1409_v43, %v1447_v1  ;;  %v1432_v30 = vrot.slane %v1431_v26, 1  ;;  %v1463_v31 = vcombine.high %v1460_v17, %v1460_v17  ;;  %v1465_v8 = vsel %vm234_vm0, %v1460_v17, 0.0 }
 0x1b3   : > { %v1439_v18 = vrot.slane %v1438_v34, 1  ;;  %v1482_v0 = vrot.slane %v1481_v28, 2  ;;  %v1466_v35 = vrot.slane %v1465_v8, 4  ;;  %v1499_v53 = vmul.f32 %v1495_v36, %v4876_v42 }
 0x1b4   : > { %v1433_v40 = vadd.f32 %v1432_v30, %v1431_v26  ;;  %v1472_v41 = vsel %vm234_vm0, %v1463_v31, 0.0  ;;  %v1492_v20 = vsel %vm234_vm0, %v1490_v29, %v1491_v27  ;;  %v1529_v58 = vrot.slane %v1527_v38, 4 }
 0x1b5   : > { %v1440_v47 = vadd.f32 %v1439_v18, %v1438_v34  ;;  %v1483_v48 = vadd.f32 %v1482_v0, %v1481_v28  ;;  %v1467_v49 = vadd.f32 %v1466_v35, %v1465_v8  ;;  %v1473_v50 = vrot.slane %v1472_v41, 4  ;;  %v1565_v34 = vpop.permute.xlu1 %1564  ;;  %v1563_v0 = vpop.permute.xlu0 %1562 }
 0x1b6   : > { %v1714_v52 = vsel %vm563_vm4, %v1395_v10, %v1433_v40  ;;  %v1517_v55 = vsel %vm234_vm0, %v1499_v53, 0.0  ;;  %v1494_v56 = vsel %vm1493_vm9, %v1487_v15, %v1492_v20  ;;  %v1533_v60 = vsel %vm1531_vm11, %v1527_v38, %v1529_v58 }
 0x1b7   : > { %v1715_v39 = vsel %vm563_vm4, %v1402_v21, %v1440_v47  ;;  %v1484_v37 = vrot.slane %v1483_v48, 1  ;;  %v1468_v43 = vrot.slane %v1467_v49, 2  ;;  %v1474_v44 = vadd.f32 %v1473_v50, %v1472_v41 }
 0x1b8   : > { %v1518_v54 = vrot.slane %v1517_v55, 4  ;;  %v1498_v57 = vmul.f32 %v1494_v56, %v4753_v59  ;;  %v1528_v62 = vrot.slane %v1525_v25, 4  ;;  %v1537_v5 = vmul.f32 %v1533_v60, %v4876_v42 }
 0x1b9   : > { %v1485_v61 = vadd.f32 %v1484_v37, %v1483_v48  ;;  %v1469_v46 = vadd.f32 %v1468_v43, %v1467_v49  ;;  %v1475_v4 = vrot.slane %v1474_v44, 2  ;;  %vm1569_vm12 = vcmask 416768  }
 0x1ba   : > { %v1519_v6 = vadd.f32 %v1518_v54, %v1517_v55  ;;  %v1501_v63 = vcombine.high %v1498_v57, %v1498_v57  ;;  %v1503_v7 = vsel %vm234_vm0, %v1498_v57, 0.0  ;;  %v1530_v33 = vsel %vm234_vm0, %v1528_v62, %v1529_v58 }
 0x1bb   : > { %v1719_v45 = vsel %vm567_vm5, %v1716_v22, %v1485_v61  ;;  %v1470_v9 = vrot.slane %v1469_v46, 1  ;;  %v1476_v10 = vadd.f32 %v1475_v4, %v1474_v44  ;;  %v1504_v2 = vrot.slane %v1503_v7, 4  ;;  %v1601_v61 = vpop.permute.xlu0 %1600 }
 0x1bc   : > { %v1520_v51 = vrot.slane %v1519_v6, 2  ;;  %v1510_v11 = vsel %vm234_vm0, %v1501_v63, 0.0  ;;  %v1555_v12 = vsel %vm234_vm0, %v1537_v5, 0.0  ;;  %v1532_v3 = vsel %vm1531_vm11, %v1525_v25, %v1530_v33 }
 0x1bd   : > { %v1471_v13 = vadd.f32 %v1470_v9, %v1469_v46  ;;  %v1477_v14 = vrot.slane %v1476_v10, 1  ;;  %v1505_v15 = vadd.f32 %v1504_v2, %v1503_v7  ;;  %v1511_v21 = vrot.slane %v1510_v11, 4 }
 0x1be   : > { %v1521_v23 = vadd.f32 %v1520_v51, %v1519_v6  ;;  %v1556_v19 = vrot.slane %v1555_v12, 4  ;;  %v1536_v24 = vmul.f32 %v1532_v3, %v4753_v59  ;;  %v1567_v40 = vrot.slane %v1565_v34, 4 }
 0x1bf   : > { %v1478_v1 = vadd.f32 %v1477_v14, %v1476_v10  ;;  %v1717_v26 = vsel %vm567_vm5, %v1714_v52, %v1471_v13  ;;  %v1506_v17 = vrot.slane %v1505_v15, 2  ;;  %v1512_v27 = vadd.f32 %v1511_v21, %v1510_v11  ;;  %v4957_v10 = vld [vmem:[%s4314_s28] sm:$0xff] }
 0x1c0   : > { %v1522_v28 = vrot.slane %v1521_v23, 1  ;;  %v1557_v29 = vadd.f32 %v1556_v19, %v1555_v12  ;;  %v1539_v22 = vcombine.high %v1536_v24, %v1536_v24  ;;  %v1541_v30 = vsel %vm234_vm0, %v1536_v24, 0.0 }
 0x1c1   : > { %v1718_v31 = vsel %vm567_vm5, %v1715_v39, %v1478_v1  ;;  %v1507_v59 = vadd.f32 %v1506_v17, %v1505_v15  ;;  %v1513_v8 = vrot.slane %v1512_v27, 2  ;;  %v1542_v18 = vrot.slane %v1541_v30, 4  ;;  %v1603_v39 = vpop.permute.xlu1 %1602 }
 0x1c2   : > { %v1523_v35 = vadd.f32 %v1522_v28, %v1521_v23  ;;  %v1558_v36 = vrot.slane %v1557_v29, 2  ;;  %v1548_v38 = vsel %vm234_vm0, %v1539_v22, 0.0  ;;  %v1571_v50 = vsel %vm1569_vm12, %v1565_v34, %v1567_v40 }
 0x1c3   : > { %v1508_v41 = vrot.slane %v1507_v59, 1  ;;  %v1514_v53 = vadd.f32 %v1513_v8, %v1512_v27  ;;  %v1543_v20 = vadd.f32 %v1542_v18, %v1541_v30  ;;  %v1549_v47 = vrot.slane %v1548_v38, 4  ;;  %v1639_v27 = vpop.permute.xlu0 %1638 }
 0x1c4   : > { %v1722_v48 = vsel %vm571_vm8, %v1719_v45, %v1523_v35  ;;  %v1559_v49 = vadd.f32 %v1558_v36, %v1557_v29  ;;  %v1566_v25 = vrot.slane %v1563_v0, 4  ;;  %v1575_v43 = vmul.f32 %v1571_v50, %v4876_v42 }
 0x1c5   : > { %v1509_v52 = vadd.f32 %v1508_v41, %v1507_v59  ;;  %v1515_v55 = vrot.slane %v1514_v53, 1  ;;  %v1544_v56 = vrot.slane %v1543_v20, 2  ;;  %v1550_v58 = vadd.f32 %v1549_v47, %v1548_v38  ;;  %v1641_v15 = vpop.permute.xlu1 %1640 }
 0x1c6   : > { %v1560_v37 = vrot.slane %v1559_v49, 1  ;;  %v1568_v44 = vsel %vm234_vm0, %v1566_v25, %v1567_v40  ;;  %vm1607_vm2 = vcmask 408576   ;;  %v1593_v4 = vsel %vm234_vm0, %v1575_v43, 0.0 }
 0x1c7   : > { %v1516_v54 = vadd.f32 %v1515_v55, %v1514_v53  ;;  %v1720_v57 = vsel %vm571_vm8, %v1717_v26, %v1509_v52  ;;  %v1545_v60 = vadd.f32 %v1544_v56, %v1543_v20  ;;  %v1551_v62 = vrot.slane %v1550_v58, 2 }
 0x1c8   : > { %v1561_v46 = vadd.f32 %v1560_v37, %v1559_v49  ;;  %v1570_v5 = vsel %vm1569_vm12, %v1563_v0, %v1568_v44  ;;  %v1605_v6 = vrot.slane %v1603_v39, 4  ;;  %v1594_v45 = vrot.slane %v1593_v4, 4 }
 0x1c9   : > { %v1721_v63 = vsel %vm571_vm8, %v1718_v31, %v1516_v54  ;;  %v1546_v7 = vrot.slane %v1545_v60, 1  ;;  %v1552_v33 = vadd.f32 %v1551_v62, %v1550_v58  ;;  %v1574_v2 = vmul.f32 %v4957_v10, %v1570_v5 }
 0x1ca   : > { %v1725_v9 = vsel %vm234_vm0, %v1722_v48, %v1561_v46  ;;  %v1609_v51 = vsel %vm1607_vm2, %v1603_v39, %v1605_v6  ;;  %v1604_v11 = vrot.slane %v1601_v61, 4  ;;  %v1595_v13 = vadd.f32 %v1594_v45, %v1593_v4 }
 0x1cb   : > { %v1547_v12 = vadd.f32 %v1546_v7, %v1545_v60  ;;  %v1553_v3 = vrot.slane %v1552_v33, 1  ;;  %v1613_v14 = vmul.f32 %v1609_v51, %v4876_v42  ;;  %v1577_v21 = vcombine.high %v1574_v2, %v1574_v2 }
 0x1cc   : > { %v1579_v23 = vsel %vm234_vm0, %v1574_v2, 0.0  ;;  %v1606_v19 = vsel %vm234_vm0, %v1604_v11, %v1605_v6  ;;  %vm1645_vm6 = vcmask 400384   ;;  %v1596_v26 = vrot.slane %v1595_v13, 2 }
 0x1cd   : > { %v1554_v24 = vadd.f32 %v1553_v3, %v1552_v33  ;;  %v1723_v1 = vsel %vm234_vm0, %v1720_v57, %v1547_v12  ;;  %v1580_v17 = vrot.slane %v1579_v23, 4  ;;  %v1586_v34 = vsel %vm234_vm0, %v1577_v21, 0.0 }
 0x1ce   : > { %v1631_v28 = vsel %vm234_vm0, %v1613_v14, 0.0  ;;  %v1608_v29 = vsel %vm1607_vm2, %v1601_v61, %v1606_v19  ;;  %v1643_v22 = vrot.slane %v1641_v15, 4  ;;  %v1597_v31 = vadd.f32 %v1596_v26, %v1595_v13  ;;  %v1677_v14 = vpop.permute.xlu0 %1676 }
 0x1cf   : > { %v1724_v30 = vsel %vm234_vm0, %v1721_v63, %v1554_v24  ;;  %v1581_v59 = vadd.f32 %v1580_v17, %v1579_v23  ;;  %v1587_v8 = vrot.slane %v1586_v34, 4  ;;  %v1632_v18 = vrot.slane %v1631_v28, 4 }
 0x1d0   : > { %v1612_v0 = vmul.f32 %v4957_v10, %v1608_v29  ;;  %v1647_v35 = vsel %vm1645_vm6, %v1641_v15, %v1643_v22  ;;  %v1642_v36 = vrot.slane %v1639_v27, 4  ;;  %v1598_v38 = vrot.slane %v1597_v31, 1 }
 0x1d1   : > { %v1582_v40 = vrot.slane %v1581_v59, 2  ;;  %v1588_v41 = vadd.f32 %v1587_v8, %v1586_v34  ;;  %v1651_v53 = vmul.f32 %v1647_v35, %v4876_v42  ;;  %v1633_v20 = vadd.f32 %v1632_v18, %v1631_v28 }
 0x1d2   : > { %v1615_v47 = vcombine.high %v1612_v0, %v1612_v0  ;;  %v1617_v48 = vsel %vm234_vm0, %v1612_v0, 0.0  ;;  %v1644_v49 = vsel %vm234_vm0, %v1642_v36, %v1643_v22  ;;  %v1599_v50 = vadd.f32 %v1598_v38, %v1597_v31 }
 0x1d3   : > { %v1583_v25 = vadd.f32 %v1582_v40, %v1581_v59  ;;  %v1589_v52 = vrot.slane %v1588_v41, 2  ;;  %v1618_v55 = vrot.slane %v1617_v48, 4  ;;  %v1634_v56 = vrot.slane %v1633_v20, 2 }
 0x1d4   : > { %v1624_v58 = vsel %vm234_vm0, %v1615_v47, 0.0  ;;  %v1669_v39 = vsel %vm234_vm0, %v1651_v53, 0.0  ;;  %v1646_v37 = vsel %vm1645_vm6, %v1639_v27, %v1644_v49  ;;  %v1728_v43 = vsel %vm578_vm10, %v1725_v9, %v1599_v50  ;;  %v1679_v9 = vpop.permute.xlu1 %1678 }
 0x1d5   : > { %v1584_v44 = vrot.slane %v1583_v25, 1  ;;  %v1590_v54 = vadd.f32 %v1589_v52, %v1588_v41  ;;  %v1619_v57 = vadd.f32 %v1618_v55, %v1617_v48  ;;  %v1635_v60 = vadd.f32 %v1634_v56, %v1633_v20  ;;  %v5003_v48 = vld [vmem:[%s4314_s28 + $0x8] sm:$0xf]  ;;  %v1755_v55 = vpop.permute.xlu0 %1754 }
 0x1d6   : > { %v1625_v62 = vrot.slane %v1624_v58, 4  ;;  %v1670_v61 = vrot.slane %v1669_v39, 4  ;;  %v1650_v46 = vmul.f32 %v4957_v10, %v1646_v37  ;;  %vm1683_vm7 = vcmask 392192  }
 0x1d7   : > { %v1585_v4 = vadd.f32 %v1584_v44, %v1583_v25  ;;  %v1591_v5 = vrot.slane %v1590_v54, 1  ;;  %v1620_v6 = vrot.slane %v1619_v57, 2  ;;  %v1636_v63 = vrot.slane %v1635_v60, 1 }
 0x1d8   : > { %v1626_v7 = vadd.f32 %v1625_v62, %v1624_v58  ;;  %v1671_v33 = vadd.f32 %v1670_v61, %v1669_v39  ;;  %v1653_v45 = vcombine.high %v1650_v46, %v1650_v46  ;;  %v1655_v32 = vsel %vm234_vm0, %v1650_v46, 0.0  ;;  %v1757_v8 = vpop.permute.xlu1 %1756 }
 0x1d9   : > { %v1592_v2 = vadd.f32 %v1591_v5, %v1590_v54  ;;  %v1726_v16 = vsel %vm578_vm10, %v1723_v1, %v1585_v4  ;;  %v1621_v51 = vadd.f32 %v1620_v6, %v1619_v57  ;;  %v1637_v11 = vadd.f32 %v1636_v63, %v1635_v60 }
 0x1da   : > { %v1627_v12 = vrot.slane %v1626_v7, 2  ;;  %v1672_v3 = vrot.slane %v1671_v33, 2  ;;  %v1656_v13 = vrot.slane %v1655_v32, 4  ;;  %v1662_v23 = vsel %vm234_vm0, %v1653_v45, 0.0 }
 0x1db   : > { %v1727_v15 = vsel %vm578_vm10, %v1724_v30, %v1592_v2  ;;  %v1622_v21 = vrot.slane %v1621_v51, 1  ;;  %v1681_v19 = vrot.slane %v1679_v9, 4  ;;  %v1731_v24 = vsel %vm582_vm13, %v1728_v43, %v1637_v11  ;;  %v1793_v11 = vpop.permute.xlu0 %1792 }
 0x1dc   : > { %v1628_v26 = vadd.f32 %v1627_v12, %v1626_v7  ;;  %v1673_v17 = vadd.f32 %v1672_v3, %v1671_v33  ;;  %v1657_v27 = vadd.f32 %v1656_v13, %v1655_v32  ;;  %v1663_v34 = vrot.slane %v1662_v23, 4  ;;  %v1795_v4 = vpop.permute.xlu1 %1794 }
 0x1dd   : > { %v1623_v1 = vadd.f32 %v1622_v21, %v1621_v51  ;;  %v1685_v28 = vsel %vm1683_vm7, %v1679_v9, %v1681_v19  ;;  %v1680_v29 = vrot.slane %v1677_v14, 4  ;;  %vm1761_vm9 = vcmask 261120   ;;  %v5016_v9 = vld [vmem:[%s4314_s28] sm:$0xff] }
 0x1de   : > { %v1629_v22 = vrot.slane %v1628_v26, 1  ;;  %v1674_v31 = vrot.slane %v1673_v17, 1  ;;  %v1658_v59 = vrot.slane %v1657_v27, 2  ;;  %v1689_v30 = vmul.f32 %v1685_v28, %v4876_v42 }
 0x1df   : > { %v1729_v18 = vsel %vm582_vm13, %v1726_v16, %v1623_v1  ;;  %v1664_v0 = vadd.f32 %v1663_v34, %v1662_v23  ;;  %v1682_v35 = vsel %vm234_vm0, %v1680_v29, %v1681_v19  ;;  %v1759_v42 = vrot.slane %v1757_v8, 4 }
 0x1e0   : > { %v1630_v36 = vadd.f32 %v1629_v22, %v1628_v26  ;;  %v1675_v38 = vadd.f32 %v1674_v31, %v1673_v17  ;;  %v1659_v40 = vadd.f32 %v1658_v59, %v1657_v27  ;;  %v1707_v41 = vsel %vm234_vm0, %v1689_v30, 0.0 }
 0x1e1   : > { %v1665_v53 = vrot.slane %v1664_v0, 2  ;;  %v1708_v20 = vrot.slane %v1707_v41, 4  ;;  %v1684_v47 = vsel %vm1683_vm7, %v1677_v14, %v1682_v35  ;;  %v1763_v37 = vsel %vm1761_vm9, %v1757_v8, %v1759_v42 }
 0x1e2   : > { %v1730_v49 = vsel %vm582_vm13, %v1727_v15, %v1630_v36  ;;  %v1734_v50 = vsel %vm586_vm15, %v1731_v24, %v1675_v38  ;;  %v1660_v25 = vrot.slane %v1659_v40, 1  ;;  %v1688_v52 = vmul.f32 %v4957_v10, %v1684_v47 }
 0x1e3   : > { %v1737_v56 = vmul.f32 0.25, %v1734_v50  ;;  %v1666_v58 = vadd.f32 %v1665_v53, %v1664_v0  ;;  %v1709_v39 = vadd.f32 %v1708_v20, %v1707_v41  ;;  %v1767_v57 = vmul.f32 %v1763_v37, %v5003_v48  ;;  %v1831_v37 = vpop.permute.xlu0 %1830 }
 0x1e4   : > { %v1661_v43 = vadd.f32 %v1660_v25, %v1659_v40  ;;  %v1691_v44 = vcombine.high %v1688_v52, %v1688_v52  ;;  %v1693_v54 = vsel %vm234_vm0, %v1688_v52, 0.0  ;;  %v1758_v46 = vrot.slane %v1755_v55, 4 }
 0x1e5   : > { %3788 = vst [vmem:[%s4569_s23 + $0xa0] sm:$0xff] %v1737_v56  ;;  %v1667_v60 = vrot.slane %v1666_v58, 1  ;;  %v1710_v62 = vrot.slane %v1709_v39, 2  ;;  %v1694_v61 = vrot.slane %v1693_v54, 4  ;;  %v1785_v6 = vsel %vm234_vm0, %v1767_v57, 0.0 }
 0x1e6   : > { %v1732_v10 = vsel %vm586_vm15, %v1729_v18, %v1661_v43  ;;  %v1700_v5 = vsel %vm234_vm0, %v1691_v44, 0.0  ;;  %vm1799_vm11 = vcmask 252928   ;;  %v1786_v16 = vrot.slane %v1785_v6, 4 }
 0x1e7   : > { %v1668_v63 = vadd.f32 %v1667_v60, %v1666_v58  ;;  %v1735_v7 = vmul.f32 0.25, %v1732_v10  ;;  %v1711_v33 = vadd.f32 %v1710_v62, %v1709_v39  ;;  %v1695_v45 = vadd.f32 %v1694_v61, %v1693_v54 }
 0x1e8   : > { %v1701_v2 = vrot.slane %v1700_v5, 4  ;;  %v1760_v51 = vsel %vm234_vm0, %v1758_v46, %v1759_v42  ;;  %v1797_v32 = vrot.slane %v1795_v4, 4  ;;  %v1787_v23 = vadd.f32 %v1786_v16, %v1785_v6 }
 0x1e9   : > { %v1733_v12 = vsel %vm586_vm15, %v1730_v49, %v1668_v63  ;;  %3786 = vst [vmem:[%s4569_s23 + $0x90] sm:$0xff] %v1735_v7  ;;  %v1712_v3 = vrot.slane %v1711_v33, 1  ;;  %v1696_v13 = vrot.slane %v1695_v45, 2  ;;  %v1762_v14 = vsel %vm1761_vm9, %v1755_v55, %v1760_v51  ;;  %v1833_v55 = vpop.permute.xlu1 %1832 }
 0x1ea   : > { %v1736_v15 = vmul.f32 0.25, %v1733_v12  ;;  %v1702_v21 = vadd.f32 %v1701_v2, %v1700_v5  ;;  %v1766_v19 = vmul.f32 %v1762_v14, %v5016_v9  ;;  %v1801_v17 = vsel %vm1799_vm11, %v1795_v4, %v1797_v32 }
 0x1eb   : > { %v1713_v24 = vadd.f32 %v1712_v3, %v1711_v33  ;;  %v1697_v26 = vadd.f32 %v1696_v13, %v1695_v45  ;;  %v1796_v27 = vrot.slane %v1793_v11, 4  ;;  %v1788_v34 = vrot.slane %v1787_v23, 2 }
 0x1ec   : > { %3787 = vst [vmem:[%s4569_s23 + $0x98] sm:$0xff] %v1736_v15  ;;  %v1703_v1 = vrot.slane %v1702_v21, 2  ;;  %v1769_v28 = vcombine.high %v1766_v19, %v1766_v19  ;;  %v1771_v29 = vsel %vm234_vm0, %v1766_v19, 0.0  ;;  %v1805_v30 = vmul.f32 %v1801_v17, %v5003_v48  ;;  %v1869_v15 = vpop.permute.xlu0 %1868 }
 0x1ed   : > { %v1740_v22 = vmul.f32 0.25, %v1713_v24  ;;  %v1698_v31 = vrot.slane %v1697_v26, 1  ;;  %v1772_v59 = vrot.slane %v1771_v29, 4  ;;  %v1789_v18 = vadd.f32 %v1788_v34, %v1787_v23  ;;  %v1871_v14 = vpop.permute.xlu1 %1870 }
 0x1ee   : > { %v1704_v8 = vadd.f32 %v1703_v1, %v1702_v21  ;;  %v1778_v0 = vsel %vm234_vm0, %v1769_v28, 0.0  ;;  %v1798_v35 = vsel %vm234_vm0, %v1796_v27, %v1797_v32  ;;  %v1823_v41 = vsel %vm234_vm0, %v1805_v30, 0.0 }
 0x1ef   : > { %3791 = vst [vmem:[%s4569_s23 + $0xb8] sm:$0x1] %v1740_v22  ;;  %v1699_v36 = vadd.f32 %v1698_v31, %v1697_v26  ;;  %v1773_v38 = vadd.f32 %v1772_v59, %v1771_v29  ;;  %v1779_v40 = vrot.slane %v1778_v0, 4  ;;  %v1790_v20 = vrot.slane %v1789_v18, 1 }
 0x1f0   : > { %v1705_v53 = vrot.slane %v1704_v8, 1  ;;  %v1824_v47 = vrot.slane %v1823_v41, 4  ;;  %v1800_v42 = vsel %vm1799_vm11, %v1793_v11, %v1798_v35  ;;  %vm1837_vm12 = vcmask 244736  }
 0x1f1   : > { %v1738_v49 = vmul.f32 0.25, %v1699_v36  ;;  %v1774_v50 = vrot.slane %v1773_v38, 2  ;;  %v1780_v25 = vadd.f32 %v1779_v40, %v1778_v0  ;;  %v1804_v52 = vmul.f32 %v1800_v42, %v5016_v9 }
 0x1f2   : > { %v1706_v56 = vadd.f32 %v1705_v53, %v1704_v8  ;;  %v1791_v58 = vadd.f32 %v1790_v20, %v1789_v18  ;;  %v1825_v39 = vadd.f32 %v1824_v47, %v1823_v41  ;;  %v1835_v46 = vrot.slane %v1833_v55, 4  ;;  %v1909_v53 = vpop.permute.xlu1 %1908 }
 0x1f3   : > { %3789 = vst [vmem:[%s4569_s23 + $0xa8] sm:$0x1] %v1738_v49  ;;  %v1775_v43 = vadd.f32 %v1774_v50, %v1773_v38  ;;  %v1781_v44 = vrot.slane %v1780_v25, 2  ;;  %v1807_v54 = vcombine.high %v1804_v52, %v1804_v52  ;;  %v1809_v57 = vsel %vm234_vm0, %v1804_v52, 0.0 }
 0x1f4   : > { %v1739_v60 = vmul.f32 0.25, %v1706_v56  ;;  %v1826_v62 = vrot.slane %v1825_v39, 2  ;;  %v1810_v61 = vrot.slane %v1809_v57, 4  ;;  %v1834_v6 = vrot.slane %v1831_v37, 4 }
 0x1f5   : > { %v1776_v4 = vrot.slane %v1775_v43, 1  ;;  %v1782_v10 = vadd.f32 %v1781_v44, %v1780_v25  ;;  %v1816_v5 = vsel %vm234_vm0, %v1807_v54, 0.0  ;;  %v1839_v45 = vsel %vm1837_vm12, %v1833_v55, %v1835_v46 }
 0x1f6   : > { %3790 = vst [vmem:[%s4569_s23 + $0xb0] sm:$0x1] %v1739_v60  ;;  %v1827_v63 = vadd.f32 %v1826_v62, %v1825_v39  ;;  %v1811_v7 = vadd.f32 %v1810_v61, %v1809_v57  ;;  %v1817_v33 = vrot.slane %v1816_v5, 4  ;;  %v1843_v51 = vmul.f32 %v1839_v45, %v5003_v48  ;;  %v1907_v57 = vpop.permute.xlu0 %1906 }
 0x1f7   : > { %v1777_v2 = vadd.f32 %v1776_v4, %v1775_v43  ;;  %v1783_v16 = vrot.slane %v1782_v10, 1  ;;  %v1836_v32 = vsel %vm234_vm0, %v1834_v6, %v1835_v46  ;;  %vm1875_vm2 = vcmask 236544  }
 0x1f8   : > { %v1828_v11 = vrot.slane %v1827_v63, 1  ;;  %v1812_v12 = vrot.slane %v1811_v7, 2  ;;  %v1818_v3 = vadd.f32 %v1817_v33, %v1816_v5  ;;  %v1838_v13 = vsel %vm1837_vm12, %v1831_v37, %v1836_v32 }
 0x1f9   : > { %v1784_v21 = vadd.f32 %v1783_v16, %v1782_v10  ;;  %v1861_v23 = vsel %vm234_vm0, %v1843_v51, 0.0  ;;  %v1842_v19 = vmul.f32 %v1838_v13, %v5016_v9  ;;  %v1873_v28 = vrot.slane %v1871_v14, 4 }
 0x1fa   : > { %v1829_v24 = vadd.f32 %v1828_v11, %v1827_v63  ;;  %v1813_v26 = vadd.f32 %v1812_v12, %v1811_v7  ;;  %v1819_v17 = vrot.slane %v1818_v3, 2  ;;  %v1862_v27 = vrot.slane %v1861_v23, 4 }
 0x1fb   : > { %v1845_v1 = vcombine.high %v1842_v19, %v1842_v19  ;;  %v1847_v34 = vsel %vm234_vm0, %v1842_v19, 0.0  ;;  %v1872_v29 = vrot.slane %v1869_v15, 4  ;;  %v1877_v0 = vsel %vm1875_vm2, %v1871_v14, %v1873_v28  ;;  %v1947_v19 = vpop.permute.xlu1 %1946 }
 0x1fc   : > { %v2098_v22 = vsel %vm563_vm4, %v1791_v58, %v1829_v24  ;;  %v1814_v31 = vrot.slane %v1813_v26, 1  ;;  %v1820_v59 = vadd.f32 %v1819_v17, %v1818_v3  ;;  %v1863_v30 = vadd.f32 %v1862_v27, %v1861_v23  ;;  %v1945_v24 = vpop.permute.xlu0 %1944 }
 0x1fd   : > { %v1848_v8 = vrot.slane %v1847_v34, 4  ;;  %v1854_v18 = vsel %vm234_vm0, %v1845_v1, 0.0  ;;  %v1874_v35 = vsel %vm234_vm0, %v1872_v29, %v1873_v28  ;;  %v1881_v47 = vmul.f32 %v1877_v0, %v5003_v48 }
 0x1fe   : > { %v1815_v36 = vadd.f32 %v1814_v31, %v1813_v26  ;;  %v1821_v38 = vrot.slane %v1820_v59, 1  ;;  %v1864_v40 = vrot.slane %v1863_v30, 2  ;;  %v1855_v41 = vrot.slane %v1854_v18, 4 }
 0x1ff   : > { %v1849_v20 = vadd.f32 %v1848_v8, %v1847_v34  ;;  %v1876_v42 = vsel %vm1875_vm2, %v1869_v15, %v1874_v35  ;;  %vm1913_vm6 = vcmask 228352   ;;  %v1899_v56 = vsel %vm234_vm0, %v1881_v47, 0.0 }
 0x200   : > { %v1822_v49 = vadd.f32 %v1821_v38, %v1820_v59  ;;  %v2096_v50 = vsel %vm563_vm4, %v1777_v2, %v1815_v36  ;;  %v1865_v25 = vadd.f32 %v1864_v40, %v1863_v30  ;;  %v1856_v52 = vadd.f32 %v1855_v41, %v1854_v18 }
 0x201   : > { %v1850_v55 = vrot.slane %v1849_v20, 2  ;;  %v1880_v58 = vmul.f32 %v1876_v42, %v5016_v9  ;;  %v1911_v39 = vrot.slane %v1909_v53, 4  ;;  %v1900_v54 = vrot.slane %v1899_v56, 4  ;;  %v1985_v42 = vpop.permute.xlu1 %1984 }
 0x202   : > { %v2097_v37 = vsel %vm563_vm4, %v1784_v21, %v1822_v49  ;;  %v1866_v43 = vrot.slane %v1865_v25, 1  ;;  %v1857_v44 = vrot.slane %v1856_v52, 2  ;;  %v1910_v45 = vrot.slane %v1907_v57, 4 }
 0x203   : > { %v1851_v60 = vadd.f32 %v1850_v55, %v1849_v20  ;;  %v1883_v62 = vcombine.high %v1880_v58, %v1880_v58  ;;  %v1885_v61 = vsel %vm234_vm0, %v1880_v58, 0.0  ;;  %v1915_v46 = vsel %vm1913_vm6, %v1909_v53, %v1911_v39 }
 0x204   : > { %v1867_v4 = vadd.f32 %v1866_v43, %v1865_v25  ;;  %v1858_v10 = vadd.f32 %v1857_v44, %v1856_v52  ;;  %v1901_v5 = vadd.f32 %v1900_v54, %v1899_v56  ;;  %v1886_v6 = vrot.slane %v1885_v61, 4 }
 0x205   : > { %v1852_v63 = vrot.slane %v1851_v60, 1  ;;  %v1892_v7 = vsel %vm234_vm0, %v1883_v62, 0.0  ;;  %v1919_v33 = vmul.f32 %v1915_v46, %v5003_v48  ;;  %v1912_v13 = vsel %vm234_vm0, %v1910_v45, %v1911_v39 }
 0x206   : > { %v2101_v2 = vsel %vm567_vm5, %v2098_v22, %v1867_v4  ;;  %v1859_v16 = vrot.slane %v1858_v10, 1  ;;  %v1902_v51 = vrot.slane %v1901_v5, 2  ;;  %v1887_v32 = vadd.f32 %v1886_v6, %v1885_v61 }
 0x207   : > { %v1853_v11 = vadd.f32 %v1852_v63, %v1851_v60  ;;  %v1893_v12 = vrot.slane %v1892_v7, 4  ;;  %v1937_v3 = vsel %vm234_vm0, %v1919_v33, 0.0  ;;  %v1914_v27 = vsel %vm1913_vm6, %v1907_v57, %v1912_v13 }
 0x208   : > { %v1860_v14 = vadd.f32 %v1859_v16, %v1858_v10  ;;  %v1903_v15 = vadd.f32 %v1902_v51, %v1901_v5  ;;  %v1888_v21 = vrot.slane %v1887_v32, 2  ;;  %v1938_v23 = vrot.slane %v1937_v3, 4 }
 0x209   : > { %v2099_v26 = vsel %vm567_vm5, %v2096_v50, %v1853_v11  ;;  %v1894_v17 = vadd.f32 %v1893_v12, %v1892_v7  ;;  %vm1951_vm7 = vcmask 220160   ;;  %v1918_v31 = vmul.f32 %v1914_v27, %v5016_v9 }
 0x20a   : > { %v2100_v1 = vsel %vm567_vm5, %v2097_v37, %v1860_v14  ;;  %v1904_v34 = vrot.slane %v1903_v15, 1  ;;  %v1889_v28 = vadd.f32 %v1888_v21, %v1887_v32  ;;  %v1939_v29 = vadd.f32 %v1938_v23, %v1937_v3  ;;  %v1983_v37 = vpop.permute.xlu0 %1982  ;;  %v2023_v14 = vpop.permute.xlu1 %2022 }
 0x20b   : > { %v1895_v22 = vrot.slane %v1894_v17, 2  ;;  %v1949_v59 = vrot.slane %v1947_v19, 4  ;;  %v1948_v30 = vrot.slane %v1945_v24, 4  ;;  %vm1989_vm9 = vcmask 211968  }
 0x20c   : > { %v1905_v8 = vadd.f32 %v1904_v34, %v1903_v15  ;;  %v1890_v18 = vrot.slane %v1889_v28, 1  ;;  %v1940_v0 = vrot.slane %v1939_v29, 2  ;;  %v1921_v36 = vcombine.high %v1918_v31, %v1918_v31 }
 0x20d   : > { %v1896_v35 = vadd.f32 %v1895_v22, %v1894_v17  ;;  %v1923_v38 = vsel %vm234_vm0, %v1918_v31, 0.0  ;;  %v1953_v40 = vsel %vm1951_vm7, %v1947_v19, %v1949_v59  ;;  %v1950_v52 = vsel %vm234_vm0, %v1948_v30, %v1949_v59 }
 0x20e   : > { %v2104_v41 = vsel %vm571_vm8, %v2101_v2, %v1905_v8  ;;  %v1891_v53 = vadd.f32 %v1890_v18, %v1889_v28  ;;  %v1941_v20 = vadd.f32 %v1940_v0, %v1939_v29  ;;  %v1924_v47 = vrot.slane %v1923_v38, 4 }
 0x20f   : > { %v1897_v49 = vrot.slane %v1896_v35, 1  ;;  %v1930_v50 = vsel %vm234_vm0, %v1921_v36, 0.0  ;;  %v1957_v25 = vmul.f32 %v1953_v40, %v5003_v48  ;;  %v1952_v54 = vsel %vm1951_vm7, %v1945_v24, %v1950_v52 }
 0x210   : > { %v2102_v55 = vsel %vm571_vm8, %v2099_v26, %v1891_v53  ;;  %v1942_v56 = vrot.slane %v1941_v20, 1  ;;  %v1925_v58 = vadd.f32 %v1924_v47, %v1923_v38  ;;  %v1931_v39 = vrot.slane %v1930_v50, 4 }
 0x211   : > { %v1898_v43 = vadd.f32 %v1897_v49, %v1896_v35  ;;  %v1975_v44 = vsel %vm234_vm0, %v1957_v25, 0.0  ;;  %v1987_v57 = vrot.slane %v1985_v42, 4  ;;  %v1956_v10 = vmul.f32 %v1952_v54, %v5016_v9  ;;  %v2061_v54 = vpop.permute.xlu1 %2060 }
 0x212   : > { %v1943_v60 = vadd.f32 %v1942_v56, %v1941_v20  ;;  %v1926_v62 = vrot.slane %v1925_v58, 2  ;;  %v1932_v61 = vadd.f32 %v1931_v39, %v1930_v50  ;;  %v1976_v46 = vrot.slane %v1975_v44, 4 }
 0x213   : > { %v2103_v4 = vsel %vm571_vm8, %v2100_v1, %v1898_v43  ;;  %v1991_v5 = vsel %vm1989_vm9, %v1985_v42, %v1987_v57  ;;  %v1986_v6 = vrot.slane %v1983_v37, 4  ;;  %v1959_v2 = vcombine.high %v1956_v10, %v1956_v10 }
 0x214   : > { %v2107_v63 = vsel %vm234_vm0, %v2104_v41, %v1943_v60  ;;  %v1927_v7 = vadd.f32 %v1926_v62, %v1925_v58  ;;  %v1933_v33 = vrot.slane %v1932_v61, 2  ;;  %v1977_v45 = vadd.f32 %v1976_v46, %v1975_v44  ;;  %v2021_v41 = vpop.permute.xlu0 %2020 }
 0x215   : > { %v1961_v16 = vsel %vm234_vm0, %v1956_v10, 0.0  ;;  %v1995_v51 = vmul.f32 %v1991_v5, %v5003_v48  ;;  %v1988_v32 = vsel %vm234_vm0, %v1986_v6, %v1987_v57  ;;  %v1968_v15 = vsel %vm234_vm0, %v1959_v2, 0.0 }
 0x216   : > { %v1928_v11 = vrot.slane %v1927_v7, 1  ;;  %v1934_v12 = vadd.f32 %v1933_v33, %v1932_v61  ;;  %v1978_v3 = vrot.slane %v1977_v45, 2  ;;  %v1962_v13 = vrot.slane %v1961_v16, 4 }
 0x217   : > { %v2013_v21 = vsel %vm234_vm0, %v1995_v51, 0.0  ;;  %v1990_v23 = vsel %vm1989_vm9, %v1983_v37, %v1988_v32  ;;  %vm2027_vm11 = vcmask 203776   ;;  %v1969_v27 = vrot.slane %v1968_v15, 4 }
 0x218   : > { %v1929_v19 = vadd.f32 %v1928_v11, %v1927_v7  ;;  %v1935_v24 = vrot.slane %v1934_v12, 1  ;;  %v1979_v26 = vadd.f32 %v1978_v3, %v1977_v45  ;;  %v1963_v17 = vadd.f32 %v1962_v13, %v1961_v16  ;;  %v2059_v6 = vpop.permute.xlu0 %2058 }
 0x219   : > { %v2014_v1 = vrot.slane %v2013_v21, 4  ;;  %v1994_v34 = vmul.f32 %v1990_v23, %v5016_v9  ;;  %v2025_v28 = vrot.slane %v2023_v14, 4  ;;  %v1970_v30 = vadd.f32 %v1969_v27, %v1968_v15 }
 0x21a   : > { %v1936_v29 = vadd.f32 %v1935_v24, %v1934_v12  ;;  %v2105_v22 = vsel %vm234_vm0, %v2102_v55, %v1929_v19  ;;  %v1980_v31 = vrot.slane %v1979_v26, 1  ;;  %v1964_v59 = vrot.slane %v1963_v17, 2  ;;  %v2441_v19 = vld [vmem:[%s4320_s29 + $0xc] sm:$0xf] }
 0x21b   : > { %v2015_v8 = vadd.f32 %v2014_v1, %v2013_v21  ;;  %v1997_v18 = vcombine.high %v1994_v34, %v1994_v34  ;;  %v1999_v0 = vsel %vm234_vm0, %v1994_v34, 0.0  ;;  %v1971_v53 = vrot.slane %v1970_v30, 2 }
 0x21c   : > { %v2106_v35 = vsel %vm234_vm0, %v2103_v4, %v1936_v29  ;;  %v1981_v36 = vadd.f32 %v1980_v31, %v1979_v26  ;;  %v1965_v38 = vadd.f32 %v1964_v59, %v1963_v17  ;;  %v2000_v40 = vrot.slane %v1999_v0, 4  ;;  %v5106_v29 = vld [vmem:[%s4314_s28 + $0x8] sm:$0xf] }
 0x21d   : > { %v2016_v20 = vrot.slane %v2015_v8, 2  ;;  %v2006_v47 = vsel %vm234_vm0, %v1997_v18, 0.0  ;;  %v2029_v42 = vsel %vm2027_vm11, %v2023_v14, %v2025_v28  ;;  %v1972_v55 = vadd.f32 %v1971_v53, %v1970_v30 }
 0x21e   : > { %v2110_v49 = vsel %vm578_vm10, %v2107_v63, %v1981_v36  ;;  %v1966_v50 = vrot.slane %v1965_v38, 1  ;;  %v2001_v25 = vadd.f32 %v2000_v40, %v1999_v0  ;;  %v2007_v52 = vrot.slane %v2006_v47, 4 }
 0x21f   : > { %v2017_v56 = vadd.f32 %v2016_v20, %v2015_v8  ;;  %v2033_v58 = vmul.f32 %v2029_v42, %v5003_v48  ;;  %v2024_v39 = vrot.slane %v2021_v41, 4  ;;  %vm2065_vm12 = vcmask 195584  }
 0x220   : > { %v1967_v37 = vadd.f32 %v1966_v50, %v1965_v38  ;;  %v2002_v43 = vrot.slane %v2001_v25, 2  ;;  %v2008_v44 = vadd.f32 %v2007_v52, %v2006_v47  ;;  %v1973_v57 = vrot.slane %v1972_v55, 1 }
 0x221   : > { %v2018_v60 = vrot.slane %v2017_v56, 1  ;;  %v2051_v62 = vsel %vm234_vm0, %v2033_v58, 0.0  ;;  %v2026_v61 = vsel %vm234_vm0, %v2024_v39, %v2025_v28  ;;  %v2063_v45 = vrot.slane %v2061_v54, 4 }
 0x222   : > { %v2108_v46 = vsel %vm578_vm10, %v2105_v22, %v1967_v37  ;;  %v2003_v4 = vadd.f32 %v2002_v43, %v2001_v25  ;;  %v2009_v10 = vrot.slane %v2008_v44, 2  ;;  %v2052_v5 = vrot.slane %v2051_v62, 4  ;;  %v5108_v22 = vpop.permute.xlu1 %2138  ;;  %v2440_v37 = vld [vmem:[%s4320_s29 + $0x4] sm:$0xff] }
 0x223   : > { %v1974_v63 = vadd.f32 %v1973_v57, %v1972_v55  ;;  %v2019_v7 = vadd.f32 %v2018_v60, %v2017_v56  ;;  %v2028_v33 = vsel %vm2027_vm11, %v2021_v41, %v2026_v61  ;;  %v2067_v3 = vsel %vm2065_vm12, %v2061_v54, %v2063_v45 }
 0x224   : > { %v2004_v2 = vrot.slane %v2003_v4, 1  ;;  %v2010_v16 = vadd.f32 %v2009_v10, %v2008_v44  ;;  %v2053_v51 = vadd.f32 %v2052_v5, %v2051_v62  ;;  %v2032_v32 = vmul.f32 %v2028_v33, %v5016_v9 }
 0x225   : > { %v2109_v11 = vsel %vm578_vm10, %v2106_v35, %v1974_v63  ;;  %v2113_v12 = vsel %vm582_vm13, %v2110_v49, %v2019_v7  ;;  %v2062_v13 = vrot.slane %v2059_v6, 4  ;;  %v2071_v26 = vmul.f32 %v2067_v3, %v5003_v48 }
 0x226   : > { %v2005_v14 = vadd.f32 %v2004_v2, %v2003_v4  ;;  %v2011_v15 = vrot.slane %v2010_v16, 1  ;;  %v2054_v21 = vrot.slane %v2053_v51, 2  ;;  %v2035_v23 = vcombine.high %v2032_v32, %v2032_v32 }
 0x227   : > { %v2037_v24 = vsel %vm234_vm0, %v2032_v32, 0.0  ;;  %v2064_v17 = vsel %vm234_vm0, %v2062_v13, %v2063_v45  ;;  %vm2143_vm2 = vcmask 64512   ;;  %v2089_v59 = vsel %vm234_vm0, %v2071_v26, 0.0 }
 0x228   : > { %v2012_v27 = vadd.f32 %v2011_v15, %v2010_v16  ;;  %v2111_v1 = vsel %vm582_vm13, %v2108_v46, %v2005_v14  ;;  %v2055_v34 = vadd.f32 %v2054_v21, %v2053_v51  ;;  %v2038_v28 = vrot.slane %v2037_v24, 4 }
 0x229   : > { %v2044_v31 = vsel %vm234_vm0, %v2035_v23, 0.0  ;;  %v2066_v30 = vsel %vm2065_vm12, %v2059_v6, %v2064_v17  ;;  %v2443_v48 = vmul.f32 %v2441_v19, %v5106_v29  ;;  %v2090_v36 = vrot.slane %v2089_v59, 4 }
 0x22a   : > { %v2112_v8 = vsel %vm582_vm13, %v2109_v11, %v2012_v27  ;;  %v2056_v18 = vrot.slane %v2055_v34, 1  ;;  %v2039_v0 = vadd.f32 %v2038_v28, %v2037_v24  ;;  %v2045_v35 = vrot.slane %v2044_v31, 4  ;;  %v2137_v11 = vpop.permute.xlu0 %2136 }
 0x22b   : > { %v2070_v38 = vmul.f32 %v2066_v30, %v5016_v9  ;;  %v2461_v40 = vsel %vm234_vm0, %v2443_v48, 0.0  ;;  %v2141_v41 = vrot.slane %v5108_v22, 4  ;;  %v2091_v49 = vadd.f32 %v2090_v36, %v2089_v59 }
 0x22c   : > { %v2057_v53 = vadd.f32 %v2056_v18, %v2055_v34  ;;  %v2040_v20 = vrot.slane %v2039_v0, 2  ;;  %v2046_v47 = vadd.f32 %v2045_v35, %v2044_v31  ;;  %v2462_v42 = vrot.slane %v2461_v40, 4 }
 0x22d   : > { %v2073_v50 = vcombine.high %v2070_v38, %v2070_v38  ;;  %v2075_v25 = vsel %vm234_vm0, %v2070_v38, 0.0  ;;  %v2145_v52 = vsel %vm2143_vm2, %v5108_v22, %v2141_v41  ;;  %v2092_v44 = vrot.slane %v2091_v49, 2 }
 0x22e   : > { %v2116_v55 = vsel %vm586_vm15, %v2113_v12, %v2057_v53  ;;  %v2041_v56 = vadd.f32 %v2040_v20, %v2039_v0  ;;  %v2047_v58 = vrot.slane %v2046_v47, 2  ;;  %v2076_v39 = vrot.slane %v2075_v25, 4  ;;  %v2177_v0 = vpop.permute.xlu1 %2176 }
 0x22f   : > { %v2119_v43 = vmul.f32 0.25, %v2116_v55  ;;  %v2082_v54 = vsel %vm234_vm0, %v2073_v50, 0.0  ;;  %v2463_v57 = vadd.f32 %v2462_v42, %v2461_v40  ;;  %v2093_v4 = vadd.f32 %v2092_v44, %v2091_v49  ;;  %v2175_v40 = vpop.permute.xlu0 %2174 }
 0x230   : > { %v2042_v60 = vrot.slane %v2041_v56, 1  ;;  %v2048_v62 = vadd.f32 %v2047_v58, %v2046_v47  ;;  %v2077_v61 = vadd.f32 %v2076_v39, %v2075_v25  ;;  %v2083_v46 = vrot.slane %v2082_v54, 4 }
 0x231   : > { %3794 = vst [vmem:[%s4569_s23 + $0xd0] sm:$0xff] %v2119_v43  ;;  %v2464_v10 = vrot.slane %v2463_v57, 2  ;;  %v2149_v5 = vmul.f32 %v2145_v52, %v5106_v29  ;;  %v2442_v6 = vmul.f32 %v2440_v37, %v5016_v9  ;;  %v2094_v2 = vrot.slane %v2093_v4, 1 }
 0x232   : > { %v2043_v63 = vadd.f32 %v2042_v60, %v2041_v56  ;;  %v2049_v7 = vrot.slane %v2048_v62, 1  ;;  %v2078_v33 = vrot.slane %v2077_v61, 2  ;;  %v2084_v45 = vadd.f32 %v2083_v46, %v2082_v54  ;;  %v2215_v46 = vpop.permute.xlu1 %2214 }
 0x233   : > { %v2465_v16 = vadd.f32 %v2464_v10, %v2463_v57  ;;  %v2167_v51 = vsel %vm234_vm0, %v2149_v5, 0.0  ;;  %v2445_v32 = vcombine.high %v2442_v6, %v2442_v6  ;;  %v2095_v21 = vadd.f32 %v2094_v2, %v2093_v4 }
 0x234   : > { %v2050_v12 = vadd.f32 %v2049_v7, %v2048_v62  ;;  %v2114_v3 = vsel %vm586_vm15, %v2111_v1, %v2043_v63  ;;  %v2079_v13 = vadd.f32 %v2078_v33, %v2077_v61  ;;  %v2085_v14 = vrot.slane %v2084_v45, 2 }
 0x235   : > { %v2117_v15 = vmul.f32 0.25, %v2114_v3  ;;  %v2466_v23 = vrot.slane %v2465_v16, 1  ;;  %v2168_v19 = vrot.slane %v2167_v51, 4  ;;  %v2447_v27 = vsel %vm234_vm0, %v2442_v6, 0.0 }
 0x236   : > { %v2115_v24 = vsel %vm586_vm15, %v2112_v8, %v2050_v12  ;;  %v2080_v26 = vrot.slane %v2079_v13, 1  ;;  %v2086_v17 = vadd.f32 %v2085_v14, %v2084_v45  ;;  %v2122_v28 = vmul.f32 0.25, %v2095_v21 }
 0x237   : > { %v2118_v34 = vmul.f32 0.25, %v2115_v24  ;;  %3792 = vst [vmem:[%s4569_s23 + $0xc0] sm:$0xff] %v2117_v15  ;;  %v2467_v31 = vadd.f32 %v2466_v23, %v2465_v16  ;;  %v2169_v59 = vadd.f32 %v2168_v19, %v2167_v51  ;;  %v2448_v48 = vrot.slane %v2447_v27, 4  ;;  %v2213_v19 = vpop.permute.xlu0 %2212 }
 0x238   : > { %v2081_v1 = vadd.f32 %v2080_v26, %v2079_v13  ;;  %v2087_v30 = vrot.slane %v2086_v17, 1  ;;  %v2454_v18 = vsel %vm234_vm0, %v2445_v32, 0.0  ;;  %3797 = vst [vmem:[%s4569_s23 + $0xe8] sm:$0x1] %v2122_v28  ;;  %v2140_v38 = vrot.slane %v2137_v11, 4 }
 0x239   : > { %3793 = vst [vmem:[%s4569_s23 + $0xc8] sm:$0xff] %v2118_v34  ;;  %v2494_v8 = vmul.f32 0.25, %v2467_v31  ;;  %v2170_v35 = vrot.slane %v2169_v59, 2  ;;  %v2455_v36 = vrot.slane %v2454_v18, 4  ;;  %v2449_v47 = vadd.f32 %v2448_v48, %v2447_v27 }
 0x23a   : > { %v2088_v53 = vadd.f32 %v2087_v30, %v2086_v17  ;;  %v2120_v20 = vmul.f32 0.25, %v2081_v1  ;;  %vm2181_vm6 = vcmask 56320   ;;  %v2142_v50 = vsel %vm234_vm0, %v2140_v38, %v2141_v41  ;;  %v2253_v1 = vpop.permute.xlu1 %2252 }
 0x23b   : > { %3803 = vst [vmem:[%s4569_s23 + $0x118] sm:$0x1] %v2494_v8  ;;  %v2171_v42 = vadd.f32 %v2170_v35, %v2169_v59  ;;  %v2456_v49 = vadd.f32 %v2455_v36, %v2454_v18  ;;  %v2179_v25 = vrot.slane %v2177_v0, 4  ;;  %v2450_v55 = vrot.slane %v2449_v47, 2 }
 0x23c   : > { %v2121_v52 = vmul.f32 0.25, %v2088_v53  ;;  %3795 = vst [vmem:[%s4569_s23 + $0xd8] sm:$0x1] %v2120_v20  ;;  %v2144_v56 = vsel %vm2143_vm2, %v2137_v11, %v2142_v50  ;;  %v2178_v58 = vrot.slane %v2175_v40, 4  ;;  %vm2219_vm7 = vcmask 48128  }
 0x23d   : > { %v2172_v39 = vrot.slane %v2171_v42, 1  ;;  %v2457_v37 = vrot.slane %v2456_v49, 2  ;;  %v2148_v43 = vmul.f32 %v2144_v56, %v5016_v9  ;;  %v2183_v44 = vsel %vm2181_vm6, %v2177_v0, %v2179_v25 }
 0x23e   : > { %3796 = vst [vmem:[%s4569_s23 + $0xe0] sm:$0x1] %v2121_v52  ;;  %v2451_v54 = vadd.f32 %v2450_v55, %v2449_v47  ;;  %v2187_v57 = vmul.f32 %v2183_v44, %v5106_v29  ;;  %v2180_v22 = vsel %vm234_vm0, %v2178_v58, %v2179_v25  ;;  %v2217_v32 = vrot.slane %v2215_v46, 4  ;;  %v2251_v25 = vpop.permute.xlu0 %2250 }
 0x23f   : > { %v5148_v41 = vadd.f32 %v2172_v39, %v2171_v42  ;;  %v2458_v60 = vadd.f32 %v2457_v37, %v2456_v49  ;;  %v2151_v62 = vcombine.high %v2148_v43, %v2148_v43  ;;  %v2153_v61 = vsel %vm234_vm0, %v2148_v43, 0.0 }
 0x240   : > { %v2452_v4 = vrot.slane %v2451_v54, 1  ;;  %v2154_v10 = vrot.slane %v2153_v61, 4  ;;  %v2205_v5 = vsel %vm234_vm0, %v2187_v57, 0.0  ;;  %v2182_v6 = vsel %vm2181_vm6, %v2175_v40, %v2180_v22 }
 0x241   : > { %v2459_v63 = vrot.slane %v2458_v60, 1  ;;  %v2160_v7 = vsel %vm234_vm0, %v2151_v62, 0.0  ;;  %v2206_v33 = vrot.slane %v2205_v5, 4  ;;  %v2186_v45 = vmul.f32 %v2182_v6, %v5016_v9 }
 0x242   : > { %v2453_v2 = vadd.f32 %v2452_v4, %v2451_v54  ;;  %v2155_v16 = vadd.f32 %v2154_v10, %v2153_v61  ;;  %v2161_v51 = vrot.slane %v2160_v7, 4  ;;  %v2221_v27 = vsel %vm2219_vm7, %v2215_v46, %v2217_v32 }
 0x243   : > { %v2460_v11 = vadd.f32 %v2459_v63, %v2458_v60  ;;  %v2207_v12 = vadd.f32 %v2206_v33, %v2205_v5  ;;  %v2189_v3 = vcombine.high %v2186_v45, %v2186_v45  ;;  %v2191_v13 = vsel %vm234_vm0, %v2186_v45, 0.0 }
 0x244   : > { %v2492_v14 = vmul.f32 0.25, %v2453_v2  ;;  %v2156_v15 = vrot.slane %v2155_v16, 2  ;;  %v2162_v21 = vadd.f32 %v2161_v51, %v2160_v7  ;;  %v2192_v23 = vrot.slane %v2191_v13, 4  ;;  %v2291_v2 = vpop.permute.xlu1 %2290 }
 0x245   : > { %v2493_v24 = vmul.f32 0.25, %v2460_v11  ;;  %v2208_v26 = vrot.slane %v2207_v12, 2  ;;  %v2198_v17 = vsel %vm234_vm0, %v2189_v3, 0.0  ;;  %v2225_v48 = vmul.f32 %v2221_v27, %v5106_v29 }
 0x246   : > { %3801 = vst [vmem:[%s4569_s23 + $0x108] sm:$0x1] %v2492_v14  ;;  %v2157_v34 = vadd.f32 %v2156_v15, %v2155_v16  ;;  %v2163_v28 = vrot.slane %v2162_v21, 2  ;;  %v2193_v31 = vadd.f32 %v2192_v23, %v2191_v13  ;;  %v2199_v59 = vrot.slane %v2198_v17, 4 }
 0x247   : > { %3802 = vst [vmem:[%s4569_s23 + $0x110] sm:$0x1] %v2493_v24  ;;  %v2209_v30 = vadd.f32 %v2208_v26, %v2207_v12  ;;  %v2216_v18 = vrot.slane %v2213_v19, 4  ;;  %vm2257_vm9 = vcmask 39936   ;;  %v2243_v40 = vsel %vm234_vm0, %v2225_v48, 0.0  ;;  %v2289_v12 = vpop.permute.xlu0 %2288 }
 0x248   : > { %v2158_v0 = vrot.slane %v2157_v34, 1  ;;  %v2164_v8 = vadd.f32 %v2163_v28, %v2162_v21  ;;  %v2194_v35 = vrot.slane %v2193_v31, 2  ;;  %v2200_v36 = vadd.f32 %v2199_v59, %v2198_v17 }
 0x249   : > { %v2210_v38 = vrot.slane %v2209_v30, 1  ;;  %v2218_v53 = vsel %vm234_vm0, %v2216_v18, %v2217_v32  ;;  %v2255_v20 = vrot.slane %v2253_v1, 4  ;;  %v2244_v55 = vrot.slane %v2243_v40, 4 }
 0x24a   : > { %v2159_v47 = vadd.f32 %v2158_v0, %v2157_v34  ;;  %v2165_v42 = vrot.slane %v2164_v8, 1  ;;  %v2195_v49 = vadd.f32 %v2194_v35, %v2193_v31  ;;  %v2201_v50 = vrot.slane %v2200_v36, 2 }
 0x24b   : > { %v2211_v52 = vadd.f32 %v2210_v38, %v2209_v30  ;;  %v2220_v56 = vsel %vm2219_vm7, %v2213_v19, %v2218_v53  ;;  %v2259_v58 = vsel %vm2257_vm9, %v2253_v1, %v2255_v20  ;;  %v2245_v57 = vadd.f32 %v2244_v55, %v2243_v40 }
 0x24c   : > { %v2166_v39 = vadd.f32 %v2165_v42, %v2164_v8  ;;  %v2196_v37 = vrot.slane %v2195_v49, 1  ;;  %v2202_v43 = vadd.f32 %v2201_v50, %v2200_v36  ;;  %v2224_v44 = vmul.f32 %v2220_v56, %v5016_v9 }
 0x24d   : > { %v2470_v54 = vsel %vm563_vm4, %v5148_v41, %v2211_v52  ;;  %v2263_v22 = vmul.f32 %v2259_v58, %v5106_v29  ;;  %v2254_v60 = vrot.slane %v2251_v25, 4  ;;  %v2246_v10 = vrot.slane %v2245_v57, 2 }
 0x24e   : > { %v2197_v62 = vadd.f32 %v2196_v37, %v2195_v49  ;;  %v2203_v61 = vrot.slane %v2202_v43, 1  ;;  %v2227_v46 = vcombine.high %v2224_v44, %v2224_v44  ;;  %v2229_v4 = vsel %vm234_vm0, %v2224_v44, 0.0  ;;  %v2327_v44 = vpop.permute.xlu0 %2326 }
 0x24f   : > { %v2230_v5 = vrot.slane %v2229_v4, 4  ;;  %v2281_v6 = vsel %vm234_vm0, %v2263_v22, 0.0  ;;  %v2256_v63 = vsel %vm234_vm0, %v2254_v60, %v2255_v20  ;;  %v2247_v16 = vadd.f32 %v2246_v10, %v2245_v57 }
 0x250   : > { %v2204_v7 = vadd.f32 %v2203_v61, %v2202_v43  ;;  %v2468_v33 = vsel %vm563_vm4, %v2159_v47, %v2197_v62  ;;  %v2236_v41 = vsel %vm234_vm0, %v2227_v46, 0.0  ;;  %v2282_v45 = vrot.slane %v2281_v6, 4 }
 0x251   : > { %v2231_v51 = vadd.f32 %v2230_v5, %v2229_v4  ;;  %v2237_v32 = vrot.slane %v2236_v41, 4  ;;  %v2258_v11 = vsel %vm2257_vm9, %v2251_v25, %v2256_v63  ;;  %vm2295_vm11 = vcmask 31744   ;;  %v2329_v25 = vpop.permute.xlu1 %2328 }
 0x252   : > { %v2469_v3 = vsel %vm563_vm4, %v2166_v39, %v2204_v7  ;;  %v2283_v13 = vadd.f32 %v2282_v45, %v2281_v6  ;;  %v2262_v14 = vmul.f32 %v2258_v11, %v5016_v9  ;;  %v2248_v15 = vrot.slane %v2247_v16, 1 }
 0x253   : > { %v2232_v21 = vrot.slane %v2231_v51, 2  ;;  %v2238_v23 = vadd.f32 %v2237_v32, %v2236_v41  ;;  %v2293_v19 = vrot.slane %v2291_v2, 4  ;;  %v2292_v27 = vrot.slane %v2289_v12, 4 }
 0x254   : > { %v2284_v24 = vrot.slane %v2283_v13, 2  ;;  %v2265_v26 = vcombine.high %v2262_v14, %v2262_v14  ;;  %v2267_v17 = vsel %vm234_vm0, %v2262_v14, 0.0  ;;  %v2249_v34 = vadd.f32 %v2248_v15, %v2247_v16 }
 0x255   : > { %v2233_v28 = vadd.f32 %v2232_v21, %v2231_v51  ;;  %v2239_v31 = vrot.slane %v2238_v23, 2  ;;  %v2268_v59 = vrot.slane %v2267_v17, 4  ;;  %v2297_v48 = vsel %vm2295_vm11, %v2291_v2, %v2293_v19  ;;  %v2367_v45 = vpop.permute.xlu1 %2366 }
 0x256   : > { %v2285_v1 = vadd.f32 %v2284_v24, %v2283_v13  ;;  %v2274_v30 = vsel %vm234_vm0, %v2265_v26, 0.0  ;;  %v2294_v18 = vsel %vm234_vm0, %v2292_v27, %v2293_v19  ;;  %v2473_v0 = vsel %vm567_vm5, %v2470_v54, %v2249_v34  ;;  %v2365_v13 = vpop.permute.xlu0 %2364 }
 0x257   : > { %v2234_v8 = vrot.slane %v2233_v28, 1  ;;  %v2240_v35 = vadd.f32 %v2239_v31, %v2238_v23  ;;  %v2269_v36 = vadd.f32 %v2268_v59, %v2267_v17  ;;  %v2275_v40 = vrot.slane %v2274_v30, 4  ;;  %v5197_v17 = vld [vmem:[%s4314_s28] sm:$0xff] }
 0x258   : > { %v2286_v38 = vrot.slane %v2285_v1, 1  ;;  %v2301_v53 = vmul.f32 %v2297_v48, %v5106_v29  ;;  %v2296_v20 = vsel %vm2295_vm11, %v2289_v12, %v2294_v18  ;;  %vm2333_vm12 = vcmask 23552  }
 0x259   : > { %v2235_v47 = vadd.f32 %v2234_v8, %v2233_v28  ;;  %v2241_v42 = vrot.slane %v2240_v35, 1  ;;  %v2270_v49 = vrot.slane %v2269_v36, 2  ;;  %v2300_v50 = vmul.f32 %v2296_v20, %v5016_v9 }
 0x25a   : > { %v2287_v52 = vadd.f32 %v2286_v38, %v2285_v1  ;;  %v2276_v55 = vadd.f32 %v2275_v40, %v2274_v30  ;;  %v2319_v56 = vsel %vm234_vm0, %v2301_v53, 0.0  ;;  %v2331_v5 = vrot.slane %v2329_v25, 4 }
 0x25b   : > { %v2242_v58 = vadd.f32 %v2241_v42, %v2240_v35  ;;  %v2471_v39 = vsel %vm567_vm5, %v2468_v33, %v2235_v47  ;;  %v2271_v37 = vadd.f32 %v2270_v49, %v2269_v36  ;;  %v2320_v43 = vrot.slane %v2319_v56, 4 }
 0x25c   : > { %v2476_v54 = vsel %vm571_vm8, %v2473_v0, %v2287_v52  ;;  %v2277_v57 = vrot.slane %v2276_v55, 2  ;;  %v2303_v22 = vcombine.high %v2300_v50, %v2300_v50  ;;  %v2305_v60 = vsel %vm234_vm0, %v2300_v50, 0.0 }
 0x25d   : > { %v2472_v9 = vsel %vm567_vm5, %v2469_v3, %v2242_v58  ;;  %v2272_v62 = vrot.slane %v2271_v37, 1  ;;  %v2321_v61 = vadd.f32 %v2320_v43, %v2319_v56  ;;  %v2306_v46 = vrot.slane %v2305_v60, 4 }
 0x25e   : > { %v2278_v4 = vadd.f32 %v2277_v57, %v2276_v55  ;;  %v2312_v10 = vsel %vm234_vm0, %v2303_v22, 0.0  ;;  %v2330_v6 = vrot.slane %v2327_v44, 4  ;;  %v2335_v16 = vsel %vm2333_vm12, %v2329_v25, %v2331_v5  ;;  %v2405_v25 = vpop.permute.xlu1 %2404 }
 0x25f   : > { %v2273_v63 = vadd.f32 %v2272_v62, %v2271_v37  ;;  %v2322_v7 = vrot.slane %v2321_v61, 2  ;;  %v2307_v33 = vadd.f32 %v2306_v46, %v2305_v60  ;;  %v2313_v41 = vrot.slane %v2312_v10, 4 }
 0x260   : > { %v2279_v2 = vrot.slane %v2278_v4, 1  ;;  %v2332_v51 = vsel %vm234_vm0, %v2330_v6, %v2331_v5  ;;  %vm2371_vm2 = vcmask 15360   ;;  %v2339_v15 = vmul.f32 %v2335_v16, %v5106_v29  ;;  %v2403_v6 = vpop.permute.xlu0 %2402 }
 0x261   : > { %v2474_v32 = vsel %vm571_vm8, %v2471_v39, %v2273_v63  ;;  %v2323_v11 = vadd.f32 %v2322_v7, %v2321_v61  ;;  %v2308_v12 = vrot.slane %v2307_v33, 2  ;;  %v2314_v3 = vadd.f32 %v2313_v41, %v2312_v10 }
 0x262   : > { %v2280_v14 = vadd.f32 %v2279_v2, %v2278_v4  ;;  %v2334_v21 = vsel %vm2333_vm12, %v2327_v44, %v2332_v51  ;;  %v2369_v23 = vrot.slane %v2367_v45, 4  ;;  %v2357_v28 = vsel %vm234_vm0, %v2339_v15, 0.0 }
 0x263   : > { %v2324_v19 = vrot.slane %v2323_v11, 1  ;;  %v2309_v24 = vadd.f32 %v2308_v12, %v2307_v33  ;;  %v2315_v26 = vrot.slane %v2314_v3, 2  ;;  %v2338_v27 = vmul.f32 %v5197_v17, %v2334_v21 }
 0x264   : > { %v2475_v34 = vsel %vm571_vm8, %v2472_v9, %v2280_v14  ;;  %v2373_v31 = vsel %vm2371_vm2, %v2367_v45, %v2369_v23  ;;  %v2368_v59 = vrot.slane %v2365_v13, 4  ;;  %v2358_v18 = vrot.slane %v2357_v28, 4 }
 0x265   : > { %v2325_v1 = vadd.f32 %v2324_v19, %v2323_v11  ;;  %v2310_v30 = vrot.slane %v2309_v24, 1  ;;  %v2316_v48 = vadd.f32 %v2315_v26, %v2314_v3  ;;  %v2341_v0 = vcombine.high %v2338_v27, %v2338_v27 }
 0x266   : > { %v2343_v8 = vsel %vm234_vm0, %v2338_v27, 0.0  ;;  %v2377_v35 = vmul.f32 %v2373_v31, %v5106_v29  ;;  %v2370_v36 = vsel %vm234_vm0, %v2368_v59, %v2369_v23  ;;  %v2359_v20 = vadd.f32 %v2358_v18, %v2357_v28  ;;  %v2511_v23 = vpop.permute.xlu1 %2510  ;;  %v2509_v59 = vpop.permute.xlu0 %2508 }
 0x267   : > { %v2479_v38 = vsel %vm234_vm0, %v2476_v54, %v2325_v1  ;;  %v2311_v40 = vadd.f32 %v2310_v30, %v2309_v24  ;;  %v2317_v53 = vrot.slane %v2316_v48, 1  ;;  %v2344_v47 = vrot.slane %v2343_v8, 4 }
 0x268   : > { %v2350_v42 = vsel %vm234_vm0, %v2341_v0, 0.0  ;;  %v2395_v49 = vsel %vm234_vm0, %v2377_v35, 0.0  ;;  %v2372_v50 = vsel %vm2371_vm2, %v2365_v13, %v2370_v36  ;;  %v2360_v56 = vrot.slane %v2359_v20, 2 }
 0x269   : > { %v2318_v52 = vadd.f32 %v2317_v53, %v2316_v48  ;;  %v2477_v55 = vsel %vm234_vm0, %v2474_v32, %v2311_v40  ;;  %v2351_v58 = vrot.slane %v2350_v42, 4  ;;  %v2345_v39 = vadd.f32 %v2344_v47, %v2343_v8 }
 0x26a   : > { %v2396_v37 = vrot.slane %v2395_v49, 4  ;;  %v2376_v43 = vmul.f32 %v5197_v17, %v2372_v50  ;;  %vm2409_vm6 = vcmask 7168   ;;  %v2361_v54 = vadd.f32 %v2360_v56, %v2359_v20  ;;  %v2549_v50 = vpop.permute.xlu1 %2548 }
 0x26b   : > { %v2478_v44 = vsel %vm234_vm0, %v2475_v34, %v2318_v52  ;;  %v2352_v57 = vadd.f32 %v2351_v58, %v2350_v42  ;;  %v2407_v22 = vrot.slane %v2405_v25, 4  ;;  %v2346_v60 = vrot.slane %v2345_v39, 2  ;;  %v5228_v52 = vld [vmem:[%s4314_s28 + $0x8] sm:$0xf] }
 0x26c   : > { %v2397_v9 = vadd.f32 %v2396_v37, %v2395_v49  ;;  %v2379_v62 = vcombine.high %v2376_v43, %v2376_v43  ;;  %v2381_v61 = vsel %vm234_vm0, %v2376_v43, 0.0  ;;  %v2362_v46 = vrot.slane %v2361_v54, 1  ;;  %v2547_v43 = vpop.permute.xlu0 %2546 }
 0x26d   : > { %v2353_v4 = vrot.slane %v2352_v57, 2  ;;  %v2382_v10 = vrot.slane %v2381_v61, 4  ;;  %v2411_v5 = vsel %vm2409_vm6, %v2405_v25, %v2407_v22  ;;  %v2347_v63 = vadd.f32 %v2346_v60, %v2345_v39 }
 0x26e   : > { %v2398_v7 = vrot.slane %v2397_v9, 2  ;;  %v2388_v33 = vsel %vm234_vm0, %v2379_v62, 0.0  ;;  %v2415_v41 = vmul.f32 %v2411_v5, %v5106_v29  ;;  %v2363_v45 = vadd.f32 %v2362_v46, %v2361_v54 }
 0x26f   : > { %v2354_v2 = vadd.f32 %v2353_v4, %v2352_v57  ;;  %v2383_v16 = vadd.f32 %v2382_v10, %v2381_v61  ;;  %v2389_v51 = vrot.slane %v2388_v33, 4  ;;  %v2348_v32 = vrot.slane %v2347_v63, 1  ;;  %v5233_v57 = vld [vmem:[%s4314_s28] sm:$0xff] }
 0x270   : > { %v2399_v11 = vadd.f32 %v2398_v7, %v2397_v9  ;;  %v2433_v12 = vsel %vm234_vm0, %v2415_v41, 0.0  ;;  %v2406_v3 = vrot.slane %v2403_v6, 4  ;;  %v2482_v13 = vsel %vm578_vm10, %v2479_v38, %v2363_v45 }
 0x271   : > { %v2355_v14 = vrot.slane %v2354_v2, 1  ;;  %v2384_v15 = vrot.slane %v2383_v16, 2  ;;  %v2390_v21 = vadd.f32 %v2389_v51, %v2388_v33  ;;  %v2349_v19 = vadd.f32 %v2348_v32, %v2347_v63 }
 0x272   : > { %v2400_v24 = vrot.slane %v2399_v11, 1  ;;  %v2434_v26 = vrot.slane %v2433_v12, 4  ;;  %v2408_v29 = vsel %vm234_vm0, %v2406_v3, %v2407_v22  ;;  %vm2515_vm7 = vcmask 916480  }
 0x273   : > { %v2356_v27 = vadd.f32 %v2355_v14, %v2354_v2  ;;  %v2385_v34 = vadd.f32 %v2384_v15, %v2383_v16  ;;  %v2391_v28 = vrot.slane %v2390_v21, 2  ;;  %v2410_v31 = vsel %vm2409_vm6, %v2403_v6, %v2408_v29 }
 0x274   : > { %v2480_v1 = vsel %vm578_vm10, %v2477_v55, %v2349_v19  ;;  %v2401_v30 = vadd.f32 %v2400_v24, %v2399_v11  ;;  %v2435_v48 = vadd.f32 %v2434_v26, %v2433_v12  ;;  %v2414_v18 = vmul.f32 %v5197_v17, %v2410_v31 }
 0x275   : > { %v2481_v0 = vsel %vm578_vm10, %v2478_v44, %v2356_v27  ;;  %v2386_v8 = vrot.slane %v2385_v34, 1  ;;  %v2392_v35 = vadd.f32 %v2391_v28, %v2390_v21  ;;  %v2513_v49 = vrot.slane %v2511_v23, 4 }
 0x276   : > { %v2485_v36 = vsel %vm582_vm13, %v2482_v13, %v2401_v30  ;;  %v2436_v38 = vrot.slane %v2435_v48, 2  ;;  %v2417_v40 = vcombine.high %v2414_v18, %v2414_v18  ;;  %v2419_v53 = vsel %vm234_vm0, %v2414_v18, 0.0 }
 0x277   : > { %v2387_v20 = vadd.f32 %v2386_v8, %v2385_v34  ;;  %v2393_v47 = vrot.slane %v2392_v35, 1  ;;  %v2420_v42 = vrot.slane %v2419_v53, 4  ;;  %v2512_v55 = vrot.slane %v2509_v59, 4  ;;  %v2587_v8 = vpop.permute.xlu1 %2586 }
 0x278   : > { %v2437_v25 = vadd.f32 %v2436_v38, %v2435_v48  ;;  %v2426_v17 = vsel %vm234_vm0, %v2417_v40, 0.0  ;;  %vm2553_vm9 = vcmask 908288   ;;  %v2517_v54 = vsel %vm2515_vm7, %v2511_v23, %v2513_v49 }
 0x279   : > { %v2394_v56 = vadd.f32 %v2393_v47, %v2392_v35  ;;  %v2483_v58 = vsel %vm582_vm13, %v2480_v1, %v2387_v20  ;;  %v2421_v39 = vadd.f32 %v2420_v42, %v2419_v53  ;;  %v2427_v37 = vrot.slane %v2426_v17, 4  ;;  %v2585_v53 = vpop.permute.xlu0 %2584 }
 0x27a   : > { %v2438_v44 = vrot.slane %v2437_v25, 1  ;;  %v2514_v22 = vsel %vm234_vm0, %v2512_v55, %v2513_v49  ;;  %v2551_v60 = vrot.slane %v2549_v50, 4  ;;  %v2521_v46 = vmul.f32 %v2517_v54, %v5228_v52 }
 0x27b   : > { %v2484_v9 = vsel %vm582_vm13, %v2481_v0, %v2394_v56  ;;  %v2422_v62 = vrot.slane %v2421_v39, 2  ;;  %v2428_v61 = vadd.f32 %v2427_v37, %v2426_v17  ;;  %v2516_v10 = vsel %vm2515_vm7, %v2509_v59, %v2514_v22 }
 0x27c   : > { %v2439_v4 = vadd.f32 %v2438_v44, %v2437_v25  ;;  %v2555_v5 = vsel %vm2553_vm9, %v2549_v50, %v2551_v60  ;;  %v2550_v6 = vrot.slane %v2547_v43, 4  ;;  %v2539_v33 = vsel %vm234_vm0, %v2521_v46, 0.0  ;;  %v2625_v46 = vpop.permute.xlu1 %2624 }
 0x27d   : > { %v2423_v63 = vadd.f32 %v2422_v62, %v2421_v39  ;;  %v2429_v7 = vrot.slane %v2428_v61, 2  ;;  %v2520_v41 = vmul.f32 %v2516_v10, %v5233_v57  ;;  %v2540_v2 = vrot.slane %v2539_v33, 4 }
 0x27e   : > { %v2488_v45 = vsel %vm586_vm15, %v2485_v36, %v2439_v4  ;;  %v2559_v16 = vmul.f32 %v2555_v5, %v5228_v52  ;;  %v2552_v51 = vsel %vm234_vm0, %v2550_v6, %v2551_v60  ;;  %vm2591_vm11 = vcmask 900096   ;;  %v2623_v6 = vpop.permute.xlu0 %2622 }
 0x27f   : > { %v2491_v32 = vmul.f32 0.25, %v2488_v45  ;;  %v2424_v11 = vrot.slane %v2423_v63, 1  ;;  %v2430_v12 = vadd.f32 %v2429_v7, %v2428_v61  ;;  %v2523_v3 = vcombine.high %v2520_v41, %v2520_v41 }
 0x280   : > { %v2541_v13 = vadd.f32 %v2540_v2, %v2539_v33  ;;  %v2525_v14 = vsel %vm234_vm0, %v2520_v41, 0.0  ;;  %v2577_v15 = vsel %vm234_vm0, %v2559_v16, 0.0  ;;  %v2554_v21 = vsel %vm2553_vm9, %v2547_v43, %v2552_v51 }
 0x281   : > { %3800 = vst [vmem:[%s4569_s23 + $0x100] sm:$0xff] %v2491_v32  ;;  %v2425_v23 = vadd.f32 %v2424_v11, %v2423_v63  ;;  %v2431_v19 = vrot.slane %v2430_v12, 1  ;;  %v2526_v24 = vrot.slane %v2525_v14, 4  ;;  %v2532_v26 = vsel %vm234_vm0, %v2523_v3, 0.0 }
 0x282   : > { %v2542_v29 = vrot.slane %v2541_v13, 2  ;;  %v2533_v27 = vrot.slane %v2532_v26, 4  ;;  %v2578_v34 = vrot.slane %v2577_v15, 4  ;;  %v2558_v28 = vmul.f32 %v2554_v21, %v5233_v57 }
 0x283   : > { %v2432_v31 = vadd.f32 %v2431_v19, %v2430_v12  ;;  %v2486_v59 = vsel %vm586_vm15, %v2483_v58, %v2425_v23  ;;  %v2527_v1 = vadd.f32 %v2526_v24, %v2525_v14  ;;  %v2589_v55 = vrot.slane %v2587_v8, 4 }
 0x284   : > { %v2489_v30 = vmul.f32 0.25, %v2486_v59  ;;  %v2543_v48 = vadd.f32 %v2542_v29, %v2541_v13  ;;  %v2534_v18 = vadd.f32 %v2533_v27, %v2532_v26  ;;  %v2579_v0 = vadd.f32 %v2578_v34, %v2577_v15 }
 0x285   : > { %v2487_v35 = vsel %vm586_vm15, %v2484_v9, %v2432_v31  ;;  %v2528_v36 = vrot.slane %v2527_v1, 2  ;;  %v2561_v38 = vcombine.high %v2558_v28, %v2558_v28  ;;  %v2563_v40 = vsel %vm234_vm0, %v2558_v28, 0.0  ;;  %v2663_v28 = vpop.permute.xlu1 %2662 }
 0x286   : > { %v2490_v20 = vmul.f32 0.25, %v2487_v35  ;;  %3798 = vst [vmem:[%s4569_s23 + $0xf0] sm:$0xff] %v2489_v30  ;;  %v2544_v47 = vrot.slane %v2543_v48, 1  ;;  %v2535_v42 = vrot.slane %v2534_v18, 2  ;;  %v2580_v49 = vrot.slane %v2579_v0, 2 }
 0x287   : > { %v2529_v50 = vadd.f32 %v2528_v36, %v2527_v1  ;;  %v2564_v25 = vrot.slane %v2563_v40, 4  ;;  %v2570_v17 = vsel %vm234_vm0, %v2561_v38, 0.0  ;;  %v2593_v54 = vsel %vm2591_vm11, %v2587_v8, %v2589_v55 }
 0x288   : > { %3799 = vst [vmem:[%s4569_s23 + $0xf8] sm:$0xff] %v2490_v20  ;;  %v2545_v56 = vadd.f32 %v2544_v47, %v2543_v48  ;;  %v2536_v58 = vadd.f32 %v2535_v42, %v2534_v18  ;;  %v2581_v39 = vadd.f32 %v2580_v49, %v2579_v0  ;;  %v2571_v37 = vrot.slane %v2570_v17, 4  ;;  %v2661_v48 = vpop.permute.xlu0 %2660 }
 0x289   : > { %v2530_v43 = vrot.slane %v2529_v50, 1  ;;  %v2565_v44 = vadd.f32 %v2564_v25, %v2563_v40  ;;  %v2588_v22 = vrot.slane %v2585_v53, 4  ;;  %v2597_v61 = vmul.f32 %v2593_v54, %v5228_v52 }
 0x28a   : > { %v2537_v60 = vrot.slane %v2536_v58, 1  ;;  %v2582_v9 = vrot.slane %v2581_v39, 1  ;;  %v2572_v62 = vadd.f32 %v2571_v37, %v2570_v17  ;;  %vm2629_vm12 = vcmask 891904  }
 0x28b   : > { %v2531_v4 = vadd.f32 %v2530_v43, %v2529_v50  ;;  %v2566_v10 = vrot.slane %v2565_v44, 2  ;;  %v2590_v5 = vsel %vm234_vm0, %v2588_v22, %v2589_v55  ;;  %v2615_v41 = vsel %vm234_vm0, %v2597_v61, 0.0 }
 0x28c   : > { %v2538_v63 = vadd.f32 %v2537_v60, %v2536_v58  ;;  %v2583_v7 = vadd.f32 %v2582_v9, %v2581_v39  ;;  %v2573_v33 = vrot.slane %v2572_v62, 2  ;;  %v2616_v2 = vrot.slane %v2615_v41, 4 }
 0x28d   : > { %v2567_v45 = vadd.f32 %v2566_v10, %v2565_v44  ;;  %v2592_v16 = vsel %vm2591_vm11, %v2585_v53, %v2590_v5  ;;  %v2627_v51 = vrot.slane %v2625_v46, 4  ;;  %v2626_v3 = vrot.slane %v2623_v6, 4 }
 0x28e   : > { %v2851_v32 = vsel %vm563_vm4, %v2545_v56, %v2583_v7  ;;  %v2574_v11 = vadd.f32 %v2573_v33, %v2572_v62  ;;  %v2596_v12 = vmul.f32 %v2592_v16, %v5233_v57  ;;  %v2617_v14 = vadd.f32 %v2616_v2, %v2615_v41  ;;  %v2892_v41 = vpop.permute.xlu1 %2891 }
 0x28f   : > { %v2568_v13 = vrot.slane %v2567_v45, 1  ;;  %v2631_v15 = vsel %vm2629_vm12, %v2625_v46, %v2627_v51  ;;  %vm2667_vm2 = vcmask 883712   ;;  %v2628_v34 = vsel %vm234_vm0, %v2626_v3, %v2627_v51 }
 0x290   : > { %v2575_v21 = vrot.slane %v2574_v11, 1  ;;  %v2599_v23 = vcombine.high %v2596_v12, %v2596_v12  ;;  %v2601_v19 = vsel %vm234_vm0, %v2596_v12, 0.0  ;;  %v2635_v24 = vmul.f32 %v2631_v15, %v5228_v52 }
 0x291   : > { %v2569_v26 = vadd.f32 %v2568_v13, %v2567_v45  ;;  %v2618_v29 = vrot.slane %v2617_v14, 2  ;;  %v2602_v27 = vrot.slane %v2601_v19, 4  ;;  %v2630_v30 = vsel %vm2629_vm12, %v2623_v6, %v2628_v34 }
 0x292   : > { %v2576_v31 = vadd.f32 %v2575_v21, %v2574_v11  ;;  %v2608_v59 = vsel %vm234_vm0, %v2599_v23, 0.0  ;;  %v2653_v1 = vsel %vm234_vm0, %v2635_v24, 0.0  ;;  %v2634_v40 = vmul.f32 %v2630_v30, %v5233_v57  ;;  %v2890_v24 = vpop.permute.xlu0 %2889  ;;  %v5289_v30 = vld [vmem:[%s4314_s28 + $0x8] sm:$0xf] }
 0x293   : > { %v2849_v18 = vsel %vm563_vm4, %v2531_v4, %v2569_v26  ;;  %v2619_v0 = vadd.f32 %v2618_v29, %v2617_v14  ;;  %v2603_v8 = vadd.f32 %v2602_v27, %v2601_v19  ;;  %v2609_v35 = vrot.slane %v2608_v59, 4 }
 0x294   : > { %v2850_v36 = vsel %vm563_vm4, %v2538_v63, %v2576_v31  ;;  %v2654_v38 = vrot.slane %v2653_v1, 4  ;;  %v2665_v53 = vrot.slane %v2663_v28, 4  ;;  %v2664_v49 = vrot.slane %v2661_v48, 4 }
 0x295   : > { %v2620_v20 = vrot.slane %v2619_v0, 1  ;;  %v2604_v47 = vrot.slane %v2603_v8, 2  ;;  %v2610_v42 = vadd.f32 %v2609_v35, %v2608_v59  ;;  %v2637_v25 = vcombine.high %v2634_v40, %v2634_v40 }
 0x296   : > { %v2655_v50 = vadd.f32 %v2654_v38, %v2653_v1  ;;  %v2639_v17 = vsel %vm234_vm0, %v2634_v40, 0.0  ;;  %v2669_v55 = vsel %vm2667_vm2, %v2663_v28, %v2665_v53  ;;  %v2666_v22 = vsel %vm234_vm0, %v2664_v49, %v2665_v53 }
 0x297   : > { %v2621_v56 = vadd.f32 %v2620_v20, %v2619_v0  ;;  %v2605_v58 = vadd.f32 %v2604_v47, %v2603_v8  ;;  %v2611_v39 = vrot.slane %v2610_v42, 2  ;;  %v2640_v37 = vrot.slane %v2639_v17, 4 }
 0x298   : > { %v2656_v43 = vrot.slane %v2655_v50, 2  ;;  %v2646_v44 = vsel %vm234_vm0, %v2637_v25, 0.0  ;;  %v2673_v54 = vmul.f32 %v2669_v55, %v5228_v52  ;;  %v2668_v5 = vsel %vm2667_vm2, %v2661_v48, %v2666_v22  ;;  %v2930_v48 = vpop.permute.xlu1 %2929  ;;  %v2928_v55 = vpop.permute.xlu0 %2927 }
 0x299   : > { %v2854_v60 = vsel %vm567_vm5, %v2851_v32, %v2621_v56  ;;  %v2606_v9 = vrot.slane %v2605_v58, 1  ;;  %v2612_v62 = vadd.f32 %v2611_v39, %v2610_v42  ;;  %v2641_v61 = vadd.f32 %v2640_v37, %v2639_v17 }
 0x29a   : > { %v2657_v46 = vadd.f32 %v2656_v43, %v2655_v50  ;;  %v2647_v4 = vrot.slane %v2646_v44, 4  ;;  %v2691_v10 = vsel %vm234_vm0, %v2673_v54, 0.0  ;;  %v2672_v2 = vmul.f32 %v2668_v5, %v5233_v57 }
 0x29b   : > { %v2607_v6 = vadd.f32 %v2606_v9, %v2605_v58  ;;  %v2613_v63 = vrot.slane %v2612_v62, 1  ;;  %v2642_v7 = vrot.slane %v2641_v61, 2  ;;  %v2692_v33 = vrot.slane %v2691_v10, 4 }
 0x29c   : > { %v2658_v45 = vrot.slane %v2657_v46, 1  ;;  %v2648_v52 = vadd.f32 %v2647_v4, %v2646_v44  ;;  %vm2896_vm6 = vcmask 719872   ;;  %v2675_v13 = vcombine.high %v2672_v2, %v2672_v2 }
 0x29d   : > { %v2614_v16 = vadd.f32 %v2613_v63, %v2612_v62  ;;  %v2852_v51 = vsel %vm567_vm5, %v2849_v18, %v2607_v6  ;;  %v2643_v32 = vadd.f32 %v2642_v7, %v2641_v61  ;;  %v2693_v11 = vadd.f32 %v2692_v33, %v2691_v10  ;;  %v3273_v6 = vpop.permute.xlu1 %3272 }
 0x29e   : > { %v2659_v12 = vadd.f32 %v2658_v45, %v2657_v46  ;;  %v2649_v3 = vrot.slane %v2648_v52, 2  ;;  %v2677_v14 = vsel %vm234_vm0, %v2672_v2, 0.0  ;;  %v2684_v27 = vsel %vm234_vm0, %v2675_v13, 0.0 }
 0x29f   : > { %v2853_v15 = vsel %vm567_vm5, %v2850_v36, %v2614_v16  ;;  %v2644_v21 = vrot.slane %v2643_v32, 1  ;;  %v2694_v23 = vrot.slane %v2693_v11, 2  ;;  %v2678_v19 = vrot.slane %v2677_v14, 4  ;;  %v3271_v16 = vpop.permute.xlu0 %3270 }
 0x2a0   : > { %v2857_v26 = vsel %vm571_vm8, %v2854_v60, %v2659_v12  ;;  %v2650_v29 = vadd.f32 %v2649_v3, %v2648_v52  ;;  %v2894_v34 = vrot.slane %v2892_v41, 4  ;;  %v2685_v1 = vrot.slane %v2684_v27, 4 }
 0x2a1   : > { %v2645_v28 = vadd.f32 %v2644_v21, %v2643_v32  ;;  %v2695_v31 = vadd.f32 %v2694_v23, %v2693_v11  ;;  %v2679_v59 = vadd.f32 %v2678_v19, %v2677_v14  ;;  %v2893_v8 = vrot.slane %v2890_v24, 4  ;;  %v5317_v21 = vld [vmem:[%s4314_s28 + $0x8] sm:$0xf] }
 0x2a2   : > { %v2651_v18 = vrot.slane %v2650_v29, 1  ;;  %v2898_v0 = vsel %vm2896_vm6, %v2892_v41, %v2894_v34  ;;  %vm2934_vm7 = vcmask 711680   ;;  %v2686_v40 = vadd.f32 %v2685_v1, %v2684_v27 }
 0x2a3   : > { %v2855_v35 = vsel %vm571_vm8, %v2852_v51, %v2645_v28  ;;  %v2696_v36 = vrot.slane %v2695_v31, 1  ;;  %v2680_v38 = vrot.slane %v2679_v59, 2  ;;  %v2902_v20 = vmul.f32 %v2898_v0, %v5289_v30 }
 0x2a4   : > { %v2652_v53 = vadd.f32 %v2651_v18, %v2650_v29  ;;  %v2895_v47 = vsel %vm234_vm0, %v2893_v8, %v2894_v34  ;;  %v2932_v42 = vrot.slane %v2930_v48, 4  ;;  %v2687_v25 = vrot.slane %v2686_v40, 2 }
 0x2a5   : > { %v2697_v49 = vadd.f32 %v2696_v36, %v2695_v31  ;;  %v2681_v50 = vadd.f32 %v2680_v38, %v2679_v59  ;;  %v2897_v17 = vsel %vm2896_vm6, %v2890_v24, %v2895_v47  ;;  %v2920_v58 = vsel %vm234_vm0, %v2902_v20, 0.0  ;;  %v3311_v20 = vpop.permute.xlu1 %3310  ;;  %v3309_v47 = vpop.permute.xlu0 %3308 }
 0x2a6   : > { %v2856_v56 = vsel %vm571_vm8, %v2853_v15, %v2652_v53  ;;  %v2901_v39 = vmul.f32 %v2897_v17, %v5233_v57  ;;  %v2936_v37 = vsel %vm2934_vm7, %v2930_v48, %v2932_v42  ;;  %v2688_v54 = vadd.f32 %v2687_v25, %v2686_v40 }
 0x2a7   : > { %v5301_v43 = vsel %vm234_vm0, %v2857_v26, %v2697_v49  ;;  %v2682_v44 = vrot.slane %v2681_v50, 1  ;;  %v2921_v22 = vrot.slane %v2920_v58, 4  ;;  %v2940_v62 = vmul.f32 %v2936_v37, %v5289_v30 }
 0x2a8   : > { %v2904_v60 = vcombine.high %v2901_v39, %v2901_v39  ;;  %v2906_v9 = vsel %vm234_vm0, %v2901_v39, 0.0  ;;  %v2931_v61 = vrot.slane %v2928_v55, 4  ;;  %v2689_v4 = vrot.slane %v2688_v54, 1 }
 0x2a9   : > { %v2683_v46 = vadd.f32 %v2682_v44, %v2681_v50  ;;  %v2922_v10 = vadd.f32 %v2921_v22, %v2920_v58  ;;  %v2907_v5 = vrot.slane %v2906_v9, 4  ;;  %v2958_v7 = vsel %vm234_vm0, %v2940_v62, 0.0 }
 0x2aa   : > { %v2913_v63 = vsel %vm234_vm0, %v2904_v60, 0.0  ;;  %v2933_v33 = vsel %vm234_vm0, %v2931_v61, %v2932_v42  ;;  %vm3277_vm9 = vcmask 523264   ;;  %v2690_v41 = vadd.f32 %v2689_v4, %v2688_v54 }
 0x2ab   : > { %v5309_v45 = vsel %vm234_vm0, %v2855_v35, %v2683_v46  ;;  %v2923_v52 = vrot.slane %v2922_v10, 2  ;;  %v2908_v2 = vadd.f32 %v2907_v5, %v2906_v9  ;;  %v2914_v51 = vrot.slane %v2913_v63, 4 }
 0x2ac   : > { %v2959_v32 = vrot.slane %v2958_v7, 4  ;;  %v2935_v11 = vsel %vm2934_vm7, %v2928_v55, %v2933_v33  ;;  %v3275_v12 = vrot.slane %v3273_v6, 4  ;;  %v5313_v3 = vsel %vm234_vm0, %v2856_v56, %v2690_v41 }
 0x2ad   : > { %v2924_v13 = vadd.f32 %v2923_v52, %v2922_v10  ;;  %v2909_v14 = vrot.slane %v2908_v2, 2  ;;  %v2939_v15 = vmul.f32 %v2935_v11, %v5233_v57  ;;  %v2915_v23 = vadd.f32 %v2914_v51, %v2913_v63  ;;  %v2968_v11 = vpop.permute.xlu1 %2967 }
 0x2ae   : > { %v2960_v19 = vadd.f32 %v2959_v32, %v2958_v7  ;;  %v3279_v24 = vsel %vm3277_vm9, %v3273_v6, %v3275_v12  ;;  %v3274_v26 = vrot.slane %v3271_v16, 4  ;;  %vm3315_vm11 = vcmask 515072  }
 0x2af   : > { %v2925_v29 = vrot.slane %v2924_v13, 1  ;;  %v2910_v27 = vadd.f32 %v2909_v14, %v2908_v2  ;;  %v2942_v34 = vcombine.high %v2939_v15, %v2939_v15  ;;  %v2944_v28 = vsel %vm234_vm0, %v2939_v15, 0.0  ;;  %v2966_v15 = vpop.permute.xlu0 %2965 }
 0x2b0   : > { %v2916_v31 = vrot.slane %v2915_v23, 2  ;;  %v2961_v59 = vrot.slane %v2960_v19, 2  ;;  %v2945_v1 = vrot.slane %v2944_v28, 4  ;;  %v3283_v48 = vmul.f32 %v3279_v24, %v5317_v21 }
 0x2b1   : > { %v2926_v18 = vadd.f32 %v2925_v29, %v2924_v13  ;;  %v2911_v0 = vrot.slane %v2910_v27, 1  ;;  %v2951_v8 = vsel %vm234_vm0, %v2942_v34, 0.0  ;;  %v3276_v35 = vsel %vm234_vm0, %v3274_v26, %v3275_v12 }
 0x2b2   : > { %v2917_v36 = vadd.f32 %v2916_v31, %v2915_v23  ;;  %v2962_v38 = vadd.f32 %v2961_v59, %v2960_v19  ;;  %v2946_v40 = vadd.f32 %v2945_v1, %v2944_v28  ;;  %v2952_v53 = vrot.slane %v2951_v8, 4 }
 0x2b3   : > { %v2912_v42 = vadd.f32 %v2911_v0, %v2910_v27  ;;  %v3301_v49 = vsel %vm234_vm0, %v3283_v48, 0.0  ;;  %v3278_v50 = vsel %vm3277_vm9, %v3271_v16, %v3276_v35  ;;  %v3313_v37 = vrot.slane %v3311_v20, 4 }
 0x2b4   : > { %v2918_v25 = vrot.slane %v2917_v36, 1  ;;  %v2963_v17 = vrot.slane %v2962_v38, 1  ;;  %v2947_v55 = vrot.slane %v2946_v40, 2  ;;  %v2953_v56 = vadd.f32 %v2952_v53, %v2951_v8 }
 0x2b5   : > { %v3302_v58 = vrot.slane %v3301_v49, 4  ;;  %v3282_v39 = vmul.f32 %v3278_v50, %v5233_v57  ;;  %v3312_v44 = vrot.slane %v3309_v47, 4  ;;  %v3317_v4 = vsel %vm3315_vm11, %v3311_v20, %v3313_v37 }
 0x2b6   : > { %v2919_v54 = vadd.f32 %v2918_v25, %v2917_v36  ;;  %v2964_v22 = vadd.f32 %v2963_v17, %v2962_v38  ;;  %v2948_v60 = vadd.f32 %v2947_v55, %v2946_v40  ;;  %v2954_v9 = vrot.slane %v2953_v56, 2 }
 0x2b7   : > { %v3303_v62 = vadd.f32 %v3302_v58, %v3301_v49  ;;  %v3285_v61 = vcombine.high %v3282_v39, %v3282_v39  ;;  %v3287_v46 = vsel %vm234_vm0, %v3282_v39, 0.0  ;;  %v3321_v41 = vmul.f32 %v3317_v4, %v5317_v21  ;;  %v3347_v58 = vpop.permute.xlu0 %3346 }
 0x2b8   : > { %v5330_v10 = vsel %vm563_vm4, %v2926_v18, %v2964_v22  ;;  %v2949_v5 = vrot.slane %v2948_v60, 1  ;;  %v2955_v6 = vadd.f32 %v2954_v9, %v2953_v56  ;;  %v3288_v63 = vrot.slane %v3287_v46, 4  ;;  %v3349_v56 = vpop.permute.xlu1 %3348 }
 0x2b9   : > { %v3304_v7 = vrot.slane %v3303_v62, 2  ;;  %v3294_v33 = vsel %vm234_vm0, %v3285_v61, 0.0  ;;  %v3314_v52 = vsel %vm234_vm0, %v3312_v44, %v3313_v37  ;;  %v3339_v13 = vsel %vm234_vm0, %v3321_v41, 0.0 }
 0x2ba   : > { %v2950_v2 = vadd.f32 %v2949_v5, %v2948_v60  ;;  %v2956_v16 = vrot.slane %v2955_v6, 1  ;;  %v3289_v51 = vadd.f32 %v3288_v63, %v3287_v46  ;;  %v3295_v32 = vrot.slane %v3294_v33, 4 }
 0x2bb   : > { %v3305_v12 = vadd.f32 %v3304_v7, %v3303_v62  ;;  %v3316_v14 = vsel %vm3315_vm11, %v3309_v47, %v3314_v52  ;;  %vm2972_vm12 = vcmask 703488   ;;  %v3340_v27 = vrot.slane %v3339_v13, 4 }
 0x2bc   : > { %v2957_v23 = vadd.f32 %v2956_v16, %v2955_v6  ;;  %v5338_v19 = vsel %vm563_vm4, %v2912_v42, %v2950_v2  ;;  %v3290_v24 = vrot.slane %v3289_v51, 2  ;;  %v3296_v26 = vadd.f32 %v3295_v32, %v3294_v33 }
 0x2bd   : > { %v3306_v29 = vrot.slane %v3305_v12, 1  ;;  %v3320_v34 = vmul.f32 %v3316_v14, %v5233_v57  ;;  %v2970_v28 = vrot.slane %v2968_v11, 4  ;;  %v2969_v48 = vrot.slane %v2966_v15, 4 }
 0x2be   : > { %v5342_v31 = vsel %vm563_vm4, %v2919_v54, %v2957_v23  ;;  %v3291_v59 = vadd.f32 %v3290_v24, %v3289_v51  ;;  %v3297_v1 = vrot.slane %v3296_v26, 2  ;;  %v3341_v0 = vadd.f32 %v3340_v27, %v3339_v13 }
 0x2bf   : > { %v3307_v18 = vadd.f32 %v3306_v29, %v3305_v12  ;;  %v3323_v8 = vcombine.high %v3320_v34, %v3320_v34  ;;  %v3325_v35 = vsel %vm234_vm0, %v3320_v34, 0.0  ;;  %v2974_v53 = vsel %vm2972_vm12, %v2968_v11, %v2970_v28  ;;  %v3006_v11 = vpop.permute.xlu1 %3005 }
 0x2c0   : > { %v3292_v36 = vrot.slane %v3291_v59, 1  ;;  %v3298_v38 = vadd.f32 %v3297_v1, %v3296_v26  ;;  %v3326_v40 = vrot.slane %v3325_v35, 4  ;;  %v3342_v20 = vrot.slane %v3341_v0, 2 }
 0x2c1   : > { %v3332_v47 = vsel %vm234_vm0, %v3323_v8, 0.0  ;;  %v2978_v42 = vmul.f32 %v2974_v53, %v5289_v30  ;;  %v2971_v49 = vsel %vm234_vm0, %v2969_v48, %v2970_v28  ;;  %vm3353_vm2 = vcmask 506880  }
 0x2c2   : > { %v3293_v50 = vadd.f32 %v3292_v36, %v3291_v59  ;;  %v3299_v25 = vrot.slane %v3298_v38, 1  ;;  %v3327_v17 = vadd.f32 %v3326_v40, %v3325_v35  ;;  %v3333_v55 = vrot.slane %v3332_v47, 4 }
 0x2c3   : > { %v3343_v39 = vadd.f32 %v3342_v20, %v3341_v0  ;;  %v2996_v37 = vsel %vm234_vm0, %v2978_v42, 0.0  ;;  %v2973_v44 = vsel %vm2972_vm12, %v2966_v15, %v2971_v49  ;;  %v3351_v46 = vrot.slane %v3349_v56, 4  ;;  %v3004_v42 = vpop.permute.xlu0 %3003 }
 0x2c4   : > { %v3300_v54 = vadd.f32 %v3299_v25, %v3298_v38  ;;  %v3328_v22 = vrot.slane %v3327_v17, 2  ;;  %v3334_v60 = vadd.f32 %v3333_v55, %v3332_v47  ;;  %v2997_v9 = vrot.slane %v2996_v37, 4 }
 0x2c5   : > { %v3344_v62 = vrot.slane %v3343_v39, 1  ;;  %v2977_v61 = vmul.f32 %v2973_v44, %v5233_v57  ;;  %v3350_v4 = vrot.slane %v3347_v58, 4  ;;  %vm3010_vm6 = vcmask 695296  }
 0x2c6   : > { %v3329_v5 = vadd.f32 %v3328_v22, %v3327_v17  ;;  %v3335_v6 = vrot.slane %v3334_v60, 2  ;;  %v2998_v63 = vadd.f32 %v2997_v9, %v2996_v37  ;;  %v3355_v52 = vsel %vm3353_vm2, %v3349_v56, %v3351_v46 }
 0x2c7   : > { %v3345_v7 = vadd.f32 %v3344_v62, %v3343_v39  ;;  %v2980_v33 = vcombine.high %v2977_v61, %v2977_v61  ;;  %v2982_v41 = vsel %vm234_vm0, %v2977_v61, 0.0  ;;  %v3359_v14 = vmul.f32 %v3355_v52, %v5317_v21 }
 0x2c8   : > { %v3330_v2 = vrot.slane %v3329_v5, 1  ;;  %v3336_v16 = vadd.f32 %v3335_v6, %v3334_v60  ;;  %v2999_v51 = vrot.slane %v2998_v63, 2  ;;  %v2983_v32 = vrot.slane %v2982_v41, 4  ;;  %v3387_v6 = vpop.permute.xlu1 %3386 }
 0x2c9   : > { %v5355_v12 = vsel %vm563_vm4, %v3307_v18, %v3345_v7  ;;  %v2989_v13 = vsel %vm234_vm0, %v2980_v33, 0.0  ;;  %v3352_v15 = vsel %vm234_vm0, %v3350_v4, %v3351_v46  ;;  %v3377_v34 = vsel %vm234_vm0, %v3359_v14, 0.0 }
 0x2ca   : > { %v3331_v23 = vadd.f32 %v3330_v2, %v3329_v5  ;;  %v3337_v24 = vrot.slane %v3336_v16, 1  ;;  %v3000_v26 = vadd.f32 %v2999_v51, %v2998_v63  ;;  %v2984_v29 = vadd.f32 %v2983_v32, %v2982_v41  ;;  %v3385_v41 = vpop.permute.xlu0 %3384 }
 0x2cb   : > { %v2990_v27 = vrot.slane %v2989_v13, 4  ;;  %v3354_v28 = vsel %vm3353_vm2, %v3347_v58, %v3352_v15  ;;  %v3008_v59 = vrot.slane %v3006_v11, 4  ;;  %v3378_v35 = vrot.slane %v3377_v34, 4 }
 0x2cc   : > { %v3338_v1 = vadd.f32 %v3337_v24, %v3336_v16  ;;  %v5363_v48 = vsel %vm563_vm4, %v3293_v50, %v3331_v23  ;;  %v3001_v18 = vrot.slane %v3000_v26, 1  ;;  %v2985_v0 = vrot.slane %v2984_v29, 2 }
 0x2cd   : > { %v2991_v8 = vadd.f32 %v2990_v27, %v2989_v13  ;;  %v3358_v36 = vmul.f32 %v3354_v28, %v5233_v57  ;;  %v3012_v38 = vsel %vm3010_vm6, %v3006_v11, %v3008_v59  ;;  %v3379_v25 = vadd.f32 %v3378_v35, %v3377_v34 }
 0x2ce   : > { %v5368_v40 = vsel %vm563_vm4, %v3300_v54, %v3338_v1  ;;  %v3002_v53 = vadd.f32 %v3001_v18, %v3000_v26  ;;  %v2986_v20 = vadd.f32 %v2985_v0, %v2984_v29  ;;  %v3016_v47 = vmul.f32 %v3012_v38, %v5289_v30  ;;  %v3044_v0 = vpop.permute.xlu1 %3043 }
 0x2cf   : > { %v2992_v49 = vrot.slane %v2991_v8, 2  ;;  %v3361_v50 = vcombine.high %v3358_v36, %v3358_v36  ;;  %v3363_v17 = vsel %vm234_vm0, %v3358_v36, 0.0  ;;  %v3380_v44 = vrot.slane %v3379_v25, 2 }
 0x2d0   : > { %v3235_v55 = vsel %vm567_vm5, %v5330_v10, %v3002_v53  ;;  %v2987_v56 = vrot.slane %v2986_v20, 1  ;;  %v3364_v58 = vrot.slane %v3363_v17, 4  ;;  %v3034_v39 = vsel %vm234_vm0, %v3016_v47, 0.0 }
 0x2d1   : > { %v2993_v37 = vadd.f32 %v2992_v49, %v2991_v8  ;;  %v3370_v54 = vsel %vm234_vm0, %v3361_v50, 0.0  ;;  %v3035_v22 = vrot.slane %v3034_v39, 4  ;;  %v3007_v61 = vrot.slane %v3004_v42, 4  ;;  %v3042_v50 = vpop.permute.xlu0 %3041 }
 0x2d2   : > { %v2988_v60 = vadd.f32 %v2987_v56, %v2986_v20  ;;  %v3365_v9 = vadd.f32 %v3364_v58, %v3363_v17  ;;  %v3371_v62 = vrot.slane %v3370_v54, 4  ;;  %v3381_v4 = vadd.f32 %v3380_v44, %v3379_v25 }
 0x2d3   : > { %v2994_v46 = vrot.slane %v2993_v37, 1  ;;  %v3036_v5 = vadd.f32 %v3035_v22, %v3034_v39  ;;  %vm3391_vm4 = vcmask 498688   ;;  %v3009_v33 = vsel %vm234_vm0, %v3007_v61, %v3008_v59 }
 0x2d4   : > { %v5378_v10 = vsel %vm567_vm5, %v5338_v19, %v2988_v60  ;;  %v3366_v63 = vrot.slane %v3365_v9, 2  ;;  %v3372_v7 = vadd.f32 %v3371_v62, %v3370_v54  ;;  %v3382_v2 = vrot.slane %v3381_v4, 1  ;;  %v3425_v62 = vpop.permute.xlu1 %3424 }
 0x2d5   : > { %v2995_v52 = vadd.f32 %v2994_v46, %v2993_v37  ;;  %v3037_v16 = vrot.slane %v3036_v5, 2  ;;  %v3011_v51 = vsel %vm3010_vm6, %v3004_v42, %v3009_v33  ;;  %v3389_v14 = vrot.slane %v3387_v6, 4 }
 0x2d6   : > { %v3367_v32 = vadd.f32 %v3366_v63, %v3365_v9  ;;  %v3373_v11 = vrot.slane %v3372_v7, 2  ;;  %v3015_v13 = vmul.f32 %v3011_v51, %v5233_v57  ;;  %v3383_v19 = vadd.f32 %v3382_v2, %v3381_v4 }
 0x2d7   : > { %v5385_v15 = vsel %vm567_vm5, %v5342_v31, %v2995_v52  ;;  %v3038_v23 = vadd.f32 %v3037_v16, %v3036_v5  ;;  %v3388_v24 = vrot.slane %v3385_v41, 4  ;;  %v3393_v18 = vsel %vm3391_vm4, %v3387_v6, %v3389_v14 }
 0x2d8   : > { %v3368_v26 = vrot.slane %v3367_v32, 1  ;;  %v3374_v29 = vadd.f32 %v3373_v11, %v3372_v7  ;;  %v3018_v27 = vcombine.high %v3015_v13, %v3015_v13  ;;  %v3020_v34 = vsel %vm234_vm0, %v3015_v13, 0.0 }
 0x2d9   : > { %v5390_v28 = vsel %vm567_vm5, %v5355_v12, %v3383_v19  ;;  %v3039_v59 = vrot.slane %v3038_v23, 1  ;;  %v3021_v1 = vrot.slane %v3020_v34, 4  ;;  %v3397_v36 = vmul.f32 %v3393_v18, %v5317_v21  ;;  %v3423_v19 = vpop.permute.xlu0 %3422 }
 0x2da   : > { %v3369_v8 = vadd.f32 %v3368_v26, %v3367_v32  ;;  %v3375_v31 = vrot.slane %v3374_v29, 1  ;;  %v3027_v35 = vsel %vm234_vm0, %v3018_v27, 0.0  ;;  %v3390_v47 = vsel %vm234_vm0, %v3388_v24, %v3389_v14 }
 0x2db   : > { %v3040_v38 = vadd.f32 %v3039_v59, %v3038_v23  ;;  %v3022_v53 = vadd.f32 %v3021_v1, %v3020_v34  ;;  %v3028_v20 = vrot.slane %v3027_v35, 4  ;;  %v3415_v49 = vsel %vm234_vm0, %v3397_v36, 0.0 }
 0x2dc   : > { %v3376_v42 = vadd.f32 %v3375_v31, %v3374_v29  ;;  %v5398_v12 = vsel %vm567_vm5, %v5363_v48, %v3369_v8  ;;  %v3392_v25 = vsel %vm3391_vm4, %v3385_v41, %v3390_v47  ;;  %v3416_v39 = vrot.slane %v3415_v49, 4 }
 0x2dd   : > { %v5403_v17 = vsel %vm571_vm8, %v3235_v55, %v3040_v38  ;;  %v3023_v56 = vrot.slane %v3022_v53, 2  ;;  %v3029_v58 = vadd.f32 %v3028_v20, %v3027_v35  ;;  %v3396_v44 = vmul.f32 %v3392_v25, %v5233_v57 }
 0x2de   : > { %v5407_v37 = vsel %vm567_vm5, %v5368_v40, %v3376_v42  ;;  %vm3048_vm7 = vcmask 687104   ;;  %v3046_v48 = vrot.slane %v3044_v0, 4  ;;  %v3417_v60 = vadd.f32 %v3416_v39, %v3415_v49 }
 0x2df   : > { %v3024_v54 = vadd.f32 %v3023_v56, %v3022_v53  ;;  %v3030_v22 = vrot.slane %v3029_v58, 2  ;;  %v3045_v9 = vrot.slane %v3042_v50, 4  ;;  %v3399_v61 = vcombine.high %v3396_v44, %v3396_v44  ;;  %v2701_v56 = vpop.permute.xlu1 %2700 }
 0x2e0   : > { %v3401_v55 = vsel %vm234_vm0, %v3396_v44, 0.0  ;;  %v3050_v46 = vsel %vm3048_vm7, %v3044_v0, %v3046_v48  ;;  %vm3429_vm9 = vcmask 490496   ;;  %v3418_v6 = vrot.slane %v3417_v60, 2 }
 0x2e1   : > { %v3025_v4 = vrot.slane %v3024_v54, 1  ;;  %v3031_v5 = vadd.f32 %v3030_v22, %v3029_v58  ;;  %v3402_v40 = vrot.slane %v3401_v55, 4  ;;  %v3408_v63 = vsel %vm234_vm0, %v3399_v61, 0.0 }
 0x2e2   : > { %v3054_v7 = vmul.f32 %v3050_v46, %v5289_v30  ;;  %v3047_v33 = vsel %vm234_vm0, %v3045_v9, %v3046_v48  ;;  %v3427_v41 = vrot.slane %v3425_v62, 4  ;;  %v3419_v16 = vadd.f32 %v3418_v6, %v3417_v60 }
 0x2e3   : > { %v3026_v52 = vadd.f32 %v3025_v4, %v3024_v54  ;;  %v3032_v2 = vrot.slane %v3031_v5, 1  ;;  %v3403_v51 = vadd.f32 %v3402_v40, %v3401_v55  ;;  %v3409_v32 = vrot.slane %v3408_v63, 4 }
 0x2e4   : > { %v3072_v11 = vsel %vm234_vm0, %v3054_v7, 0.0  ;;  %v3049_v13 = vsel %vm3048_vm7, %v3042_v50, %v3047_v33  ;;  %v3431_v14 = vsel %vm3429_vm9, %v3425_v62, %v3427_v41  ;;  %v3420_v26 = vrot.slane %v3419_v16, 1  ;;  %v2699_v33 = vpop.permute.xlu0 %2698 }
 0x2e5   : > { %v3033_v23 = vadd.f32 %v3032_v2, %v3031_v5  ;;  %v5420_v24 = vsel %vm571_vm8, %v5378_v10, %v3026_v52  ;;  %v3404_v29 = vrot.slane %v3403_v51, 2  ;;  %v3410_v27 = vadd.f32 %v3409_v32, %v3408_v63 }
 0x2e6   : > { %v3073_v34 = vrot.slane %v3072_v11, 4  ;;  %v3053_v59 = vmul.f32 %v3049_v13, %v5233_v57  ;;  %v3435_v1 = vmul.f32 %v3431_v14, %v5317_v21  ;;  %v3421_v0 = vadd.f32 %v3420_v26, %v3419_v16  ;;  %v3082_v16 = vpop.permute.xlu1 %3081 }
 0x2e7   : > { %v5426_v18 = vsel %vm571_vm8, %v5385_v15, %v3033_v23  ;;  %v3405_v8 = vadd.f32 %v3404_v29, %v3403_v51  ;;  %v3426_v31 = vrot.slane %v3423_v19, 4  ;;  %v3411_v35 = vrot.slane %v3410_v27, 2 }
 0x2e8   : > { %v3074_v36 = vadd.f32 %v3073_v34, %v3072_v11  ;;  %v3056_v38 = vcombine.high %v3053_v59, %v3053_v59  ;;  %v3058_v10 = vsel %vm234_vm0, %v3053_v59, 0.0  ;;  %v3619_v53 = vsel %vm571_vm8, %v5390_v28, %v3421_v0  ;;  %v5452_v0 = vld [vmem:[%s4314_s28 + $0x8] sm:$0xf] }
 0x2e9   : > { %v3406_v20 = vrot.slane %v3405_v8, 1  ;;  %v3059_v47 = vrot.slane %v3058_v10, 4  ;;  %v3453_v42 = vsel %vm234_vm0, %v3435_v1, 0.0  ;;  %v3412_v49 = vadd.f32 %v3411_v35, %v3410_v27 }
 0x2ea   : > { %v3075_v25 = vrot.slane %v3074_v36, 2  ;;  %v3065_v15 = vsel %vm234_vm0, %v3056_v38, 0.0  ;;  %v3454_v50 = vrot.slane %v3453_v42, 4  ;;  %v3428_v48 = vsel %vm234_vm0, %v3426_v31, %v3427_v41 }
 0x2eb   : > { %v3407_v58 = vadd.f32 %v3406_v20, %v3405_v8  ;;  %v3060_v39 = vadd.f32 %v3059_v47, %v3058_v10  ;;  %v3066_v44 = vrot.slane %v3065_v15, 4  ;;  %v3413_v54 = vrot.slane %v3412_v49, 1 }
 0x2ec   : > { %v3076_v22 = vadd.f32 %v3075_v25, %v3074_v36  ;;  %v3455_v60 = vadd.f32 %v3454_v50, %v3453_v42  ;;  %v3430_v28 = vsel %vm3429_vm9, %v3423_v19, %v3428_v48  ;;  %vm2705_vm5 = vcmask 875520   ;;  %v3080_v36 = vpop.permute.xlu0 %3079  ;;  %v3463_v42 = vpop.permute.xlu1 %3462 }
 0x2ed   : > { %v5437_v9 = vsel %vm571_vm8, %v5398_v12, %v3407_v58  ;;  %v3061_v62 = vrot.slane %v3060_v39, 2  ;;  %v3067_v61 = vadd.f32 %v3066_v44, %v3065_v15  ;;  %v3434_v55 = vmul.f32 %v3430_v28, %v5233_v57  ;;  %v5470_v58 = vld [vmem:[%s4314_s28] sm:$0xff] }
 0x2ee   : > { %v3414_v46 = vadd.f32 %v3413_v54, %v3412_v49  ;;  %v3077_v4 = vrot.slane %v3076_v22, 1  ;;  %v3456_v5 = vrot.slane %v3455_v60, 2  ;;  %v2703_v11 = vrot.slane %v2701_v56, 4 }
 0x2ef   : > { %v3062_v6 = vadd.f32 %v3061_v62, %v3060_v39  ;;  %v3068_v40 = vrot.slane %v3067_v61, 2  ;;  %v3437_v63 = vcombine.high %v3434_v55, %v3434_v55  ;;  %v3439_v7 = vsel %vm234_vm0, %v3434_v55, 0.0 }
 0x2f0   : > { %v5443_v41 = vsel %vm571_vm8, %v5407_v37, %v3414_v46  ;;  %v3078_v12 = vadd.f32 %v3077_v4, %v3076_v22  ;;  %v3457_v52 = vadd.f32 %v3456_v5, %v3455_v60  ;;  %v3440_v2 = vrot.slane %v3439_v7, 4 }
 0x2f1   : > { %v3063_v57 = vrot.slane %v3062_v6, 1  ;;  %v3069_v51 = vadd.f32 %v3068_v40, %v3067_v61  ;;  %v3446_v32 = vsel %vm234_vm0, %v3437_v63, 0.0  ;;  %v2707_v29 = vsel %vm2705_vm5, %v2701_v56, %v2703_v11 }
 0x2f2   : > { %v5448_v13 = vsel %vm234_vm0, %v5403_v17, %v3078_v12  ;;  %v3458_v14 = vrot.slane %v3457_v52, 1  ;;  %v3441_v19 = vadd.f32 %v3440_v2, %v3439_v7  ;;  %v3447_v23 = vrot.slane %v3446_v32, 4 }
 0x2f3   : > { %v3064_v26 = vadd.f32 %v3063_v57, %v3062_v6  ;;  %v3070_v37 = vrot.slane %v3069_v51, 1  ;;  %v2702_v27 = vrot.slane %v2699_v33, 4  ;;  %v2711_v8 = vmul.f32 %v5452_v0, %v2707_v29 }
 0x2f4   : > { %v3459_v34 = vadd.f32 %v3458_v14, %v3457_v52  ;;  %v3442_v59 = vrot.slane %v3441_v19, 2  ;;  %v3448_v1 = vadd.f32 %v3447_v23, %v3446_v32  ;;  %vm3086_vm8 = vcmask 678912   ;;  %v3461_v52 = vpop.permute.xlu0 %3460 }
 0x2f5   : > { %v3071_v31 = vadd.f32 %v3070_v37, %v3069_v51  ;;  %v5457_v17 = vsel %vm234_vm0, %v5420_v24, %v3064_v26  ;;  %v2704_v35 = vsel %vm234_vm0, %v2702_v27, %v2703_v11  ;;  %v2729_v47 = vsel %vm234_vm0, %v2711_v8, 0.0 }
 0x2f6   : > { %v5461_v38 = vsel %vm234_vm0, %v3619_v53, %v3459_v34  ;;  %v3443_v10 = vadd.f32 %v3442_v59, %v3441_v19  ;;  %v3449_v20 = vrot.slane %v3448_v1, 2  ;;  %v2730_v25 = vrot.slane %v2729_v47, 4 }
 0x2f7   : > { %v5466_v49 = vsel %vm234_vm0, %v5426_v18, %v3071_v31  ;;  %v2706_v24 = vsel %vm2705_vm5, %v2699_v33, %v2704_v35  ;;  %v3084_v15 = vrot.slane %v3082_v16, 4  ;;  %v3083_v39 = vrot.slane %v3080_v36, 4 }
 0x2f8   : > { %v3444_v50 = vrot.slane %v3443_v10, 1  ;;  %v3450_v56 = vadd.f32 %v3449_v20, %v3448_v1  ;;  %v2710_v53 = vmul.f32 %v5470_v58, %v2706_v24  ;;  %v2731_v44 = vadd.f32 %v2730_v25, %v2729_v47 }
 0x2f9   : > { %v3088_v48 = vsel %vm3086_vm8, %v3082_v16, %v3084_v15  ;;  %vm3467_vm11 = vcmask 482304   ;;  %v3465_v54 = vrot.slane %v3463_v42, 4  ;;  %v3085_v46 = vsel %vm234_vm0, %v3083_v39, %v3084_v15 }
 0x2fa   : > { %v3445_v22 = vadd.f32 %v3444_v50, %v3443_v10  ;;  %v3451_v60 = vrot.slane %v3450_v56, 1  ;;  %v2713_v18 = vcombine.high %v2710_v53, %v2710_v53  ;;  %v2715_v28 = vsel %vm234_vm0, %v2710_v53, 0.0 }
 0x2fb   : > { %v2732_v62 = vrot.slane %v2731_v44, 2  ;;  %v2716_v61 = vrot.slane %v2715_v28, 4  ;;  %v3092_v55 = vmul.f32 %v3088_v48, %v5289_v30  ;;  %v3087_v40 = vsel %vm3086_vm8, %v3080_v36, %v3085_v46 }
 0x2fc   : > { %v3452_v4 = vadd.f32 %v3451_v60, %v3450_v56  ;;  %v5479_v5 = vsel %vm234_vm0, %v5437_v9, %v3445_v22  ;;  %v2722_v6 = vsel %vm234_vm0, %v2713_v18, 0.0  ;;  %v3091_v57 = vmul.f32 %v5470_v58, %v3087_v40 }
 0x2fd   : > { %v2733_v63 = vadd.f32 %v2732_v62, %v2731_v44  ;;  %v2717_v7 = vadd.f32 %v2716_v61, %v2715_v28  ;;  %v2723_v33 = vrot.slane %v2722_v6, 4  ;;  %v3110_v12 = vsel %vm234_vm0, %v3092_v55, 0.0 }
 0x2fe   : > { %v5486_v2 = vsel %vm234_vm0, %v5443_v41, %v3452_v4  ;;  %v3111_v16 = vrot.slane %v3110_v12, 4  ;;  %v3469_v9 = vsel %vm3467_vm11, %v3463_v42, %v3465_v54  ;;  %v3094_v23 = vcombine.high %v3091_v57, %v3091_v57 }
 0x2ff   : > { %v2734_v51 = vrot.slane %v2733_v63, 1  ;;  %v2718_v32 = vrot.slane %v2717_v7, 2  ;;  %v2724_v11 = vadd.f32 %v2723_v33, %v2722_v6  ;;  %v3473_v14 = vmul.f32 %v3469_v9, %v5317_v21 }
 0x300   : > { %v3112_v19 = vadd.f32 %v3111_v16, %v3110_v12  ;;  %v3096_v26 = vsel %vm234_vm0, %v3091_v57, 0.0  ;;  %v3464_v37 = vrot.slane %v3461_v52, 4  ;;  %v3103_v1 = vsel %vm234_vm0, %v3094_v23, 0.0 }
 0x301   : > { %v2735_v29 = vadd.f32 %v2734_v51, %v2733_v63  ;;  %v2719_v27 = vadd.f32 %v2718_v32, %v2717_v7  ;;  %v2725_v34 = vrot.slane %v2724_v11, 2  ;;  %v3097_v41 = vrot.slane %v3096_v26, 4 }
 0x302   : > { %v3113_v59 = vrot.slane %v3112_v19, 2  ;;  %v3491_v8 = vsel %vm234_vm0, %v3473_v14, 0.0  ;;  %v3466_v31 = vsel %vm234_vm0, %v3464_v37, %v3465_v54  ;;  %v3104_v42 = vrot.slane %v3103_v1, 4  ;;  %v2739_v54 = vpop.permute.xlu1 %2738 }
 0x303   : > { %v5497_v35 = vsel %vm578_vm10, %v5301_v43, %v2735_v29  ;;  %v2720_v36 = vrot.slane %v2719_v27, 1  ;;  %v2726_v10 = vadd.f32 %v2725_v34, %v2724_v11  ;;  %v3098_v20 = vadd.f32 %v3097_v41, %v3096_v26  ;;  %v2737_v43 = vpop.permute.xlu0 %2736 }
 0x304   : > { %v3114_v47 = vadd.f32 %v3113_v59, %v3112_v19  ;;  %v3492_v25 = vrot.slane %v3491_v8, 4  ;;  %v3468_v24 = vsel %vm3467_vm11, %v3461_v52, %v3466_v31  ;;  %v3105_v44 = vadd.f32 %v3104_v42, %v3103_v1 }
 0x305   : > { %v2721_v15 = vadd.f32 %v2720_v36, %v2719_v27  ;;  %v2727_v50 = vrot.slane %v2726_v10, 1  ;;  %v3099_v56 = vrot.slane %v3098_v20, 2  ;;  %v3472_v53 = vmul.f32 %v5470_v58, %v3468_v24 }
 0x306   : > { %v3115_v39 = vrot.slane %v3114_v47, 1  ;;  %v3493_v48 = vadd.f32 %v3492_v25, %v3491_v8  ;;  %vm2743_vm12 = vcmask 867328   ;;  %v3106_v61 = vrot.slane %v3105_v44, 2 }
 0x307   : > { %v2728_v22 = vadd.f32 %v2727_v50, %v2726_v10  ;;  %v5503_v60 = vsel %vm578_vm10, %v5309_v45, %v2721_v15  ;;  %v3100_v18 = vadd.f32 %v3099_v56, %v3098_v20  ;;  %v3475_v28 = vcombine.high %v3472_v53, %v3472_v53  ;;  %v3118_v14 = vpop.permute.xlu0 %3117 }
 0x308   : > { %v3116_v62 = vadd.f32 %v3115_v39, %v3114_v47  ;;  %v3494_v55 = vrot.slane %v3493_v48, 2  ;;  %v3477_v46 = vsel %vm234_vm0, %v3472_v53, 0.0  ;;  %v3107_v45 = vadd.f32 %v3106_v61, %v3105_v44 }
 0x309   : > { %v5508_v4 = vsel %vm578_vm10, %v5313_v3, %v2728_v22  ;;  %v3101_v6 = vrot.slane %v3100_v18, 1  ;;  %v3478_v40 = vrot.slane %v3477_v46, 4  ;;  %v3484_v63 = vsel %vm234_vm0, %v3475_v28, 0.0  ;;  %v3120_v3 = vpop.permute.xlu1 %3119 }
 0x30a   : > { %v5513_v7 = vsel %vm578_vm10, %v5448_v13, %v3116_v62  ;;  %v3495_v33 = vadd.f32 %v3494_v55, %v3493_v48  ;;  %v3485_v12 = vrot.slane %v3484_v63, 4  ;;  %v2741_v57 = vrot.slane %v2739_v54, 4 }
 0x30b   : > { %v3102_v52 = vadd.f32 %v3101_v6, %v3100_v18  ;;  %v3479_v16 = vadd.f32 %v3478_v40, %v3477_v46  ;;  %v2740_v9 = vrot.slane %v2737_v43, 4  ;;  %v3108_v51 = vrot.slane %v3107_v45, 1  ;;  %v3499_v22 = vpop.permute.xlu0 %3498 }
 0x30c   : > { %v3496_v32 = vrot.slane %v3495_v33, 1  ;;  %v3486_v11 = vadd.f32 %v3485_v12, %v3484_v63  ;;  %vm3124_vm2 = vcmask 670720   ;;  %v2745_v13 = vsel %vm2743_vm12, %v2739_v54, %v2741_v57 }
 0x30d   : > { %v5517_v19 = vsel %vm578_vm10, %v5457_v17, %v3102_v52  ;;  %v3480_v23 = vrot.slane %v3479_v16, 2  ;;  %v2742_v26 = vsel %vm234_vm0, %v2740_v9, %v2741_v57  ;;  %v3109_v37 = vadd.f32 %v3108_v51, %v3107_v45 }
 0x30e   : > { %v3497_v29 = vadd.f32 %v3496_v32, %v3495_v33  ;;  %v3487_v27 = vrot.slane %v3486_v11, 2  ;;  %v2749_v34 = vmul.f32 %v5452_v0, %v2745_v13  ;;  %v2744_v59 = vsel %vm2743_vm12, %v2737_v43, %v2742_v26  ;;  %v3501_v43 = vpop.permute.xlu1 %3500 }
 0x30f   : > { %v3481_v41 = vadd.f32 %v3480_v23, %v3479_v16  ;;  %v3122_v1 = vrot.slane %v3120_v3, 4  ;;  %v3121_v8 = vrot.slane %v3118_v14, 4  ;;  %v5525_v31 = vsel %vm578_vm10, %v5466_v49, %v3109_v37 }
 0x310   : > { %v5529_v17 = vsel %vm578_vm10, %v5461_v38, %v3497_v29  ;;  %v3488_v36 = vadd.f32 %v3487_v27, %v3486_v11  ;;  %v2767_v10 = vsel %vm234_vm0, %v2749_v34, 0.0  ;;  %v2748_v42 = vmul.f32 %v5470_v58, %v2744_v59 }
 0x311   : > { %v3482_v20 = vrot.slane %v3481_v41, 1  ;;  %v2768_v47 = vrot.slane %v2767_v10, 4  ;;  %v3126_v25 = vsel %vm3124_vm2, %v3120_v3, %v3122_v1  ;;  %v3123_v50 = vsel %vm234_vm0, %v3121_v8, %v3122_v1 }
 0x312   : > { %v3489_v24 = vrot.slane %v3488_v36, 1  ;;  %v3130_v15 = vmul.f32 %v3126_v25, %v5289_v30  ;;  %vm3505_vm6 = vcmask 474112   ;;  %v2751_v53 = vcombine.high %v2748_v42, %v2748_v42 }
 0x313   : > { %v3483_v49 = vadd.f32 %v3482_v20, %v3481_v41  ;;  %v2769_v56 = vadd.f32 %v2768_v47, %v2767_v10  ;;  %v2753_v38 = vsel %vm234_vm0, %v2748_v42, 0.0  ;;  %v3125_v54 = vsel %vm3124_vm2, %v3118_v14, %v3123_v50  ;;  %v2777_v50 = vpop.permute.xlu1 %2776 }
 0x314   : > { %v3490_v39 = vadd.f32 %v3489_v24, %v3488_v36  ;;  %v2754_v44 = vrot.slane %v2753_v38, 4  ;;  %v3148_v48 = vsel %vm234_vm0, %v3130_v15, 0.0  ;;  %v2760_v28 = vsel %vm234_vm0, %v2751_v53, 0.0  ;;  %v2775_v53 = vpop.permute.xlu0 %2774 }
 0x315   : > { %v5541_v18 = vsel %vm578_vm10, %v5479_v5, %v3483_v49  ;;  %v2770_v30 = vrot.slane %v2769_v56, 2  ;;  %v3149_v62 = vrot.slane %v3148_v48, 4  ;;  %v2761_v46 = vrot.slane %v2760_v28, 4 }
 0x316   : > { %v5546_v61 = vsel %vm578_vm10, %v5486_v2, %v3490_v39  ;;  %v2755_v55 = vadd.f32 %v2754_v44, %v2753_v38  ;;  %v3129_v6 = vmul.f32 %v5470_v58, %v3125_v54  ;;  %v3503_v45 = vrot.slane %v3501_v43, 4 }
 0x317   : > { %v2771_v40 = vadd.f32 %v2770_v30, %v2769_v56  ;;  %v3150_v63 = vadd.f32 %v3149_v62, %v3148_v48  ;;  %v3502_v33 = vrot.slane %v3499_v22, 4  ;;  %v2762_v52 = vadd.f32 %v2761_v46, %v2760_v28 }
 0x318   : > { %v2756_v12 = vrot.slane %v2755_v55, 2  ;;  %v3132_v5 = vcombine.high %v3129_v6, %v3129_v6  ;;  %v3134_v16 = vsel %vm234_vm0, %v3129_v6, 0.0  ;;  %v3507_v32 = vsel %vm3505_vm6, %v3501_v43, %v3503_v45 }
 0x319   : > { %v2772_v57 = vrot.slane %v2771_v40, 1  ;;  %v3151_v9 = vrot.slane %v3150_v63, 2  ;;  %v3135_v51 = vrot.slane %v3134_v16, 4  ;;  %v2763_v11 = vrot.slane %v2762_v52, 2 }
 0x31a   : > { %v2757_v2 = vadd.f32 %v2756_v12, %v2755_v55  ;;  %v3141_v3 = vsel %vm234_vm0, %v3132_v5, 0.0  ;;  %v3511_v14 = vmul.f32 %v3507_v32, %v5317_v21  ;;  %v3504_v41 = vsel %vm234_vm0, %v3502_v33, %v3503_v45 }
 0x31b   : > { %v2773_v23 = vadd.f32 %v2772_v57, %v2771_v40  ;;  %v3152_v13 = vadd.f32 %v3151_v9, %v3150_v63  ;;  %v3136_v26 = vadd.f32 %v3135_v51, %v3134_v16  ;;  %v3142_v37 = vrot.slane %v3141_v3, 4  ;;  %v3158_v16 = vpop.permute.xlu1 %3157  ;;  %v3156_v57 = vpop.permute.xlu0 %3155 }
 0x31c   : > { %v2758_v29 = vrot.slane %v2757_v2, 1  ;;  %v2764_v27 = vadd.f32 %v2763_v11, %v2762_v52  ;;  %v3529_v34 = vsel %vm234_vm0, %v3511_v14, 0.0  ;;  %v3506_v47 = vsel %vm3505_vm6, %v3499_v22, %v3504_v41 }
 0x31d   : > { %v5557_v59 = vsel %vm582_vm13, %v5497_v35, %v2773_v23  ;;  %v3153_v1 = vrot.slane %v3152_v13, 1  ;;  %v3137_v8 = vrot.slane %v3136_v26, 2  ;;  %v3143_v36 = vadd.f32 %v3142_v37, %v3141_v3 }
 0x31e   : > { %v2759_v10 = vadd.f32 %v2758_v29, %v2757_v2  ;;  %v2765_v20 = vrot.slane %v2764_v27, 1  ;;  %v3530_v21 = vrot.slane %v3529_v34, 4  ;;  %v3510_v15 = vmul.f32 %v5470_v58, %v3506_v47 }
 0x31f   : > { %v3154_v42 = vadd.f32 %v3153_v1, %v3152_v13  ;;  %v3138_v25 = vadd.f32 %v3137_v8, %v3136_v26  ;;  %v3144_v24 = vrot.slane %v3143_v36, 2  ;;  %vm2781_vm10 = vcmask 859136   ;;  %v3539_v47 = vpop.permute.xlu1 %3538 }
 0x320   : > { %v2766_v49 = vadd.f32 %v2765_v20, %v2764_v27  ;;  %v5563_v56 = vsel %vm582_vm13, %v5503_v60, %v2759_v10  ;;  %v3531_v35 = vadd.f32 %v3530_v21, %v3529_v34  ;;  %v3513_v48 = vcombine.high %v3510_v15, %v3510_v15 }
 0x321   : > { %v5567_v38 = vsel %vm582_vm13, %v5513_v7, %v3154_v42  ;;  %v3139_v39 = vrot.slane %v3138_v25, 1  ;;  %v3145_v44 = vadd.f32 %v3144_v24, %v3143_v36  ;;  %v3515_v22 = vsel %vm234_vm0, %v3510_v15, 0.0 }
 0x322   : > { %v5571_v54 = vsel %vm582_vm13, %v5508_v4, %v2766_v49  ;;  %v3532_v43 = vrot.slane %v3531_v35, 2  ;;  %v2779_v30 = vrot.slane %v2777_v50, 4  ;;  %v3516_v62 = vrot.slane %v3515_v22, 4 }
 0x323   : > { %v3140_v60 = vadd.f32 %v3139_v39, %v3138_v25  ;;  %v3146_v28 = vrot.slane %v3145_v44, 1  ;;  %v3522_v55 = vsel %vm234_vm0, %v3513_v48, 0.0  ;;  %v2778_v40 = vrot.slane %v2775_v53, 4 }
 0x324   : > { %v3533_v46 = vadd.f32 %v3532_v43, %v3531_v35  ;;  %v3523_v6 = vrot.slane %v3522_v55, 4  ;;  %v2783_v7 = vsel %vm2781_vm10, %v2777_v50, %v2779_v30  ;;  %v3517_v4 = vadd.f32 %v3516_v62, %v3515_v22  ;;  %v3537_v62 = vpop.permute.xlu0 %3536 }
 0x325   : > { %v3147_v63 = vadd.f32 %v3146_v28, %v3145_v44  ;;  %v5578_v45 = vsel %vm582_vm13, %v5517_v19, %v3140_v60  ;;  %v2787_v33 = vmul.f32 %v5452_v0, %v2783_v7  ;;  %v2780_v5 = vsel %vm234_vm0, %v2778_v40, %v2779_v30 }
 0x326   : > { %v3534_v12 = vrot.slane %v3533_v46, 1  ;;  %v3524_v52 = vadd.f32 %v3523_v6, %v3522_v55  ;;  %vm3162_vm4 = vcmask 662528   ;;  %v3518_v51 = vrot.slane %v3517_v4, 2 }
 0x327   : > { %v5584_v9 = vsel %vm582_vm13, %v5525_v31, %v3147_v63  ;;  %v2805_v32 = vsel %vm234_vm0, %v2787_v33, 0.0  ;;  %v2782_v19 = vsel %vm2781_vm10, %v2775_v53, %v2780_v5  ;;  %v3160_v13 = vrot.slane %v3158_v16, 4 }
 0x328   : > { %v3535_v2 = vadd.f32 %v3534_v12, %v3533_v46  ;;  %v3525_v11 = vrot.slane %v3524_v52, 2  ;;  %v2806_v3 = vrot.slane %v2805_v32, 4  ;;  %v2786_v14 = vmul.f32 %v5470_v58, %v2782_v19  ;;  %v2815_v19 = vpop.permute.xlu1 %2814 }
 0x329   : > { %v3519_v23 = vadd.f32 %v3518_v51, %v3517_v4  ;;  %v3159_v26 = vrot.slane %v3156_v57, 4  ;;  %vm3543_vm7 = vcmask 465920   ;;  %v3164_v1 = vsel %vm3162_vm4, %v3158_v16, %v3160_v13 }
 0x32a   : > { %v5591_v37 = vsel %vm582_vm13, %v5529_v17, %v3535_v2  ;;  %v3526_v31 = vadd.f32 %v3525_v11, %v3524_v52  ;;  %v2807_v29 = vadd.f32 %v2806_v3, %v2805_v32  ;;  %v2789_v27 = vcombine.high %v2786_v14, %v2786_v14  ;;  %v5598_v17 = vld [vmem:[%s4314_s28 + $0x8] sm:$0xf] }
 0x32b   : > { %v3520_v34 = vrot.slane %v3519_v23, 1  ;;  %v2791_v41 = vsel %vm234_vm0, %v2786_v14, 0.0  ;;  %v3161_v8 = vsel %vm234_vm0, %v3159_v26, %v3160_v13  ;;  %v3168_v24 = vmul.f32 %v5598_v17, %v3164_v1  ;;  %v5616_v52 = vld [vmem:[%s4314_s28 + $0x8] sm:$0xf] }
 0x32c   : > { %v3527_v36 = vrot.slane %v3526_v31, 1  ;;  %v2808_v10 = vrot.slane %v2807_v29, 2  ;;  %v2792_v20 = vrot.slane %v2791_v41, 4  ;;  %v2798_v21 = vsel %vm234_vm0, %v2789_v27, 0.0 }
 0x32d   : > { %v3521_v42 = vadd.f32 %v3520_v34, %v3519_v23  ;;  %v2799_v25 = vrot.slane %v2798_v21, 4  ;;  %v3163_v15 = vsel %vm3162_vm4, %v3156_v57, %v3161_v8  ;;  %v3186_v48 = vsel %vm234_vm0, %v3168_v24, 0.0 }
 0x32e   : > { %v3528_v50 = vadd.f32 %v3527_v36, %v3526_v31  ;;  %v2809_v49 = vadd.f32 %v2808_v10, %v2807_v29  ;;  %v2793_v35 = vadd.f32 %v2792_v20, %v2791_v41  ;;  %v3167_v53 = vmul.f32 %v5470_v58, %v3163_v15  ;;  %v2813_v10 = vpop.permute.xlu0 %2812 }
 0x32f   : > { %v5605_v39 = vsel %vm582_vm13, %v5541_v18, %v3521_v42  ;;  %v2800_v44 = vadd.f32 %v2799_v25, %v2798_v21  ;;  %v3541_v43 = vrot.slane %v3539_v47, 4  ;;  %v3187_v28 = vrot.slane %v3186_v48, 4 }
 0x330   : > { %v5610_v22 = vsel %vm582_vm13, %v5546_v61, %v3528_v50  ;;  %v2810_v30 = vrot.slane %v2809_v49, 1  ;;  %v2794_v60 = vrot.slane %v2793_v35, 2  ;;  %v3170_v46 = vcombine.high %v3167_v53, %v3167_v53 }
 0x331   : > { %v2801_v55 = vrot.slane %v2800_v44, 2  ;;  %v3172_v6 = vsel %vm234_vm0, %v3167_v53, 0.0  ;;  %v3545_v18 = vsel %vm3543_vm7, %v3539_v47, %v3541_v43  ;;  %v3188_v63 = vadd.f32 %v3187_v28, %v3186_v48 }
 0x332   : > { %v2811_v7 = vadd.f32 %v2810_v30, %v2809_v49  ;;  %v2795_v40 = vadd.f32 %v2794_v60, %v2793_v35  ;;  %v3173_v4 = vrot.slane %v3172_v6, 4  ;;  %v3179_v12 = vsel %vm234_vm0, %v3170_v46, 0.0  ;;  %v3196_v30 = vpop.permute.xlu1 %3195 }
 0x333   : > { %v2802_v33 = vadd.f32 %v2801_v55, %v2800_v44  ;;  %v3549_v61 = vmul.f32 %v5616_v52, %v3545_v18  ;;  %v3540_v5 = vrot.slane %v3537_v62, 4  ;;  %v3189_v51 = vrot.slane %v3188_v63, 2 }
 0x334   : > { %v2869_v16 = vsel %vm586_vm15, %v5557_v59, %v2811_v7  ;;  %v2796_v57 = vrot.slane %v2795_v40, 1  ;;  %v3174_v32 = vadd.f32 %v3173_v4, %v3172_v6  ;;  %v3180_v3 = vrot.slane %v3179_v12, 4 }
 0x335   : > { %v2872_v2 = vmul.f32 0.25, %v2869_v16  ;;  %v2803_v11 = vrot.slane %v2802_v33, 1  ;;  %v3567_v14 = vsel %vm234_vm0, %v3549_v61, 0.0  ;;  %v3190_v13 = vadd.f32 %v3189_v51, %v3188_v63  ;;  %v3194_v51 = vpop.permute.xlu0 %3193 }
 0x336   : > { %v2797_v23 = vadd.f32 %v2796_v57, %v2795_v40  ;;  %v3175_v26 = vrot.slane %v3174_v32, 2  ;;  %v3568_v31 = vrot.slane %v3567_v14, 4  ;;  %v3181_v27 = vadd.f32 %v3180_v3, %v3179_v12  ;;  %v5649_v3 = vpop.permute.xlu1 %3576 }
 0x337   : > { %3806 = vst [vmem:[%s4569_s23 + $0x130] sm:$0xff] %v2872_v2  ;;  %v2804_v29 = vadd.f32 %v2803_v11, %v2802_v33  ;;  %v3542_v34 = vsel %vm234_vm0, %v3540_v5, %v3541_v43  ;;  %v2817_v59 = vrot.slane %v2815_v19, 4  ;;  %v3191_v1 = vrot.slane %v3190_v13, 1 }
 0x338   : > { %v2867_v41 = vsel %vm586_vm15, %v5563_v56, %v2797_v23  ;;  %v3176_v8 = vadd.f32 %v3175_v26, %v3174_v32  ;;  %v3569_v36 = vadd.f32 %v3568_v31, %v3567_v14  ;;  %v3182_v47 = vrot.slane %v3181_v27, 2 }
 0x339   : > { %v2868_v20 = vsel %vm586_vm15, %v5571_v54, %v2804_v29  ;;  %v2870_v21 = vmul.f32 0.25, %v2867_v41  ;;  %v3544_v42 = vsel %vm3543_vm7, %v3537_v62, %v3542_v34  ;;  %v3192_v24 = vadd.f32 %v3191_v1, %v3190_v13 }
 0x33a   : > { %v2871_v25 = vmul.f32 0.25, %v2868_v20  ;;  %v3177_v15 = vrot.slane %v3176_v8, 1  ;;  %v3570_v50 = vrot.slane %v3569_v36, 2  ;;  %v3183_v49 = vadd.f32 %v3182_v47, %v3181_v27 }
 0x33b   : > { %3804 = vst [vmem:[%s4569_s23 + $0x120] sm:$0xff] %v2870_v21  ;;  %v3548_v56 = vmul.f32 %v5470_v58, %v3544_v42  ;;  %v2820_v35 = vsel %vm615_vm14, %v2815_v19, %v2817_v59  ;;  %v2816_v53 = vrot.slane %v2813_v10, 4  ;;  %v3250_v54 = vsel %vm586_vm15, %v5567_v38, %v3192_v24 }
 0x33c   : > { %3805 = vst [vmem:[%s4569_s23 + $0x128] sm:$0xff] %v2871_v25  ;;  %v3178_v44 = vadd.f32 %v3177_v15, %v3176_v8  ;;  %v3571_v48 = vadd.f32 %v3570_v50, %v3569_v36  ;;  %v2824_v43 = vmul.f32 %v5452_v0, %v2820_v35  ;;  %v3253_v60 = vmul.f32 0.25, %v3250_v54 }
 0x33d   : > { %v3184_v28 = vrot.slane %v3183_v49, 1  ;;  %v3551_v62 = vcombine.high %v3548_v56, %v3548_v56  ;;  %v3553_v55 = vsel %vm234_vm0, %v3548_v56, 0.0  ;;  %v2818_v61 = vsel %vm234_vm0, %v2816_v53, %v2817_v59 }
 0x33e   : > { %v3248_v46 = vsel %vm586_vm15, %v5578_v45, %v3178_v44  ;;  %v3572_v6 = vrot.slane %v3571_v48, 1  ;;  %v3554_v18 = vrot.slane %v3553_v55, 4  ;;  %v2842_v7 = vsel %vm234_vm0, %v2824_v43, 0.0  ;;  %3812 = vst [vmem:[%s4569_s23 + $0x160] sm:$0xff] %v3253_v60 }
 0x33f   : > { %v3185_v38 = vadd.f32 %v3184_v28, %v3183_v49  ;;  %v3251_v40 = vmul.f32 0.25, %v3248_v46  ;;  %v3560_v63 = vsel %vm234_vm0, %v3551_v62, 0.0  ;;  %v2843_v0 = vrot.slane %v2842_v7, 4 }
 0x340   : > { %v3573_v4 = vadd.f32 %v3572_v6, %v3571_v48  ;;  %v3555_v33 = vadd.f32 %v3554_v18, %v3553_v55  ;;  %v3561_v12 = vrot.slane %v3560_v63, 4  ;;  %v2819_v16 = vsel %vm615_vm14, %v2813_v10, %v2818_v61  ;;  %v3575_v18 = vpop.permute.xlu0 %3574 }
 0x341   : > { %v3249_v5 = vsel %vm586_vm15, %v5584_v9, %v3185_v38  ;;  %3810 = vst [vmem:[%s4569_s23 + $0x150] sm:$0xff] %v3251_v40  ;;  %v2844_v45 = vadd.f32 %v2843_v0, %v2842_v7  ;;  %v3198_v57 = vrot.slane %v3196_v30, 4  ;;  %v2823_v13 = vmul.f32 %v5470_v58, %v2819_v16 }
 0x342   : > { %v3252_v32 = vmul.f32 0.25, %v3249_v5  ;;  %v3631_v19 = vsel %vm586_vm15, %v5591_v37, %v3573_v4  ;;  %v3556_v2 = vrot.slane %v3555_v33, 2  ;;  %v3562_v11 = vadd.f32 %v3561_v12, %v3560_v63 }
 0x343   : > { %v3634_v14 = vmul.f32 0.25, %v3631_v19  ;;  %v2845_v23 = vrot.slane %v2844_v45, 2  ;;  %v3201_v9 = vsel %vm997_vm1, %v3196_v30, %v3198_v57  ;;  %v3197_v27 = vrot.slane %v3194_v51, 4 }
 0x344   : > { %3811 = vst [vmem:[%s4569_s23 + $0x158] sm:$0xff] %v3252_v32  ;;  %v3557_v26 = vadd.f32 %v3556_v2, %v3555_v33  ;;  %v3563_v31 = vrot.slane %v3562_v11, 2  ;;  %v3205_v29 = vmul.f32 %v5598_v17, %v3201_v9  ;;  %v2826_v59 = vcombine.high %v2823_v13, %v2823_v13 }
 0x345   : > { %3818 = vst [vmem:[%s4569_s23 + $0x190] sm:$0xff] %v3634_v14  ;;  %v2846_v34 = vadd.f32 %v2845_v23, %v2844_v45  ;;  %v2828_v37 = vsel %vm234_vm0, %v2823_v13, 0.0  ;;  %v3579_v41 = vrot.slane %v5649_v3, 4  ;;  %v3199_v42 = vsel %vm234_vm0, %v3197_v27, %v3198_v57 }
 0x346   : > { %v3558_v1 = vrot.slane %v3557_v26, 1  ;;  %v3564_v8 = vadd.f32 %v3563_v31, %v3562_v11  ;;  %v2829_v36 = vrot.slane %v2828_v37, 4  ;;  %v3223_v10 = vsel %vm234_vm0, %v3205_v29, 0.0 }
 0x347   : > { %v2847_v20 = vrot.slane %v2846_v34, 1  ;;  %v2835_v21 = vsel %vm234_vm0, %v2826_v59, 0.0  ;;  %v3224_v47 = vrot.slane %v3223_v10, 4  ;;  %v3200_v56 = vsel %vm997_vm1, %v3194_v51, %v3199_v42 }
 0x348   : > { %v3559_v17 = vadd.f32 %v3558_v1, %v3557_v26  ;;  %v3565_v25 = vrot.slane %v3564_v8, 1  ;;  %v2830_v24 = vadd.f32 %v2829_v36, %v2828_v37  ;;  %v2836_v15 = vrot.slane %v2835_v21, 4 }
 0x349   : > { %v2848_v50 = vadd.f32 %v2847_v20, %v2846_v34  ;;  %v3225_v49 = vadd.f32 %v3224_v47, %v3223_v10  ;;  %v3582_v35 = vsel %vm1379_vm3, %v5649_v3, %v3579_v41  ;;  %v3204_v28 = vmul.f32 %v5470_v58, %v3200_v56 }
 0x34a   : > { %v3566_v53 = vadd.f32 %v3565_v25, %v3564_v8  ;;  %v3629_v54 = vsel %vm586_vm15, %v5605_v39, %v3559_v17  ;;  %v2831_v44 = vrot.slane %v2830_v24, 2  ;;  %v2837_v48 = vadd.f32 %v2836_v15, %v2835_v21 }
 0x34b   : > { %v3632_v43 = vmul.f32 0.25, %v3629_v54  ;;  %v2875_v30 = vmul.f32 0.25, %v2848_v50  ;;  %v3226_v60 = vrot.slane %v3225_v49, 2  ;;  %v3586_v6 = vmul.f32 %v5616_v52, %v3582_v35 }
 0x34c   : > { %v3630_v62 = vsel %vm586_vm15, %v5610_v22, %v3566_v53  ;;  %v2832_v55 = vadd.f32 %v2831_v44, %v2830_v24  ;;  %v2838_v46 = vrot.slane %v2837_v48, 2  ;;  %v3207_v38 = vcombine.high %v3204_v28, %v3204_v28 }
 0x34d   : > { %v3633_v7 = vmul.f32 0.25, %v3630_v62  ;;  %3816 = vst [vmem:[%s4569_s23 + $0x180] sm:$0xff] %v3632_v43  ;;  %3809 = vst [vmem:[%s4569_s23 + $0x148] sm:$0x1] %v2875_v30  ;;  %v3227_v39 = vadd.f32 %v3226_v60, %v3225_v49  ;;  %v3209_v40 = vsel %vm234_vm0, %v3204_v28, 0.0  ;;  %v3604_v33 = vsel %vm234_vm0, %v3586_v6, 0.0 }
 0x34e   : > { %v2833_v63 = vrot.slane %v2832_v55, 1  ;;  %v2839_v0 = vadd.f32 %v2838_v46, %v2837_v48  ;;  %v3210_v4 = vrot.slane %v3209_v40, 4  ;;  %v3216_v22 = vsel %vm234_vm0, %v3207_v38, 0.0 }
 0x34f   : > { %3817 = vst [vmem:[%s4569_s23 + $0x188] sm:$0xff] %v3633_v7  ;;  %v3228_v12 = vrot.slane %v3227_v39, 1  ;;  %v3605_v61 = vrot.slane %v3604_v33, 4  ;;  %v3578_v5 = vrot.slane %v3575_v18, 4  ;;  %v3217_v57 = vrot.slane %v3216_v22, 4 }
 0x350   : > { %v2834_v52 = vadd.f32 %v2833_v63, %v2832_v55  ;;  %v2840_v45 = vrot.slane %v2839_v0, 1  ;;  %v3211_v16 = vadd.f32 %v3210_v4, %v3209_v40 }
 0x351   : > { %v3229_v51 = vadd.f32 %v3228_v12, %v3227_v39  ;;  %v3606_v32 = vadd.f32 %v3605_v61, %v3604_v33  ;;  %v3580_v19 = vsel %vm234_vm0, %v3578_v5, %v3579_v41  ;;  %v3218_v14 = vadd.f32 %v3217_v57, %v3216_v22 }
 0x352   : > { %v2841_v2 = vadd.f32 %v2840_v45, %v2839_v0  ;;  %v2873_v11 = vmul.f32 0.25, %v2834_v52  ;;  %v3212_v3 = vrot.slane %v3211_v16, 2  ;;  %v3581_v9 = vsel %vm1379_vm3, %v3575_v18, %v3580_v19 }
 0x353   : > { %v3256_v23 = vmul.f32 0.25, %v3229_v51  ;;  %v3607_v13 = vrot.slane %v3606_v32, 2  ;;  %v3219_v29 = vrot.slane %v3218_v14, 2  ;;  %v3585_v27 = vmul.f32 %v5470_v58, %v3581_v9 }
 0x354   : > { %v2874_v26 = vmul.f32 0.25, %v2841_v2  ;;  %3807 = vst [vmem:[%s4569_s23 + $0x138] sm:$0x1] %v2873_v11  ;;  %v3213_v31 = vadd.f32 %v3212_v3, %v3211_v16 }
 0x355   : > { %3815 = vst [vmem:[%s4569_s23 + $0x178] sm:$0x1] %v3256_v23  ;;  %v3608_v34 = vadd.f32 %v3607_v13, %v3606_v32  ;;  %v3220_v37 = vadd.f32 %v3219_v29, %v3218_v14  ;;  %v3588_v41 = vcombine.high %v3585_v27, %v3585_v27  ;;  %v3590_v1 = vsel %vm234_vm0, %v3585_v27, 0.0 }
 0x356   : > { %3808 = vst [vmem:[%s4569_s23 + $0x140] sm:$0x1] %v2874_v26  ;;  %v3214_v59 = vrot.slane %v3213_v31, 1  ;;  %v3591_v36 = vrot.slane %v3590_v1, 4 }
 0x357   : > { %v3609_v8 = vrot.slane %v3608_v34, 1  ;;  %v3221_v20 = vrot.slane %v3220_v37, 1  ;;  %v3597_v21 = vsel %vm234_vm0, %v3588_v41, 0.0 }
 0x358   : > { %v3215_v10 = vadd.f32 %v3214_v59, %v3213_v31  ;;  %v3592_v42 = vadd.f32 %v3591_v36, %v3590_v1  ;;  %v3598_v58 = vrot.slane %v3597_v21, 4 }
 0x359   : > { %v3610_v47 = vadd.f32 %v3609_v8, %v3608_v34  ;;  %v3222_v17 = vadd.f32 %v3221_v20, %v3220_v37 }
 0x35a   : > { %v3254_v25 = vmul.f32 0.25, %v3215_v10  ;;  %v3593_v15 = vrot.slane %v3592_v42, 2  ;;  %v3599_v50 = vadd.f32 %v3598_v58, %v3597_v21 }
 0x35b   : > { %v3637_v24 = vmul.f32 0.25, %v3610_v47  ;;  %v3255_v49 = vmul.f32 0.25, %v3222_v17 }
 0x35c   : > { %3813 = vst [vmem:[%s4569_s23 + $0x168] sm:$0x1] %v3254_v25  ;;  %v3594_v56 = vadd.f32 %v3593_v15, %v3592_v42  ;;  %v3600_v35 = vrot.slane %v3599_v50, 2 }
 0x35d   : > { %3821 = vst [vmem:[%s4569_s23 + $0x1a8] sm:$0x1] %v3637_v24  ;;  %3814 = vst [vmem:[%s4569_s23 + $0x170] sm:$0x1] %v3255_v49 }
 0x35e   : > { %v3595_v53 = vrot.slane %v3594_v56, 1  ;;  %v3601_v54 = vadd.f32 %v3600_v35, %v3599_v50 }
 0x360   : > { %v3596_v44 = vadd.f32 %v3595_v53, %v3594_v56  ;;  %v3602_v48 = vrot.slane %v3601_v54, 1 }
 0x362   : > { %v3603_v43 = vadd.f32 %v3602_v48, %v3601_v54  ;;  %v3635_v30 = vmul.f32 0.25, %v3596_v44 }
 0x364   : > { %v3636_v60 = vmul.f32 0.25, %v3603_v43  ;;  %3819 = vst [vmem:[%s4569_s23 + $0x198] sm:$0x1] %v3635_v30 }
 0x366   : > { %3820 = vst [vmem:[%s4569_s23 + $0x1a0] sm:$0x1] %v3636_v60 }
 0x367 PF: > { %s18_s14 = sadd.s32 1, %s4090_s14   ;;  %s5718_s9 = smov %s4074_s10 }
 0x368   : > { %p15_p9 = scmp.ge.s32.totalorder %s18_s14, 4   ;;  %s5719_s10 = smov %s4078_s11 }
 0x369   : > { %s5720_s11 = smov %s4230_s20  ;;  %s5721_s12 = smov %s4086_s13 }
 0x36a   : > { %s5722_s13 = smov %s5724_s16  ;;  %17 = sbr.rel (!%p15_p9) target bundleno = 6 (0x6), region = 89 }
 0x371   :  { %3677 = vsyncpa [#allocation3], 1 }
 0x372   :  { %3679 = vsyncpa [#allocation3 + $0x1], 1 }
 0x373   :  { %3680 = vsyncpa [#allocation5], 1 }
 0x374   :  { %3682 = vsyncpa [#allocation5 + $0x1], 1 }

</bundles_post_ra>
